<compile_context>
chip_gen: v7x
topology: tpu7x:2x2x1
jax: 0.10.0
libtpu: 0.0.40
codegen_flags: <defaults>
</compile_context>

<pallas_src>
import functools

import jax
import jax.numpy as jnp
from jax.experimental import pallas as pl
from jax.experimental.pallas import tpu as pltpu

EPS = 1e-5
LANE = 128


def _round_up(x, m):
    return (x + m - 1) // m * m


# ----------------------------------------------------------------------------
# Pass 1 kernel: 3x3x3 conv (+bias) for one (n, d) output plane, emitting
# per-plane BN partial sums (no revisited blocks -> fully parallel grid).
# ----------------------------------------------------------------------------
def _conv3x3_bias_stats_kernel(x0_ref, x1_ref, x2_ref, w_ref, b_ref,
                               y_ref, ssum_ref, ssq_ref):
    # x{0,1,2}_ref: (1, 1, H+2, W+2, Cin_p) depth planes d, d+1, d+2 (halo)
    # w_ref:        (27, Cin_p, Cout_p)     tap-major weights
    # b_ref:        (1, Cout_p)             bias (f32)
    # y_ref:        (1, 1, H*W, Cout_p)     conv + bias (pre-BN) output plane
    # ssum/ssq_ref: (1, 1, 8, Cout_p)       per-plane BN partial sums (f32)
    hp2, wp2 = x0_ref.shape[2], x0_ref.shape[3]
    h, w = hp2 - 2, wp2 - 2
    cin = x0_ref.shape[4]
    cout = y_ref.shape[3]
    hw = h * w

    planes = (x0_ref, x1_ref, x2_ref)
    acc = jnp.zeros((hw, cout), jnp.float32)
    for kd in range(3):
        xr = planes[kd]
        for kh in range(3):
            for kw in range(3):
                tap = xr[0, 0, kh:kh + h, kw:kw + w, :].reshape(hw, cin)
                acc = acc + jnp.dot(tap, w_ref[kd * 9 + kh * 3 + kw],
                                    preferred_element_type=jnp.float32)
    y = acc + b_ref[...]                      # f32
    y_ref[0, 0] = y.astype(y_ref.dtype)

    # BN partial sums folded along sublane groups: (hw, C) -> (8, C) via pure
    # elementwise vreg adds (no XLU), final 8-row + (n,d) reduce done in JAX.
    hw8 = (hw + 7) // 8 * 8
    y_s = y if hw8 == hw else jnp.pad(y, ((0, hw8 - hw), (0, 0)))
    ssum_ref[0, 0] = y_s.reshape(hw8 // 8, 8, cout).sum(axis=0)
    ssq_ref[0, 0] = (y_s * y_s).reshape(hw8 // 8, 8, cout).sum(axis=0)


def conv3x3_bias_stats(xp, w, b, out_dtype):
    """xp: (N, D+2, H+2, W+2, Cin_p) zero-padded NDHWC input (compute dtype)
       w : (27, Cin_p, Cout_p)       tap-major weights     (compute dtype)
       b : (1, Cout_p)               bias                  (f32)
    -> (conv+bias (N, D, H*W, Cout_p) out_dtype,
        partial sums   (N, D, 8, Cout_p) f32,
        partial sumsqs (N, D, 8, Cout_p) f32)
    """
    n, dp2, hp2, wp2, cin_p = xp.shape
    d, h, w_sp = dp2 - 2, hp2 - 2, wp2 - 2
    hw = h * w_sp
    cout_p = w.shape[2]

    def plane_spec(kd):
        def imap(ni, di):
            return (ni, di + kd, 0, 0, 0)   # depth block size 1 -> element index
        return pl.BlockSpec((1, 1, hp2, wp2, cin_p), imap)

    flops = 2 * n * d * hw * 27 * cin_p * cout_p
    bytes_accessed = (3 * xp.size * xp.dtype.itemsize
                      + w.size * w.dtype.itemsize + b.size * 4
                      + n * d * hw * cout_p * jnp.dtype(out_dtype).itemsize
                      + 2 * n * d * 8 * cout_p * 4)

    grid_spec = pltpu.PrefetchScalarGridSpec(
        num_scalar_prefetch=0,
        grid=(n, d),
        in_specs=[plane_spec(0), plane_spec(1), plane_spec(2),
                  pl.BlockSpec((27, cin_p, cout_p), lambda ni, di: (0, 0, 0)),
                  pl.BlockSpec((1, cout_p), lambda ni, di: (0, 0))],
        out_specs=(pl.BlockSpec((1, 1, hw, cout_p), lambda ni, di: (ni, di, 0, 0)),
                   pl.BlockSpec((1, 1, 8, cout_p), lambda ni, di: (ni, di, 0, 0)),
                   pl.BlockSpec((1, 1, 8, cout_p), lambda ni, di: (ni, di, 0, 0))),
    )
    # TODO(synk): a manual rolling-buffer halo (P4) would read each input depth
    # plane once instead of 3x; the pass is compute-bound so it is skipped.
    return pl.pallas_call(
        _conv3x3_bias_stats_kernel,
        grid_spec=grid_spec,
        out_shape=(jax.ShapeDtypeStruct((n, d, hw, cout_p), out_dtype),
                   jax.ShapeDtypeStruct((n, d, 8, cout_p), jnp.float32),
                   jax.ShapeDtypeStruct((n, d, 8, cout_p), jnp.float32)),
        compiler_params=pltpu.CompilerParams(
            dimension_semantics=("parallel", "parallel")),
        cost_estimate=pl.CostEstimate(flops=int(flops), transcendentals=0,
                                      bytes_accessed=int(bytes_accessed)),
    )(xp, xp, xp, w, b)


# ----------------------------------------------------------------------------
# Pass 2 kernels: tiled BN affine + ReLU (+ fused 1x1x1 residual matmul).
# ----------------------------------------------------------------------------
def _bn_relu_kernel(y_ref, scale_ref, shift_ref, o_ref):
    y = y_ref[...] * scale_ref[...] + shift_ref[...]
    o_ref[...] = jnp.maximum(y, 0.0).astype(o_ref.dtype)


def _bn_relu_res_kernel(y_ref, scale_ref, shift_ref, xres_ref, wres_ref, o_ref):
    y = jnp.maximum(y_ref[...] * scale_ref[...] + shift_ref[...], 0.0)
    res = jnp.dot(xres_ref[...], wres_ref[...], preferred_element_type=jnp.float32)
    o_ref[...] = (y + res).astype(o_ref.dtype)


def bn_relu_apply(y, scale, shift, out_dtype, xres=None, wres=None, tm=512):
    """Tiled over M rows: o = ReLU(y*scale + shift) [+ xres @ wres]."""
    m, cp = y.shape
    tm = min(tm, _round_up(m, 8))
    mp = _round_up(m, tm)
    if mp != m:                                   # pad rows so the grid divides
        y = jnp.pad(y, ((0, mp - m), (0, 0)))
        if xres is not None:
            xres = jnp.pad(xres, ((0, mp - m), (0, 0)))

    row_spec = pl.BlockSpec((tm, cp), lambda i: (i, 0))
    vec_spec = pl.BlockSpec((1, cp), lambda i: (0, 0))

    flops = 3 * mp * cp
    bytes_accessed = (mp * cp * (y.dtype.itemsize + jnp.dtype(out_dtype).itemsize)
                      + 2 * cp * 4)
    if xres is None:
        kernel = _bn_relu_kernel
        in_specs = [row_spec, vec_spec, vec_spec]
        args = (y, scale, shift)
    else:
        cin_p = xres.shape[1]
        flops += 2 * mp * cin_p * cp
        bytes_accessed += (mp * cin_p * xres.dtype.itemsize
                           + cin_p * cp * wres.dtype.itemsize)
        kernel = _bn_relu_res_kernel
        in_specs = [row_spec, vec_spec, vec_spec,
                    pl.BlockSpec((tm, cin_p), lambda i: (i, 0)),
                    pl.BlockSpec((cin_p, cp), lambda i: (0, 0))]
        args = (y, scale, shift, xres, wres)

    out = pl.pallas_call(
        kernel,
        grid_spec=pltpu.PrefetchScalarGridSpec(
            num_scalar_prefetch=0, grid=(mp // tm,),
            in_specs=in_specs, out_specs=row_spec),
        out_shape=jax.ShapeDtypeStruct((mp, cp), out_dtype),
        compiler_params=pltpu.CompilerParams(
            dimension_semantics=("parallel",)),
        cost_estimate=pl.CostEstimate(flops=int(flops), transcendentals=0,
                                      bytes_accessed=int(bytes_accessed)),
    )(*args)
    return out[:m]


# ----------------------------------------------------------------------------
# Glue (plain JAX): layout/padding plumbing + tiny BN stat reductions.
# ----------------------------------------------------------------------------
def _bn_scale_shift(ssum_p, ssq_p, gamma, beta, m):
    # ssum_p / ssq_p: (N, D, 8, Cout_p) partial sums from pass 1.
    cp = ssum_p.shape[-1]
    ssum = jnp.sum(ssum_p, axis=(0, 1, 2)).reshape(1, cp)
    ssq = jnp.sum(ssq_p, axis=(0, 1, 2)).reshape(1, cp)
    mean = ssum / m
    var = ssq / m - mean * mean            # biased variance (training-mode BN)
    scale = gamma * jax.lax.rsqrt(var + EPS)
    return scale, beta - mean * scale


def _pad_last(a, cp):
    c = a.shape[-1]
    if c == cp:
        return a
    return jnp.pad(a, [(0, 0)] * (a.ndim - 1) + [(0, cp - c)])


def _pad_halo(a):                           # (N,D,H,W,C) -> 1-voxel zero halo
    return jnp.pad(a, ((0, 0), (1, 1), (1, 1), (1, 1), (0, 0)))


def _prep_w3x3(w, cin_p, cout_p, dtype):
    # PyTorch (Cout, Cin, 3, 3, 3) -> tap-major (27, Cin_p, Cout_p)
    cout, cin = w.shape[0], w.shape[1]
    wt = jnp.transpose(w, (2, 3, 4, 1, 0)).reshape(27, cin, cout)
    wt = jnp.pad(wt, ((0, 0), (0, cin_p - cin), (0, cout_p - cout)))
    return wt.astype(dtype)


def _prep_vec(v, cp):
    return jnp.pad(v, (0, cp - v.shape[0])).reshape(1, cp).astype(jnp.float32)


def conv3d_block_forward(x_ncdhw, p, residual=None, compute_dtype=jnp.float32):
    x = jnp.transpose(x_ncdhw, (0, 2, 3, 4, 1)).astype(jnp.float32)  # NDHWC
    n, d, h, w_sp, cin = x.shape
    cout = p["w1"].shape[0]
    m = n * d * h * w_sp
    cin_p = _round_up(cin, LANE)
    cout_p = _round_up(cout, LANE)

    w1 = _prep_w3x3(p["w1"], cin_p, cout_p, compute_dtype)
    w2 = _prep_w3x3(p["w2"], cout_p, cout_p, compute_dtype)
    b1, b2 = _prep_vec(p["b1"], cout_p), _prep_vec(p["b2"], cout_p)
    g1, be1 = _prep_vec(p["g1"], cout_p), _prep_vec(p["be1"], cout_p)
    g2, be2 = _prep_vec(p["g2"], cout_p), _prep_vec(p["be2"], cout_p)

    x_cp = _pad_last(x, cin_p)                               # (N,D,H,W,Cin_p)

    # conv1: conv+bias+BN-partials pass, then tiled BN affine + ReLU.
    y1c, s1p, q1p = conv3x3_bias_stats(_pad_halo(x_cp).astype(compute_dtype),
                                       w1, b1, out_dtype=compute_dtype)
    sc1, sh1 = _bn_scale_shift(s1p, q1p, g1, be1, m)
    y1 = bn_relu_apply(y1c.reshape(m, cout_p), sc1, sh1, out_dtype=compute_dtype)

    # conv2 reads y1 directly in compute dtype (no f32 round trip, no im2col).
    y1p = _pad_halo(y1.reshape(n, d, h, w_sp, cout_p))
    y2c, s2p, q2p = conv3x3_bias_stats(y1p, w2, b2, out_dtype=compute_dtype)
    sc2, sh2 = _bn_scale_shift(s2p, q2p, g2, be2, m)

    if residual:
        wres = jnp.pad(p["wres"].reshape(cout, cin).T,
                       ((0, cin_p - cin), (0, cout_p - cout))).astype(compute_dtype)
        xres = x_cp.reshape(m, cin_p).astype(compute_dtype)
        y2 = bn_relu_apply(y2c.reshape(m, cout_p), sc2, sh2,
                           out_dtype=jnp.float32, xres=xres, wres=wres)
    else:
        y2 = bn_relu_apply(y2c.reshape(m, cout_p), sc2, sh2, out_dtype=jnp.float32)

    out = y2.reshape(n, d, h, w_sp, cout_p)[..., :cout]
    return jnp.transpose(out, (0, 4, 1, 2, 3))               # back to NCDHW


# ----------------------------------------------------------------------------
# Parameters (deterministic synthetic init) and pure-JAX reference.
# ----------------------------------------------------------------------------
def init_params(key, in_feat, out_feat, residual):
    ks = jax.random.split(key, 5)
    p = dict(
        w1=jax.random.normal(ks[0], (out_feat, in_feat, 3, 3, 3), jnp.float32) * 0.1,
        b1=jax.random.normal(ks[1], (out_feat,), jnp.float32) * 0.1,
        w2=jax.random.normal(ks[2], (out_feat, out_feat, 3, 3, 3), jnp.float32) * 0.1,
        b2=jax.random.normal(ks[3], (out_feat,), jnp.float32) * 0.1,
        g1=jnp.ones((out_feat,), jnp.float32), be1=jnp.zeros((out_feat,), jnp.float32),
        g2=jnp.ones((out_feat,), jnp.float32), be2=jnp.zeros((out_feat,), jnp.float32),
    )
    if residual:
        p["wres"] = jax.random.normal(ks[4], (out_feat, in_feat, 1, 1, 1),
                                      jnp.float32) * 0.1
    return p


def ref_forward(x, p, residual):
    dn = ("NCDHW", "OIDHW", "NCDHW")

    def conv(z, w, b):
        y = jax.lax.conv_general_dilated(z, w, (1, 1, 1),
                                         ((1, 1), (1, 1), (1, 1)),
                                         dimension_numbers=dn)
        return y + b[None, :, None, None, None]

    def bn_relu(y, g, be):
        mean = jnp.mean(y, axis=(0, 2, 3, 4), keepdims=True)
        var = jnp.mean(jnp.square(y - mean), axis=(0, 2, 3, 4), keepdims=True)
        yhat = (y - mean) * jax.lax.rsqrt(var + EPS)
        return jnp.maximum(g[None, :, None, None, None] * yhat
                           + be[None, :, None, None, None], 0.0)

    y1 = bn_relu(conv(x, p["w1"], p["b1"]), p["g1"], p["be1"])
    y2 = bn_relu(conv(y1, p["w2"], p["b2"]), p["g2"], p["be2"])
    if residual:
        y2 = y2 + jax.lax.conv_general_dilated(x, p["wres"], (1, 1, 1),
                                               ((0, 0), (0, 0), (0, 0)),
                                               dimension_numbers=dn)
    return y2


# ----------------------------------------------------------------------------
if __name__ == "__main__":
    key = jax.random.PRNGKey(0)
    kx, kp = jax.random.split(key)

    N, Cin, Cout, D, H, W = 2, 4, 8, 8, 8, 8
    x = jax.random.normal(kx, (N, Cin, D, H, W), jnp.float32)

    ok = True
    for residual in (None, True):               # plain path and residual path
        params = init_params(kp, Cin, Cout, residual)
        ref = jax.block_until_ready(ref_forward(x, params, residual))

        # f32 MXU-input path: tight agreement with the PyTorch-equivalent ref.
        fwd32 = jax.jit(functools.partial(conv3d_block_forward,
                                          residual=residual,
                                          compute_dtype=jnp.float32))
        out32 = jax.block_until_ready(fwd32(x, params))
        ok &= out32.shape == (N, Cout, D, H, W)
        ok &= bool(jnp.allclose(out32, ref, rtol=1e-3, atol=1e-3))

        # bf16 MXU-input path (f32 accumulation / f32 BN stats): loose agreement.
        fwd16 = jax.jit(functools.partial(conv3d_block_forward,
                                          residual=residual,
                                          compute_dtype=jnp.bfloat16))
        out16 = jax.block_until_ready(fwd16(x, params))
        ok &= out16.shape == (N, Cout, D, H, W)
        ok &= bool(jnp.allclose(out16, ref, rtol=6e-2, atol=6e-2))

    if ok:
        print("KERNEL_OK")
</pallas_src>

<mosaic_0001>
module attributes {stable_mosaic.version = 11 : i64} {
  func.func @_conv3x3_bias_stats_kernel(%arg0: i32, %arg1: i32, %arg2: memref<1x1x10x10x128xf32, #tpu.memory_space<vmem>>, %arg3: memref<1x1x10x10x128xf32, #tpu.memory_space<vmem>>, %arg4: memref<1x1x10x10x128xf32, #tpu.memory_space<vmem>>, %arg5: memref<27x128x128xf32, #tpu.memory_space<vmem>>, %arg6: memref<1x128xf32, #tpu.memory_space<vmem>>, %arg7: memref<1x1x64x128xf32, #tpu.memory_space<vmem>>, %arg8: memref<1x1x8x128xf32, #tpu.memory_space<vmem>>, %arg9: memref<1x1x8x128xf32, #tpu.memory_space<vmem>>) attributes {dimension_semantics = [#tpu.dimension_semantics<parallel>, #tpu.dimension_semantics<parallel>], iteration_bounds = array<i64: 2, 8>, scalar_prefetch = 0 : i64, scratch_operands = 0 : i64, tpu.core_type = #tpu.core_type<tc>, window_params = [{transform_indices = @transform_0, window_bounds = array<i64: 1, 1, 10, 10, 128>}, {transform_indices = @transform_1, window_bounds = array<i64: 1, 1, 10, 10, 128>}, {transform_indices = @transform_2, window_bounds = array<i64: 1, 1, 10, 10, 128>}, {pipeline_mode = #tpu.pipeline_mode<synchronous>, transform_indices = @transform_3, window_bounds = array<i64: 27, 128, 128>}, {pipeline_mode = #tpu.pipeline_mode<synchronous>, transform_indices = @transform_4, window_bounds = array<i64: 1, 128>}, {transform_indices = @transform_5, window_bounds = array<i64: 1, 1, 64, 128>}, {transform_indices = @transform_6, window_bounds = array<i64: 1, 1, 8, 128>}, {transform_indices = @transform_7, window_bounds = array<i64: 1, 1, 8, 128>}]} {
    %cst = arith.constant 0.000000e+00 : f32
    %0 = vector.broadcast %cst : f32 to vector<64x128xf32>
    %c0 = arith.constant 0 : index
    %c0_0 = arith.constant 0 : index
    %c0_1 = arith.constant 0 : index
    %c0_2 = arith.constant 0 : index
    %c0_3 = arith.constant 0 : index
    %1 = vector.load %arg2[%c0, %c0_0, %c0_1, %c0_2, %c0_3] : memref<1x1x10x10x128xf32, #tpu.memory_space<vmem>>, vector<1x1x8x8x128xf32>
    %2 = vector.shape_cast %1 : vector<1x1x8x8x128xf32> to vector<8x8x128xf32>
    %3 = vector.shape_cast %2 : vector<8x8x128xf32> to vector<64x128xf32>
    %c0_4 = arith.constant 0 : index
    %c0_5 = arith.constant 0 : index
    %c0_6 = arith.constant 0 : index
    %4 = vector.load %arg5[%c0_4, %c0_5, %c0_6] : memref<27x128x128xf32, #tpu.memory_space<vmem>>, vector<1x128x128xf32>
    %5 = vector.shape_cast %4 : vector<1x128x128xf32> to vector<128x128xf32>
    %cst_7 = arith.constant dense<0.000000e+00> : vector<64x128xf32>
    %6 = tpu.matmul %3, %5, %cst_7 {dimension_numbers = #tpu.dot_dimension_numbers<[1], [0], [0], [1], [0, 0, 1, 1], [], []>} : vector<64x128xf32>, vector<128x128xf32>, vector<64x128xf32> -> vector<64x128xf32>
    %7 = arith.addf %0, %6 : vector<64x128xf32>
    %c0_8 = arith.constant 0 : index
    %c0_9 = arith.constant 0 : index
    %c0_10 = arith.constant 0 : index
    %c1 = arith.constant 1 : index
    %c0_11 = arith.constant 0 : index
    %8 = vector.load %arg2[%c0_8, %c0_9, %c0_10, %c1, %c0_11] : memref<1x1x10x10x128xf32, #tpu.memory_space<vmem>>, vector<1x1x8x8x128xf32>
    %9 = vector.shape_cast %8 : vector<1x1x8x8x128xf32> to vector<8x8x128xf32>
    %10 = vector.shape_cast %9 : vector<8x8x128xf32> to vector<64x128xf32>
    %c1_12 = arith.constant 1 : index
    %c0_13 = arith.constant 0 : index
    %c0_14 = arith.constant 0 : index
    %11 = vector.load %arg5[%c1_12, %c0_13, %c0_14] : memref<27x128x128xf32, #tpu.memory_space<vmem>>, vector<1x128x128xf32>
    %12 = vector.shape_cast %11 : vector<1x128x128xf32> to vector<128x128xf32>
    %cst_15 = arith.constant dense<0.000000e+00> : vector<64x128xf32>
    %13 = tpu.matmul %10, %12, %cst_15 {dimension_numbers = #tpu.dot_dimension_numbers<[1], [0], [0], [1], [0, 0, 1, 1], [], []>} : vector<64x128xf32>, vector<128x128xf32>, vector<64x128xf32> -> vector<64x128xf32>
    %14 = arith.addf %7, %13 : vector<64x128xf32>
    %c0_16 = arith.constant 0 : index
    %c0_17 = arith.constant 0 : index
    %c0_18 = arith.constant 0 : index
    %c2 = arith.constant 2 : index
    %c0_19 = arith.constant 0 : index
    %15 = vector.load %arg2[%c0_16, %c0_17, %c0_18, %c2, %c0_19] : memref<1x1x10x10x128xf32, #tpu.memory_space<vmem>>, vector<1x1x8x8x128xf32>
    %16 = vector.shape_cast %15 : vector<1x1x8x8x128xf32> to vector<8x8x128xf32>
    %17 = vector.shape_cast %16 : vector<8x8x128xf32> to vector<64x128xf32>
    %c2_20 = arith.constant 2 : index
    %c0_21 = arith.constant 0 : index
    %c0_22 = arith.constant 0 : index
    %18 = vector.load %arg5[%c2_20, %c0_21, %c0_22] : memref<27x128x128xf32, #tpu.memory_space<vmem>>, vector<1x128x128xf32>
    %19 = vector.shape_cast %18 : vector<1x128x128xf32> to vector<128x128xf32>
    %cst_23 = arith.constant dense<0.000000e+00> : vector<64x128xf32>
    %20 = tpu.matmul %17, %19, %cst_23 {dimension_numbers = #tpu.dot_dimension_numbers<[1], [0], [0], [1], [0, 0, 1, 1], [], []>} : vector<64x128xf32>, vector<128x128xf32>, vector<64x128xf32> -> vector<64x128xf32>
    %21 = arith.addf %14, %20 : vector<64x128xf32>
    %c0_24 = arith.constant 0 : index
    %c0_25 = arith.constant 0 : index
    %c1_26 = arith.constant 1 : index
    %c0_27 = arith.constant 0 : index
    %c0_28 = arith.constant 0 : index
    %22 = vector.load %arg2[%c0_24, %c0_25, %c1_26, %c0_27, %c0_28] : memref<1x1x10x10x128xf32, #tpu.memory_space<vmem>>, vector<1x1x8x8x128xf32>
    %23 = vector.shape_cast %22 : vector<1x1x8x8x128xf32> to vector<8x8x128xf32>
    %24 = vector.shape_cast %23 : vector<8x8x128xf32> to vector<64x128xf32>
    %c3 = arith.constant 3 : index
    %c0_29 = arith.constant 0 : index
    %c0_30 = arith.constant 0 : index
    %25 = vector.load %arg5[%c3, %c0_29, %c0_30] : memref<27x128x128xf32, #tpu.memory_space<vmem>>, vector<1x128x128xf32>
    %26 = vector.shape_cast %25 : vector<1x128x128xf32> to vector<128x128xf32>
    %cst_31 = arith.constant dense<0.000000e+00> : vector<64x128xf32>
    %27 = tpu.matmul %24, %26, %cst_31 {dimension_numbers = #tpu.dot_dimension_numbers<[1], [0], [0], [1], [0, 0, 1, 1], [], []>} : vector<64x128xf32>, vector<128x128xf32>, vector<64x128xf32> -> vector<64x128xf32>
    %28 = arith.addf %21, %27 : vector<64x128xf32>
    %c0_32 = arith.constant 0 : index
    %c0_33 = arith.constant 0 : index
    %c1_34 = arith.constant 1 : index
    %c1_35 = arith.constant 1 : index
    %c0_36 = arith.constant 0 : index
    %29 = vector.load %arg2[%c0_32, %c0_33, %c1_34, %c1_35, %c0_36] : memref<1x1x10x10x128xf32, #tpu.memory_space<vmem>>, vector<1x1x8x8x128xf32>
    %30 = vector.shape_cast %29 : vector<1x1x8x8x128xf32> to vector<8x8x128xf32>
    %31 = vector.shape_cast %30 : vector<8x8x128xf32> to vector<64x128xf32>
    %c4 = arith.constant 4 : index
    %c0_37 = arith.constant 0 : index
    %c0_38 = arith.constant 0 : index
    %32 = vector.load %arg5[%c4, %c0_37, %c0_38] : memref<27x128x128xf32, #tpu.memory_space<vmem>>, vector<1x128x128xf32>
    %33 = vector.shape_cast %32 : vector<1x128x128xf32> to vector<128x128xf32>
    %cst_39 = arith.constant dense<0.000000e+00> : vector<64x128xf32>
    %34 = tpu.matmul %31, %33, %cst_39 {dimension_numbers = #tpu.dot_dimension_numbers<[1], [0], [0], [1], [0, 0, 1, 1], [], []>} : vector<64x128xf32>, vector<128x128xf32>, vector<64x128xf32> -> vector<64x128xf32>
    %35 = arith.addf %28, %34 : vector<64x128xf32>
    %c0_40 = arith.constant 0 : index
    %c0_41 = arith.constant 0 : index
    %c1_42 = arith.constant 1 : index
    %c2_43 = arith.constant 2 : index
    %c0_44 = arith.constant 0 : index
    %36 = vector.load %arg2[%c0_40, %c0_41, %c1_42, %c2_43, %c0_44] : memref<1x1x10x10x128xf32, #tpu.memory_space<vmem>>, vector<1x1x8x8x128xf32>
    %37 = vector.shape_cast %36 : vector<1x1x8x8x128xf32> to vector<8x8x128xf32>
    %38 = vector.shape_cast %37 : vector<8x8x128xf32> to vector<64x128xf32>
    %c5 = arith.constant 5 : index
    %c0_45 = arith.constant 0 : index
    %c0_46 = arith.constant 0 : index
    %39 = vector.load %arg5[%c5, %c0_45, %c0_46] : memref<27x128x128xf32, #tpu.memory_space<vmem>>, vector<1x128x128xf32>
    %40 = vector.shape_cast %39 : vector<1x128x128xf32> to vector<128x128xf32>
    %cst_47 = arith.constant dense<0.000000e+00> : vector<64x128xf32>
    %41 = tpu.matmul %38, %40, %cst_47 {dimension_numbers = #tpu.dot_dimension_numbers<[1], [0], [0], [1], [0, 0, 1, 1], [], []>} : vector<64x128xf32>, vector<128x128xf32>, vector<64x128xf32> -> vector<64x128xf32>
    %42 = arith.addf %35, %41 : vector<64x128xf32>
    %c0_48 = arith.constant 0 : index
    %c0_49 = arith.constant 0 : index
    %c2_50 = arith.constant 2 : index
    %c0_51 = arith.constant 0 : index
    %c0_52 = arith.constant 0 : index
    %43 = vector.load %arg2[%c0_48, %c0_49, %c2_50, %c0_51, %c0_52] : memref<1x1x10x10x128xf32, #tpu.memory_space<vmem>>, vector<1x1x8x8x128xf32>
    %44 = vector.shape_cast %43 : vector<1x1x8x8x128xf32> to vector<8x8x128xf32>
    %45 = vector.shape_cast %44 : vector<8x8x128xf32> to vector<64x128xf32>
    %c6 = arith.constant 6 : index
    %c0_53 = arith.constant 0 : index
    %c0_54 = arith.constant 0 : index
    %46 = vector.load %arg5[%c6, %c0_53, %c0_54] : memref<27x128x128xf32, #tpu.memory_space<vmem>>, vector<1x128x128xf32>
    %47 = vector.shape_cast %46 : vector<1x128x128xf32> to vector<128x128xf32>
    %cst_55 = arith.constant dense<0.000000e+00> : vector<64x128xf32>
    %48 = tpu.matmul %45, %47, %cst_55 {dimension_numbers = #tpu.dot_dimension_numbers<[1], [0], [0], [1], [0, 0, 1, 1], [], []>} : vector<64x128xf32>, vector<128x128xf32>, vector<64x128xf32> -> vector<64x128xf32>
    %49 = arith.addf %42, %48 : vector<64x128xf32>
    %c0_56 = arith.constant 0 : index
    %c0_57 = arith.constant 0 : index
    %c2_58 = arith.constant 2 : index
    %c1_59 = arith.constant 1 : index
    %c0_60 = arith.constant 0 : index
    %50 = vector.load %arg2[%c0_56, %c0_57, %c2_58, %c1_59, %c0_60] : memref<1x1x10x10x128xf32, #tpu.memory_space<vmem>>, vector<1x1x8x8x128xf32>
    %51 = vector.shape_cast %50 : vector<1x1x8x8x128xf32> to vector<8x8x128xf32>
    %52 = vector.shape_cast %51 : vector<8x8x128xf32> to vector<64x128xf32>
    %c7 = arith.constant 7 : index
    %c0_61 = arith.constant 0 : index
    %c0_62 = arith.constant 0 : index
    %53 = vector.load %arg5[%c7, %c0_61, %c0_62] : memref<27x128x128xf32, #tpu.memory_space<vmem>>, vector<1x128x128xf32>
    %54 = vector.shape_cast %53 : vector<1x128x128xf32> to vector<128x128xf32>
    %cst_63 = arith.constant dense<0.000000e+00> : vector<64x128xf32>
    %55 = tpu.matmul %52, %54, %cst_63 {dimension_numbers = #tpu.dot_dimension_numbers<[1], [0], [0], [1], [0, 0, 1, 1], [], []>} : vector<64x128xf32>, vector<128x128xf32>, vector<64x128xf32> -> vector<64x128xf32>
    %56 = arith.addf %49, %55 : vector<64x128xf32>
    %c0_64 = arith.constant 0 : index
    %c0_65 = arith.constant 0 : index
    %c2_66 = arith.constant 2 : index
    %c2_67 = arith.constant 2 : index
    %c0_68 = arith.constant 0 : index
    %57 = vector.load %arg2[%c0_64, %c0_65, %c2_66, %c2_67, %c0_68] : memref<1x1x10x10x128xf32, #tpu.memory_space<vmem>>, vector<1x1x8x8x128xf32>
    %58 = vector.shape_cast %57 : vector<1x1x8x8x128xf32> to vector<8x8x128xf32>
    %59 = vector.shape_cast %58 : vector<8x8x128xf32> to vector<64x128xf32>
    %c8 = arith.constant 8 : index
    %c0_69 = arith.constant 0 : index
    %c0_70 = arith.constant 0 : index
    %60 = vector.load %arg5[%c8, %c0_69, %c0_70] : memref<27x128x128xf32, #tpu.memory_space<vmem>>, vector<1x128x128xf32>
    %61 = vector.shape_cast %60 : vector<1x128x128xf32> to vector<128x128xf32>
    %cst_71 = arith.constant dense<0.000000e+00> : vector<64x128xf32>
    %62 = tpu.matmul %59, %61, %cst_71 {dimension_numbers = #tpu.dot_dimension_numbers<[1], [0], [0], [1], [0, 0, 1, 1], [], []>} : vector<64x128xf32>, vector<128x128xf32>, vector<64x128xf32> -> vector<64x128xf32>
    %63 = arith.addf %56, %62 : vector<64x128xf32>
    %c0_72 = arith.constant 0 : index
    %c0_73 = arith.constant 0 : index
    %c0_74 = arith.constant 0 : index
    %c0_75 = arith.constant 0 : index
    %c0_76 = arith.constant 0 : index
    %64 = vector.load %arg3[%c0_72, %c0_73, %c0_74, %c0_75, %c0_76] : memref<1x1x10x10x128xf32, #tpu.memory_space<vmem>>, vector<1x1x8x8x128xf32>
    %65 = vector.shape_cast %64 : vector<1x1x8x8x128xf32> to vector<8x8x128xf32>
    %66 = vector.shape_cast %65 : vector<8x8x128xf32> to vector<64x128xf32>
    %c9 = arith.constant 9 : index
    %c0_77 = arith.constant 0 : index
    %c0_78 = arith.constant 0 : index
    %67 = vector.load %arg5[%c9, %c0_77, %c0_78] : memref<27x128x128xf32, #tpu.memory_space<vmem>>, vector<1x128x128xf32>
    %68 = vector.shape_cast %67 : vector<1x128x128xf32> to vector<128x128xf32>
    %cst_79 = arith.constant dense<0.000000e+00> : vector<64x128xf32>
    %69 = tpu.matmul %66, %68, %cst_79 {dimension_numbers = #tpu.dot_dimension_numbers<[1], [0], [0], [1], [0, 0, 1, 1], [], []>} : vector<64x128xf32>, vector<128x128xf32>, vector<64x128xf32> -> vector<64x128xf32>
    %70 = arith.addf %63, %69 : vector<64x128xf32>
    %c0_80 = arith.constant 0 : index
    %c0_81 = arith.constant 0 : index
    %c0_82 = arith.constant 0 : index
    %c1_83 = arith.constant 1 : index
    %c0_84 = arith.constant 0 : index
    %71 = vector.load %arg3[%c0_80, %c0_81, %c0_82, %c1_83, %c0_84] : memref<1x1x10x10x128xf32, #tpu.memory_space<vmem>>, vector<1x1x8x8x128xf32>
    %72 = vector.shape_cast %71 : vector<1x1x8x8x128xf32> to vector<8x8x128xf32>
    %73 = vector.shape_cast %72 : vector<8x8x128xf32> to vector<64x128xf32>
    %c10 = arith.constant 10 : index
    %c0_85 = arith.constant 0 : index
    %c0_86 = arith.constant 0 : index
    %74 = vector.load %arg5[%c10, %c0_85, %c0_86] : memref<27x128x128xf32, #tpu.memory_space<vmem>>, vector<1x128x128xf32>
    %75 = vector.shape_cast %74 : vector<1x128x128xf32> to vector<128x128xf32>
    %cst_87 = arith.constant dense<0.000000e+00> : vector<64x128xf32>
    %76 = tpu.matmul %73, %75, %cst_87 {dimension_numbers = #tpu.dot_dimension_numbers<[1], [0], [0], [1], [0, 0, 1, 1], [], []>} : vector<64x128xf32>, vector<128x128xf32>, vector<64x128xf32> -> vector<64x128xf32>
    %77 = arith.addf %70, %76 : vector<64x128xf32>
    %c0_88 = arith.constant 0 : index
    %c0_89 = arith.constant 0 : index
    %c0_90 = arith.constant 0 : index
    %c2_91 = arith.constant 2 : index
    %c0_92 = arith.constant 0 : index
    %78 = vector.load %arg3[%c0_88, %c0_89, %c0_90, %c2_91, %c0_92] : memref<1x1x10x10x128xf32, #tpu.memory_space<vmem>>, vector<1x1x8x8x128xf32>
    %79 = vector.shape_cast %78 : vector<1x1x8x8x128xf32> to vector<8x8x128xf32>
    %80 = vector.shape_cast %79 : vector<8x8x128xf32> to vector<64x128xf32>
    %c11 = arith.constant 11 : index
    %c0_93 = arith.constant 0 : index
    %c0_94 = arith.constant 0 : index
    %81 = vector.load %arg5[%c11, %c0_93, %c0_94] : memref<27x128x128xf32, #tpu.memory_space<vmem>>, vector<1x128x128xf32>
    %82 = vector.shape_cast %81 : vector<1x128x128xf32> to vector<128x128xf32>
    %cst_95 = arith.constant dense<0.000000e+00> : vector<64x128xf32>
    %83 = tpu.matmul %80, %82, %cst_95 {dimension_numbers = #tpu.dot_dimension_numbers<[1], [0], [0], [1], [0, 0, 1, 1], [], []>} : vector<64x128xf32>, vector<128x128xf32>, vector<64x128xf32> -> vector<64x128xf32>
    %84 = arith.addf %77, %83 : vector<64x128xf32>
    %c0_96 = arith.constant 0 : index
    %c0_97 = arith.constant 0 : index
    %c1_98 = arith.constant 1 : index
    %c0_99 = arith.constant 0 : index
    %c0_100 = arith.constant 0 : index
    %85 = vector.load %arg3[%c0_96, %c0_97, %c1_98, %c0_99, %c0_100] : memref<1x1x10x10x128xf32, #tpu.memory_space<vmem>>, vector<1x1x8x8x128xf32>
    %86 = vector.shape_cast %85 : vector<1x1x8x8x128xf32> to vector<8x8x128xf32>
    %87 = vector.shape_cast %86 : vector<8x8x128xf32> to vector<64x128xf32>
    %c12 = arith.constant 12 : index
    %c0_101 = arith.constant 0 : index
    %c0_102 = arith.constant 0 : index
    %88 = vector.load %arg5[%c12, %c0_101, %c0_102] : memref<27x128x128xf32, #tpu.memory_space<vmem>>, vector<1x128x128xf32>
    %89 = vector.shape_cast %88 : vector<1x128x128xf32> to vector<128x128xf32>
    %cst_103 = arith.constant dense<0.000000e+00> : vector<64x128xf32>
    %90 = tpu.matmul %87, %89, %cst_103 {dimension_numbers = #tpu.dot_dimension_numbers<[1], [0], [0], [1], [0, 0, 1, 1], [], []>} : vector<64x128xf32>, vector<128x128xf32>, vector<64x128xf32> -> vector<64x128xf32>
    %91 = arith.addf %84, %90 : vector<64x128xf32>
    %c0_104 = arith.constant 0 : index
    %c0_105 = arith.constant 0 : index
    %c1_106 = arith.constant 1 : index
    %c1_107 = arith.constant 1 : index
    %c0_108 = arith.constant 0 : index
    %92 = vector.load %arg3[%c0_104, %c0_105, %c1_106, %c1_107, %c0_108] : memref<1x1x10x10x128xf32, #tpu.memory_space<vmem>>, vector<1x1x8x8x128xf32>
    %93 = vector.shape_cast %92 : vector<1x1x8x8x128xf32> to vector<8x8x128xf32>
    %94 = vector.shape_cast %93 : vector<8x8x128xf32> to vector<64x128xf32>
    %c13 = arith.constant 13 : index
    %c0_109 = arith.constant 0 : index
    %c0_110 = arith.constant 0 : index
    %95 = vector.load %arg5[%c13, %c0_109, %c0_110] : memref<27x128x128xf32, #tpu.memory_space<vmem>>, vector<1x128x128xf32>
    %96 = vector.shape_cast %95 : vector<1x128x128xf32> to vector<128x128xf32>
    %cst_111 = arith.constant dense<0.000000e+00> : vector<64x128xf32>
    %97 = tpu.matmul %94, %96, %cst_111 {dimension_numbers = #tpu.dot_dimension_numbers<[1], [0], [0], [1], [0, 0, 1, 1], [], []>} : vector<64x128xf32>, vector<128x128xf32>, vector<64x128xf32> -> vector<64x128xf32>
    %98 = arith.addf %91, %97 : vector<64x128xf32>
    %c0_112 = arith.constant 0 : index
    %c0_113 = arith.constant 0 : index
    %c1_114 = arith.constant 1 : index
    %c2_115 = arith.constant 2 : index
    %c0_116 = arith.constant 0 : index
    %99 = vector.load %arg3[%c0_112, %c0_113, %c1_114, %c2_115, %c0_116] : memref<1x1x10x10x128xf32, #tpu.memory_space<vmem>>, vector<1x1x8x8x128xf32>
    %100 = vector.shape_cast %99 : vector<1x1x8x8x128xf32> to vector<8x8x128xf32>
    %101 = vector.shape_cast %100 : vector<8x8x128xf32> to vector<64x128xf32>
    %c14 = arith.constant 14 : index
    %c0_117 = arith.constant 0 : index
    %c0_118 = arith.constant 0 : index
    %102 = vector.load %arg5[%c14, %c0_117, %c0_118] : memref<27x128x128xf32, #tpu.memory_space<vmem>>, vector<1x128x128xf32>
    %103 = vector.shape_cast %102 : vector<1x128x128xf32> to vector<128x128xf32>
    %cst_119 = arith.constant dense<0.000000e+00> : vector<64x128xf32>
    %104 = tpu.matmul %101, %103, %cst_119 {dimension_numbers = #tpu.dot_dimension_numbers<[1], [0], [0], [1], [0, 0, 1, 1], [], []>} : vector<64x128xf32>, vector<128x128xf32>, vector<64x128xf32> -> vector<64x128xf32>
    %105 = arith.addf %98, %104 : vector<64x128xf32>
    %c0_120 = arith.constant 0 : index
    %c0_121 = arith.constant 0 : index
    %c2_122 = arith.constant 2 : index
    %c0_123 = arith.constant 0 : index
    %c0_124 = arith.constant 0 : index
    %106 = vector.load %arg3[%c0_120, %c0_121, %c2_122, %c0_123, %c0_124] : memref<1x1x10x10x128xf32, #tpu.memory_space<vmem>>, vector<1x1x8x8x128xf32>
    %107 = vector.shape_cast %106 : vector<1x1x8x8x128xf32> to vector<8x8x128xf32>
    %108 = vector.shape_cast %107 : vector<8x8x128xf32> to vector<64x128xf32>
    %c15 = arith.constant 15 : index
    %c0_125 = arith.constant 0 : index
    %c0_126 = arith.constant 0 : index
    %109 = vector.load %arg5[%c15, %c0_125, %c0_126] : memref<27x128x128xf32, #tpu.memory_space<vmem>>, vector<1x128x128xf32>
    %110 = vector.shape_cast %109 : vector<1x128x128xf32> to vector<128x128xf32>
    %cst_127 = arith.constant dense<0.000000e+00> : vector<64x128xf32>
    %111 = tpu.matmul %108, %110, %cst_127 {dimension_numbers = #tpu.dot_dimension_numbers<[1], [0], [0], [1], [0, 0, 1, 1], [], []>} : vector<64x128xf32>, vector<128x128xf32>, vector<64x128xf32> -> vector<64x128xf32>
    %112 = arith.addf %105, %111 : vector<64x128xf32>
    %c0_128 = arith.constant 0 : index
    %c0_129 = arith.constant 0 : index
    %c2_130 = arith.constant 2 : index
    %c1_131 = arith.constant 1 : index
    %c0_132 = arith.constant 0 : index
    %113 = vector.load %arg3[%c0_128, %c0_129, %c2_130, %c1_131, %c0_132] : memref<1x1x10x10x128xf32, #tpu.memory_space<vmem>>, vector<1x1x8x8x128xf32>
    %114 = vector.shape_cast %113 : vector<1x1x8x8x128xf32> to vector<8x8x128xf32>
    %115 = vector.shape_cast %114 : vector<8x8x128xf32> to vector<64x128xf32>
    %c16 = arith.constant 16 : index
    %c0_133 = arith.constant 0 : index
    %c0_134 = arith.constant 0 : index
    %116 = vector.load %arg5[%c16, %c0_133, %c0_134] : memref<27x128x128xf32, #tpu.memory_space<vmem>>, vector<1x128x128xf32>
    %117 = vector.shape_cast %116 : vector<1x128x128xf32> to vector<128x128xf32>
    %cst_135 = arith.constant dense<0.000000e+00> : vector<64x128xf32>
    %118 = tpu.matmul %115, %117, %cst_135 {dimension_numbers = #tpu.dot_dimension_numbers<[1], [0], [0], [1], [0, 0, 1, 1], [], []>} : vector<64x128xf32>, vector<128x128xf32>, vector<64x128xf32> -> vector<64x128xf32>
    %119 = arith.addf %112, %118 : vector<64x128xf32>
    %c0_136 = arith.constant 0 : index
    %c0_137 = arith.constant 0 : index
    %c2_138 = arith.constant 2 : index
    %c2_139 = arith.constant 2 : index
    %c0_140 = arith.constant 0 : index
    %120 = vector.load %arg3[%c0_136, %c0_137, %c2_138, %c2_139, %c0_140] : memref<1x1x10x10x128xf32, #tpu.memory_space<vmem>>, vector<1x1x8x8x128xf32>
    %121 = vector.shape_cast %120 : vector<1x1x8x8x128xf32> to vector<8x8x128xf32>
    %122 = vector.shape_cast %121 : vector<8x8x128xf32> to vector<64x128xf32>
    %c17 = arith.constant 17 : index
    %c0_141 = arith.constant 0 : index
    %c0_142 = arith.constant 0 : index
    %123 = vector.load %arg5[%c17, %c0_141, %c0_142] : memref<27x128x128xf32, #tpu.memory_space<vmem>>, vector<1x128x128xf32>
    %124 = vector.shape_cast %123 : vector<1x128x128xf32> to vector<128x128xf32>
    %cst_143 = arith.constant dense<0.000000e+00> : vector<64x128xf32>
    %125 = tpu.matmul %122, %124, %cst_143 {dimension_numbers = #tpu.dot_dimension_numbers<[1], [0], [0], [1], [0, 0, 1, 1], [], []>} : vector<64x128xf32>, vector<128x128xf32>, vector<64x128xf32> -> vector<64x128xf32>
    %126 = arith.addf %119, %125 : vector<64x128xf32>
    %c0_144 = arith.constant 0 : index
    %c0_145 = arith.constant 0 : index
    %c0_146 = arith.constant 0 : index
    %c0_147 = arith.constant 0 : index
    %c0_148 = arith.constant 0 : index
    %127 = vector.load %arg4[%c0_144, %c0_145, %c0_146, %c0_147, %c0_148] : memref<1x1x10x10x128xf32, #tpu.memory_space<vmem>>, vector<1x1x8x8x128xf32>
    %128 = vector.shape_cast %127 : vector<1x1x8x8x128xf32> to vector<8x8x128xf32>
    %129 = vector.shape_cast %128 : vector<8x8x128xf32> to vector<64x128xf32>
    %c18 = arith.constant 18 : index
    %c0_149 = arith.constant 0 : index
    %c0_150 = arith.constant 0 : index
    %130 = vector.load %arg5[%c18, %c0_149, %c0_150] : memref<27x128x128xf32, #tpu.memory_space<vmem>>, vector<1x128x128xf32>
    %131 = vector.shape_cast %130 : vector<1x128x128xf32> to vector<128x128xf32>
    %cst_151 = arith.constant dense<0.000000e+00> : vector<64x128xf32>
    %132 = tpu.matmul %129, %131, %cst_151 {dimension_numbers = #tpu.dot_dimension_numbers<[1], [0], [0], [1], [0, 0, 1, 1], [], []>} : vector<64x128xf32>, vector<128x128xf32>, vector<64x128xf32> -> vector<64x128xf32>
    %133 = arith.addf %126, %132 : vector<64x128xf32>
    %c0_152 = arith.constant 0 : index
    %c0_153 = arith.constant 0 : index
    %c0_154 = arith.constant 0 : index
    %c1_155 = arith.constant 1 : index
    %c0_156 = arith.constant 0 : index
    %134 = vector.load %arg4[%c0_152, %c0_153, %c0_154, %c1_155, %c0_156] : memref<1x1x10x10x128xf32, #tpu.memory_space<vmem>>, vector<1x1x8x8x128xf32>
    %135 = vector.shape_cast %134 : vector<1x1x8x8x128xf32> to vector<8x8x128xf32>
    %136 = vector.shape_cast %135 : vector<8x8x128xf32> to vector<64x128xf32>
    %c19 = arith.constant 19 : index
    %c0_157 = arith.constant 0 : index
    %c0_158 = arith.constant 0 : index
    %137 = vector.load %arg5[%c19, %c0_157, %c0_158] : memref<27x128x128xf32, #tpu.memory_space<vmem>>, vector<1x128x128xf32>
    %138 = vector.shape_cast %137 : vector<1x128x128xf32> to vector<128x128xf32>
    %cst_159 = arith.constant dense<0.000000e+00> : vector<64x128xf32>
    %139 = tpu.matmul %136, %138, %cst_159 {dimension_numbers = #tpu.dot_dimension_numbers<[1], [0], [0], [1], [0, 0, 1, 1], [], []>} : vector<64x128xf32>, vector<128x128xf32>, vector<64x128xf32> -> vector<64x128xf32>
    %140 = arith.addf %133, %139 : vector<64x128xf32>
    %c0_160 = arith.constant 0 : index
    %c0_161 = arith.constant 0 : index
    %c0_162 = arith.constant 0 : index
    %c2_163 = arith.constant 2 : index
    %c0_164 = arith.constant 0 : index
    %141 = vector.load %arg4[%c0_160, %c0_161, %c0_162, %c2_163, %c0_164] : memref<1x1x10x10x128xf32, #tpu.memory_space<vmem>>, vector<1x1x8x8x128xf32>
    %142 = vector.shape_cast %141 : vector<1x1x8x8x128xf32> to vector<8x8x128xf32>
    %143 = vector.shape_cast %142 : vector<8x8x128xf32> to vector<64x128xf32>
    %c20 = arith.constant 20 : index
    %c0_165 = arith.constant 0 : index
    %c0_166 = arith.constant 0 : index
    %144 = vector.load %arg5[%c20, %c0_165, %c0_166] : memref<27x128x128xf32, #tpu.memory_space<vmem>>, vector<1x128x128xf32>
    %145 = vector.shape_cast %144 : vector<1x128x128xf32> to vector<128x128xf32>
    %cst_167 = arith.constant dense<0.000000e+00> : vector<64x128xf32>
    %146 = tpu.matmul %143, %145, %cst_167 {dimension_numbers = #tpu.dot_dimension_numbers<[1], [0], [0], [1], [0, 0, 1, 1], [], []>} : vector<64x128xf32>, vector<128x128xf32>, vector<64x128xf32> -> vector<64x128xf32>
    %147 = arith.addf %140, %146 : vector<64x128xf32>
    %c0_168 = arith.constant 0 : index
    %c0_169 = arith.constant 0 : index
    %c1_170 = arith.constant 1 : index
    %c0_171 = arith.constant 0 : index
    %c0_172 = arith.constant 0 : index
    %148 = vector.load %arg4[%c0_168, %c0_169, %c1_170, %c0_171, %c0_172] : memref<1x1x10x10x128xf32, #tpu.memory_space<vmem>>, vector<1x1x8x8x128xf32>
    %149 = vector.shape_cast %148 : vector<1x1x8x8x128xf32> to vector<8x8x128xf32>
    %150 = vector.shape_cast %149 : vector<8x8x128xf32> to vector<64x128xf32>
    %c21 = arith.constant 21 : index
    %c0_173 = arith.constant 0 : index
    %c0_174 = arith.constant 0 : index
    %151 = vector.load %arg5[%c21, %c0_173, %c0_174] : memref<27x128x128xf32, #tpu.memory_space<vmem>>, vector<1x128x128xf32>
    %152 = vector.shape_cast %151 : vector<1x128x128xf32> to vector<128x128xf32>
    %cst_175 = arith.constant dense<0.000000e+00> : vector<64x128xf32>
    %153 = tpu.matmul %150, %152, %cst_175 {dimension_numbers = #tpu.dot_dimension_numbers<[1], [0], [0], [1], [0, 0, 1, 1], [], []>} : vector<64x128xf32>, vector<128x128xf32>, vector<64x128xf32> -> vector<64x128xf32>
    %154 = arith.addf %147, %153 : vector<64x128xf32>
    %c0_176 = arith.constant 0 : index
    %c0_177 = arith.constant 0 : index
    %c1_178 = arith.constant 1 : index
    %c1_179 = arith.constant 1 : index
    %c0_180 = arith.constant 0 : index
    %155 = vector.load %arg4[%c0_176, %c0_177, %c1_178, %c1_179, %c0_180] : memref<1x1x10x10x128xf32, #tpu.memory_space<vmem>>, vector<1x1x8x8x128xf32>
    %156 = vector.shape_cast %155 : vector<1x1x8x8x128xf32> to vector<8x8x128xf32>
    %157 = vector.shape_cast %156 : vector<8x8x128xf32> to vector<64x128xf32>
    %c22 = arith.constant 22 : index
    %c0_181 = arith.constant 0 : index
    %c0_182 = arith.constant 0 : index
    %158 = vector.load %arg5[%c22, %c0_181, %c0_182] : memref<27x128x128xf32, #tpu.memory_space<vmem>>, vector<1x128x128xf32>
    %159 = vector.shape_cast %158 : vector<1x128x128xf32> to vector<128x128xf32>
    %cst_183 = arith.constant dense<0.000000e+00> : vector<64x128xf32>
    %160 = tpu.matmul %157, %159, %cst_183 {dimension_numbers = #tpu.dot_dimension_numbers<[1], [0], [0], [1], [0, 0, 1, 1], [], []>} : vector<64x128xf32>, vector<128x128xf32>, vector<64x128xf32> -> vector<64x128xf32>
    %161 = arith.addf %154, %160 : vector<64x128xf32>
    %c0_184 = arith.constant 0 : index
    %c0_185 = arith.constant 0 : index
    %c1_186 = arith.constant 1 : index
    %c2_187 = arith.constant 2 : index
    %c0_188 = arith.constant 0 : index
    %162 = vector.load %arg4[%c0_184, %c0_185, %c1_186, %c2_187, %c0_188] : memref<1x1x10x10x128xf32, #tpu.memory_space<vmem>>, vector<1x1x8x8x128xf32>
    %163 = vector.shape_cast %162 : vector<1x1x8x8x128xf32> to vector<8x8x128xf32>
    %164 = vector.shape_cast %163 : vector<8x8x128xf32> to vector<64x128xf32>
    %c23 = arith.constant 23 : index
    %c0_189 = arith.constant 0 : index
    %c0_190 = arith.constant 0 : index
    %165 = vector.load %arg5[%c23, %c0_189, %c0_190] : memref<27x128x128xf32, #tpu.memory_space<vmem>>, vector<1x128x128xf32>
    %166 = vector.shape_cast %165 : vector<1x128x128xf32> to vector<128x128xf32>
    %cst_191 = arith.constant dense<0.000000e+00> : vector<64x128xf32>
    %167 = tpu.matmul %164, %166, %cst_191 {dimension_numbers = #tpu.dot_dimension_numbers<[1], [0], [0], [1], [0, 0, 1, 1], [], []>} : vector<64x128xf32>, vector<128x128xf32>, vector<64x128xf32> -> vector<64x128xf32>
    %168 = arith.addf %161, %167 : vector<64x128xf32>
    %c0_192 = arith.constant 0 : index
    %c0_193 = arith.constant 0 : index
    %c2_194 = arith.constant 2 : index
    %c0_195 = arith.constant 0 : index
    %c0_196 = arith.constant 0 : index
    %169 = vector.load %arg4[%c0_192, %c0_193, %c2_194, %c0_195, %c0_196] : memref<1x1x10x10x128xf32, #tpu.memory_space<vmem>>, vector<1x1x8x8x128xf32>
    %170 = vector.shape_cast %169 : vector<1x1x8x8x128xf32> to vector<8x8x128xf32>
    %171 = vector.shape_cast %170 : vector<8x8x128xf32> to vector<64x128xf32>
    %c24 = arith.constant 24 : index
    %c0_197 = arith.constant 0 : index
    %c0_198 = arith.constant 0 : index
    %172 = vector.load %arg5[%c24, %c0_197, %c0_198] : memref<27x128x128xf32, #tpu.memory_space<vmem>>, vector<1x128x128xf32>
    %173 = vector.shape_cast %172 : vector<1x128x128xf32> to vector<128x128xf32>
    %cst_199 = arith.constant dense<0.000000e+00> : vector<64x128xf32>
    %174 = tpu.matmul %171, %173, %cst_199 {dimension_numbers = #tpu.dot_dimension_numbers<[1], [0], [0], [1], [0, 0, 1, 1], [], []>} : vector<64x128xf32>, vector<128x128xf32>, vector<64x128xf32> -> vector<64x128xf32>
    %175 = arith.addf %168, %174 : vector<64x128xf32>
    %c0_200 = arith.constant 0 : index
    %c0_201 = arith.constant 0 : index
    %c2_202 = arith.constant 2 : index
    %c1_203 = arith.constant 1 : index
    %c0_204 = arith.constant 0 : index
    %176 = vector.load %arg4[%c0_200, %c0_201, %c2_202, %c1_203, %c0_204] : memref<1x1x10x10x128xf32, #tpu.memory_space<vmem>>, vector<1x1x8x8x128xf32>
    %177 = vector.shape_cast %176 : vector<1x1x8x8x128xf32> to vector<8x8x128xf32>
    %178 = vector.shape_cast %177 : vector<8x8x128xf32> to vector<64x128xf32>
    %c25 = arith.constant 25 : index
    %c0_205 = arith.constant 0 : index
    %c0_206 = arith.constant 0 : index
    %179 = vector.load %arg5[%c25, %c0_205, %c0_206] : memref<27x128x128xf32, #tpu.memory_space<vmem>>, vector<1x128x128xf32>
    %180 = vector.shape_cast %179 : vector<1x128x128xf32> to vector<128x128xf32>
    %cst_207 = arith.constant dense<0.000000e+00> : vector<64x128xf32>
    %181 = tpu.matmul %178, %180, %cst_207 {dimension_numbers = #tpu.dot_dimension_numbers<[1], [0], [0], [1], [0, 0, 1, 1], [], []>} : vector<64x128xf32>, vector<128x128xf32>, vector<64x128xf32> -> vector<64x128xf32>
    %182 = arith.addf %175, %181 : vector<64x128xf32>
    %c0_208 = arith.constant 0 : index
    %c0_209 = arith.constant 0 : index
    %c2_210 = arith.constant 2 : index
    %c2_211 = arith.constant 2 : index
    %c0_212 = arith.constant 0 : index
    %183 = vector.load %arg4[%c0_208, %c0_209, %c2_210, %c2_211, %c0_212] : memref<1x1x10x10x128xf32, #tpu.memory_space<vmem>>, vector<1x1x8x8x128xf32>
    %184 = vector.shape_cast %183 : vector<1x1x8x8x128xf32> to vector<8x8x128xf32>
    %185 = vector.shape_cast %184 : vector<8x8x128xf32> to vector<64x128xf32>
    %c26 = arith.constant 26 : index
    %c0_213 = arith.constant 0 : index
    %c0_214 = arith.constant 0 : index
    %186 = vector.load %arg5[%c26, %c0_213, %c0_214] : memref<27x128x128xf32, #tpu.memory_space<vmem>>, vector<1x128x128xf32>
    %187 = vector.shape_cast %186 : vector<1x128x128xf32> to vector<128x128xf32>
    %cst_215 = arith.constant dense<0.000000e+00> : vector<64x128xf32>
    %188 = tpu.matmul %185, %187, %cst_215 {dimension_numbers = #tpu.dot_dimension_numbers<[1], [0], [0], [1], [0, 0, 1, 1], [], []>} : vector<64x128xf32>, vector<128x128xf32>, vector<64x128xf32> -> vector<64x128xf32>
    %189 = arith.addf %182, %188 : vector<64x128xf32>
    %c0_216 = arith.constant 0 : index
    %c0_217 = arith.constant 0 : index
    %190 = vector.load %arg6[%c0_216, %c0_217] : memref<1x128xf32, #tpu.memory_space<vmem>>, vector<1x128xf32>
    %191 = vector.broadcast %190 : vector<1x128xf32> to vector<64x128xf32>
    %192 = arith.addf %189, %191 : vector<64x128xf32>
    %c0_218 = arith.constant 0 : index
    %c0_219 = arith.constant 0 : index
    %c0_220 = arith.constant 0 : index
    %c0_221 = arith.constant 0 : index
    %193 = vector.load %arg7[%c0_218, %c0_219, %c0_220, %c0_221] : memref<1x1x64x128xf32, #tpu.memory_space<vmem>>, vector<1x1x64x128xf32>
    %194 = vector.shape_cast %193 : vector<1x1x64x128xf32> to vector<64x128xf32>
    %195 = vector.shape_cast %192 : vector<64x128xf32> to vector<1x1x64x128xf32>
    tpu.vector_store %arg7[%c0_218, %c0_219, %c0_220, %c0_221], %195 {strides = array<i32>} : memref<1x1x64x128xf32, #tpu.memory_space<vmem>>, vector<1x1x64x128xf32>,
    %196 = vector.shape_cast %192 : vector<64x128xf32> to vector<8x8x128xf32>
    %cst_222 = arith.constant dense<0.000000e+00> : vector<8x128xf32>
    %197 = vector.multi_reduction <add>, %196, %cst_222 [0] : vector<8x8x128xf32> to vector<8x128xf32>
    %c0_223 = arith.constant 0 : index
    %c0_224 = arith.constant 0 : index
    %c0_225 = arith.constant 0 : index
    %c0_226 = arith.constant 0 : index
    %198 = vector.load %arg8[%c0_223, %c0_224, %c0_225, %c0_226] : memref<1x1x8x128xf32, #tpu.memory_space<vmem>>, vector<1x1x8x128xf32>
    %199 = vector.shape_cast %198 : vector<1x1x8x128xf32> to vector<8x128xf32>
    %200 = vector.shape_cast %197 : vector<8x128xf32> to vector<1x1x8x128xf32>
    tpu.vector_store %arg8[%c0_223, %c0_224, %c0_225, %c0_226], %200 {strides = array<i32>} : memref<1x1x8x128xf32, #tpu.memory_space<vmem>>, vector<1x1x8x128xf32>,
    %201 = arith.mulf %192, %192 : vector<64x128xf32>
    %202 = vector.shape_cast %201 : vector<64x128xf32> to vector<8x8x128xf32>
    %cst_227 = arith.constant dense<0.000000e+00> : vector<8x128xf32>
    %203 = vector.multi_reduction <add>, %202, %cst_227 [0] : vector<8x8x128xf32> to vector<8x128xf32>
    %c0_228 = arith.constant 0 : index
    %c0_229 = arith.constant 0 : index
    %c0_230 = arith.constant 0 : index
    %c0_231 = arith.constant 0 : index
    %204 = vector.load %arg9[%c0_228, %c0_229, %c0_230, %c0_231] : memref<1x1x8x128xf32, #tpu.memory_space<vmem>>, vector<1x1x8x128xf32>
    %205 = vector.shape_cast %204 : vector<1x1x8x128xf32> to vector<8x128xf32>
    %206 = vector.shape_cast %203 : vector<8x128xf32> to vector<1x1x8x128xf32>
    tpu.vector_store %arg9[%c0_228, %c0_229, %c0_230, %c0_231], %206 {strides = array<i32>} : memref<1x1x8x128xf32, #tpu.memory_space<vmem>>, vector<1x1x8x128xf32>,
    return
  }
  func.func @transform_0(%arg0: i32, %arg1: i32) -> (i32, i32, i32, i32, i32) {
    %c0_i32 = arith.constant 0 : i32
    %0 = arith.addi %arg1, %c0_i32 : i32
    %c0_i32_0 = arith.constant 0 : i32
    %c0_i32_1 = arith.constant 0 : i32
    %c0_i32_2 = arith.constant 0 : i32
    %c0_i32_3 = arith.constant 0 : i32
    return %arg0, %0, %c0_i32_0, %c0_i32_1, %c0_i32_2 : i32, i32, i32, i32, i32
  }
  func.func @transform_1(%arg0: i32, %arg1: i32) -> (i32, i32, i32, i32, i32) {
    %c1_i32 = arith.constant 1 : i32
    %0 = arith.addi %arg1, %c1_i32 : i32
    %c0_i32 = arith.constant 0 : i32
    %c0_i32_0 = arith.constant 0 : i32
    %c0_i32_1 = arith.constant 0 : i32
    %c0_i32_2 = arith.constant 0 : i32
    return %arg0, %0, %c0_i32, %c0_i32_0, %c0_i32_1 : i32, i32, i32, i32, i32
  }
  func.func @transform_2(%arg0: i32, %arg1: i32) -> (i32, i32, i32, i32, i32) {
    %c2_i32 = arith.constant 2 : i32
    %0 = arith.addi %arg1, %c2_i32 : i32
    %c0_i32 = arith.constant 0 : i32
    %c0_i32_0 = arith.constant 0 : i32
    %c0_i32_1 = arith.constant 0 : i32
    %c0_i32_2 = arith.constant 0 : i32
    return %arg0, %0, %c0_i32, %c0_i32_0, %c0_i32_1 : i32, i32, i32, i32, i32
  }
  func.func @transform_3(%arg0: i32, %arg1: i32) -> (i32, i32, i32) {
    %c0_i32 = arith.constant 0 : i32
    %c0_i32_0 = arith.constant 0 : i32
    %c0_i32_1 = arith.constant 0 : i32
    %c0_i32_2 = arith.constant 0 : i32
    return %c0_i32, %c0_i32_0, %c0_i32_1 : i32, i32, i32
  }
  func.func @transform_4(%arg0: i32, %arg1: i32) -> (i32, i32) {
    %c0_i32 = arith.constant 0 : i32
    %c0_i32_0 = arith.constant 0 : i32
    %c0_i32_1 = arith.constant 0 : i32
    return %c0_i32, %c0_i32_0 : i32, i32
  }
  func.func @transform_5(%arg0: i32, %arg1: i32) -> (i32, i32, i32, i32) {
    %c0_i32 = arith.constant 0 : i32
    %c0_i32_0 = arith.constant 0 : i32
    %c0_i32_1 = arith.constant 0 : i32
    return %arg0, %arg1, %c0_i32, %c0_i32_0 : i32, i32, i32, i32
  }
  func.func @transform_6(%arg0: i32, %arg1: i32) -> (i32, i32, i32, i32) {
    %c0_i32 = arith.constant 0 : i32
    %c0_i32_0 = arith.constant 0 : i32
    %c0_i32_1 = arith.constant 0 : i32
    return %arg0, %arg1, %c0_i32, %c0_i32_0 : i32, i32, i32, i32
  }
  func.func @transform_7(%arg0: i32, %arg1: i32) -> (i32, i32, i32, i32) {
    %c0_i32 = arith.constant 0 : i32
    %c0_i32_0 = arith.constant 0 : i32
    %c0_i32_1 = arith.constant 0 : i32
    return %arg0, %arg1, %c0_i32, %c0_i32_0 : i32, i32, i32, i32
  }
}

module attributes {stable_mosaic.version = 11 : i64} {
  func.func @_bn_relu_kernel(%arg0: i32, %arg1: memref<512x128xf32, #tpu.memory_space<vmem>>, %arg2: memref<1x128xf32, #tpu.memory_space<vmem>>, %arg3: memref<1x128xf32, #tpu.memory_space<vmem>>, %arg4: memref<512x128xf32, #tpu.memory_space<vmem>>) attributes {dimension_semantics = [#tpu.dimension_semantics<parallel>], iteration_bounds = array<i64: 2>, scalar_prefetch = 0 : i64, scratch_operands = 0 : i64, tpu.core_type = #tpu.core_type<tc>, window_params = [{transform_indices = @transform_0, window_bounds = array<i64: 512, 128>}, {pipeline_mode = #tpu.pipeline_mode<synchronous>, transform_indices = @transform_1, window_bounds = array<i64: 1, 128>}, {pipeline_mode = #tpu.pipeline_mode<synchronous>, transform_indices = @transform_2, window_bounds = array<i64: 1, 128>}, {transform_indices = @transform_3, window_bounds = array<i64: 512, 128>}]} {
    %c0 = arith.constant 0 : index
    %c0_0 = arith.constant 0 : index
    %0 = vector.load %arg1[%c0, %c0_0] : memref<512x128xf32, #tpu.memory_space<vmem>>, vector<512x128xf32>
    %c0_1 = arith.constant 0 : index
    %c0_2 = arith.constant 0 : index
    %1 = vector.load %arg2[%c0_1, %c0_2] : memref<1x128xf32, #tpu.memory_space<vmem>>, vector<1x128xf32>
    %2 = vector.broadcast %1 : vector<1x128xf32> to vector<512x128xf32>
    %3 = arith.mulf %0, %2 : vector<512x128xf32>
    %c0_3 = arith.constant 0 : index
    %c0_4 = arith.constant 0 : index
    %4 = vector.load %arg3[%c0_3, %c0_4] : memref<1x128xf32, #tpu.memory_space<vmem>>, vector<1x128xf32>
    %5 = vector.broadcast %4 : vector<1x128xf32> to vector<512x128xf32>
    %6 = arith.addf %3, %5 : vector<512x128xf32>
    %cst = arith.constant 0.000000e+00 : f32
    %7 = vector.broadcast %cst : f32 to vector<512x128xf32>
    %8 = arith.maximumf %6, %7 : vector<512x128xf32>
    %c0_5 = arith.constant 0 : index
    %c0_6 = arith.constant 0 : index
    %9 = vector.load %arg4[%c0_5, %c0_6] : memref<512x128xf32, #tpu.memory_space<vmem>>, vector<512x128xf32>
    tpu.vector_store %arg4[%c0_5, %c0_6], %8 {strides = array<i32>} : memref<512x128xf32, #tpu.memory_space<vmem>>, vector<512x128xf32>,
    return
  }
  func.func @transform_0(%arg0: i32) -> (i32, i32) {
    %c0_i32 = arith.constant 0 : i32
    %c0_i32_0 = arith.constant 0 : i32
    return %arg0, %c0_i32 : i32, i32
  }
  func.func @transform_1(%arg0: i32) -> (i32, i32) {
    %c0_i32 = arith.constant 0 : i32
    %c0_i32_0 = arith.constant 0 : i32
    %c0_i32_1 = arith.constant 0 : i32
    return %c0_i32, %c0_i32_0 : i32, i32
  }
  func.func @transform_2(%arg0: i32) -> (i32, i32) {
    %c0_i32 = arith.constant 0 : i32
    %c0_i32_0 = arith.constant 0 : i32
    %c0_i32_1 = arith.constant 0 : i32
    return %c0_i32, %c0_i32_0 : i32, i32
  }
  func.func @transform_3(%arg0: i32) -> (i32, i32) {
    %c0_i32 = arith.constant 0 : i32
    %c0_i32_0 = arith.constant 0 : i32
    return %arg0, %c0_i32 : i32, i32
  }
}

</mosaic_0001>

<bundles_post_ra>
// kernel: conv3d_block_forward.5
= control target key start
LH: loop header
LB: loop body
LE: loop exit
PB: predicated region body
PF: predicated region fallthrough
CT: control target
= control target key end

     0   :  { %s613_s12 = smov 0   ;;  %s900_s0 = inlined_call_operand.vmem [shape: f32[1024,128], index: 0, kind: input, shape index: {}]   ;;  %s901_s1 = inlined_call_operand.vmem [shape: f32[1,128], index: 1, kind: input, shape index: {}]   ;;  %s902_s2 = inlined_call_operand.vmem [shape: f32[1,128], index: 2, kind: input, shape index: {}]   ;;  %s903_s3 = inlined_call_operand.vmem [shape: f32[1024,128], index: 3, kind: output, shape index: {}]  }
   0x1 LB: > { %s564_s13 = sadd.s32 4294967295, %s591_s12   ;;  %p568_p0 = scmp.ge.s32.totalorder %s591_s12, 1  ;;  %s591_s12 = sphi %s613_s12, %s13_s12  }
   0x2   : > { %p138_p1 = scmp.lt.s32.totalorder %s591_s12, 3 }
   0x4   : > { %p139_p2 = pnand %p568_p0, %p138_p1 }
   0x5   : > { %s569_s14 = sshll.u32 (!%p139_p2), %s564_s13, 6  ;;  %v624_v0 = vld [vmem:[%s901_s1] ss:$0 sm:$0xff] (!%p139_p2) }
   0x6   : > { %142 = sbr.rel (%p139_p2) target bundleno = 70 (0x46), region = 32  ;;  %p163_p3 = scmp.lt.s32.totalorder (!%p139_p2), %s569_s14, 127  ;;  %v634_v1 = vld [vmem:[%s902_s2] ss:$0 sm:$0xff] (!%p139_p2) }
   0xd   : > { %s905_s14 = smov (!%p163_p3, %s569_s14), 127 }
   0xe   : > { %s570_s15 = sshll.u32 %s905_s14, 3 }
   0xf   : > { %s629_s20 = scalar_lea.vmem %s900_s0, %s570_s15  ;;  %s657_s25 = scalar_lea.vmem %s903_s3, %s570_s15 }
  0x10   : > { %v174_v2 = vld [vmem:[%s629_s20] sm:$0xff]  ;;  %v175_v3 = vld [vmem:[%s629_s20 + $0x8] sm:$0xff]  ;;  %v176_v4 = vld [vmem:[%s629_s20 + $0x10] sm:$0xff] }
  0x11   : > { %v245_v5 = vmul.f32 %v624_v0, %v174_v2  ;;  %v246_v6 = vmul.f32 %v624_v0, %v175_v3  ;;  %v247_v7 = vmul.f32 %v624_v0, %v176_v4  ;;  %v177_v8 = vld [vmem:[%s629_s20 + $0x18] sm:$0xff]  ;;  %v178_v9 = vld [vmem:[%s629_s20 + $0x20] sm:$0xff]  ;;  %v179_v10 = vld [vmem:[%s629_s20 + $0x28] sm:$0xff] }
  0x12   : > { %v248_v11 = vmul.f32 %v624_v0, %v177_v8  ;;  %v249_v12 = vmul.f32 %v624_v0, %v178_v9  ;;  %v250_v13 = vmul.f32 %v624_v0, %v179_v10  ;;  %v180_v14 = vld [vmem:[%s629_s20 + $0x30] sm:$0xff]  ;;  %v181_v15 = vld [vmem:[%s629_s20 + $0x38] sm:$0xff]  ;;  %v182_v24 = vld [vmem:[%s629_s20 + $0x40] sm:$0xff] }
  0x13   : > { %v316_v16 = vadd.f32 %v634_v1, %v245_v5  ;;  %v317_v17 = vadd.f32 %v634_v1, %v246_v6  ;;  %v318_v18 = vadd.f32 %v634_v1, %v247_v7  ;;  %v251_v19 = vmul.f32 %v624_v0, %v180_v14  ;;  %v183_v25 = vld [vmem:[%s629_s20 + $0x48] sm:$0xff]  ;;  %v184_v26 = vld [vmem:[%s629_s20 + $0x50] sm:$0xff]  ;;  %v185_v31 = vld [vmem:[%s629_s20 + $0x58] sm:$0xff] }
  0x14   : > { %v319_v20 = vadd.f32 %v634_v1, %v248_v11  ;;  %v320_v21 = vadd.f32 %v634_v1, %v249_v12  ;;  %v321_v22 = vadd.f32 %v634_v1, %v250_v13  ;;  %v252_v23 = vmul.f32 %v624_v0, %v181_v15  ;;  %v186_v32 = vld [vmem:[%s629_s20 + $0x60] sm:$0xff]  ;;  %v187_v33 = vld [vmem:[%s629_s20 + $0x68] sm:$0xff]  ;;  %v188_v38 = vld [vmem:[%s629_s20 + $0x70] sm:$0xff] }
  0x15   : > { %v380_v27 = vmax.f32 %v316_v16, 0.0  ;;  %v381_v28 = vmax.f32 %v317_v17, 0.0  ;;  %v382_v29 = vmax.f32 %v318_v18, 0.0  ;;  %v322_v30 = vadd.f32 %v634_v1, %v251_v19  ;;  %v189_v43 = vld [vmem:[%s629_s20 + $0x78] sm:$0xff]  ;;  %v190_v56 = vld [vmem:[%s629_s20 + $0x80] sm:$0xff]  ;;  %v191_v57 = vld [vmem:[%s629_s20 + $0x88] sm:$0xff] }
  0x16   : > { %v383_v34 = vmax.f32 %v319_v20, 0.0  ;;  %v384_v35 = vmax.f32 %v320_v21, 0.0  ;;  %v385_v36 = vmax.f32 %v321_v22, 0.0  ;;  %v323_v37 = vadd.f32 %v634_v1, %v252_v23  ;;  %v192_v58 = vld [vmem:[%s629_s20 + $0x90] sm:$0xff]  ;;  %v193_v63 = vld [vmem:[%s629_s20 + $0x98] sm:$0xff]  ;;  %v194_v2 = vld [vmem:[%s629_s20 + $0xa0] sm:$0xff] }
  0x17   : > { %444 = vst [vmem:[%s657_s25] sm:$0xff] %v380_v27  ;;  %445 = vst [vmem:[%s657_s25 + $0x8] sm:$0xff] %v381_v28  ;;  %v386_v39 = vmax.f32 %v322_v30, 0.0  ;;  %v253_v40 = vmul.f32 %v624_v0, %v182_v24  ;;  %v254_v41 = vmul.f32 %v624_v0, %v183_v25  ;;  %v255_v42 = vmul.f32 %v624_v0, %v184_v26  ;;  %v195_v3 = vld [vmem:[%s629_s20 + $0xa8] sm:$0xff]  ;;  %v196_v8 = vld [vmem:[%s629_s20 + $0xb0] sm:$0xff] }
  0x18   : > { %446 = vst [vmem:[%s657_s25 + $0x10] sm:$0xff] %v382_v29  ;;  %447 = vst [vmem:[%s657_s25 + $0x18] sm:$0xff] %v383_v34  ;;  %v387_v44 = vmax.f32 %v323_v37, 0.0  ;;  %v256_v45 = vmul.f32 %v624_v0, %v185_v31  ;;  %v257_v46 = vmul.f32 %v624_v0, %v186_v32  ;;  %v258_v47 = vmul.f32 %v624_v0, %v187_v33  ;;  %v197_v13 = vld [vmem:[%s629_s20 + $0xb8] sm:$0xff]  ;;  %v198_v26 = vld [vmem:[%s629_s20 + $0xc0] sm:$0xff] }
  0x19   : > { %448 = vst [vmem:[%s657_s25 + $0x20] sm:$0xff] %v384_v35  ;;  %449 = vst [vmem:[%s657_s25 + $0x28] sm:$0xff] %v385_v36  ;;  %v324_v48 = vadd.f32 %v634_v1, %v253_v40  ;;  %v325_v49 = vadd.f32 %v634_v1, %v254_v41  ;;  %v326_v50 = vadd.f32 %v634_v1, %v255_v42  ;;  %v199_v27 = vld [vmem:[%s629_s20 + $0xc8] sm:$0xff]  ;;  %v200_v28 = vld [vmem:[%s629_s20 + $0xd0] sm:$0xff] }
  0x1a   : > { %450 = vst [vmem:[%s657_s25 + $0x30] sm:$0xff] %v386_v39  ;;  %v259_v51 = vmul.f32 %v624_v0, %v188_v38  ;;  %451 = vst [vmem:[%s657_s25 + $0x38] sm:$0xff] %v387_v44  ;;  %v327_v52 = vadd.f32 %v634_v1, %v256_v45  ;;  %v328_v53 = vadd.f32 %v634_v1, %v257_v46  ;;  %v201_v33 = vld [vmem:[%s629_s20 + $0xd8] sm:$0xff]  ;;  %v202_v34 = vld [vmem:[%s629_s20 + $0xe0] sm:$0xff] }
  0x1b   : > { %v329_v54 = vadd.f32 %v634_v1, %v258_v47  ;;  %v260_v55 = vmul.f32 %v624_v0, %v189_v43  ;;  %v388_v59 = vmax.f32 %v324_v48, 0.0  ;;  %v389_v60 = vmax.f32 %v325_v49, 0.0  ;;  %v203_v35 = vld [vmem:[%s629_s20 + $0xe8] sm:$0xff]  ;;  %v204_v40 = vld [vmem:[%s629_s20 + $0xf0] sm:$0xff]  ;;  %v205_v45 = vld [vmem:[%s629_s20 + $0xf8] sm:$0xff] }
  0x1c   : > { %v390_v61 = vmax.f32 %v326_v50, 0.0  ;;  %v330_v62 = vadd.f32 %v634_v1, %v259_v51  ;;  %v391_v4 = vmax.f32 %v327_v52, 0.0  ;;  %v392_v5 = vmax.f32 %v328_v53, 0.0 }
  0x1d   : > { %v393_v6 = vmax.f32 %v329_v54, 0.0  ;;  %v331_v7 = vadd.f32 %v634_v1, %v260_v55  ;;  %452 = vst [vmem:[%s657_s25 + $0x40] sm:$0xff] %v388_v59  ;;  %453 = vst [vmem:[%s657_s25 + $0x48] sm:$0xff] %v389_v60  ;;  %v261_v10 = vmul.f32 %v624_v0, %v190_v56  ;;  %v262_v11 = vmul.f32 %v624_v0, %v191_v57  ;;  %v207_v59 = vld [vmem:[%s629_s20 + $0x108] sm:$0xff]  ;;  %v208_v60 = vld [vmem:[%s629_s20 + $0x110] sm:$0xff] }
  0x1e   : > { %454 = vst [vmem:[%s657_s25 + $0x50] sm:$0xff] %v390_v61  ;;  %v394_v9 = vmax.f32 %v330_v62, 0.0  ;;  %v263_v12 = vmul.f32 %v624_v0, %v192_v58  ;;  %455 = vst [vmem:[%s657_s25 + $0x58] sm:$0xff] %v391_v4  ;;  %v264_v15 = vmul.f32 %v624_v0, %v193_v63  ;;  %v265_v16 = vmul.f32 %v624_v0, %v194_v2  ;;  %v206_v58 = vld [vmem:[%s629_s20 + $0x100] sm:$0xff] }
  0x1f   : > { %456 = vst [vmem:[%s657_s25 + $0x60] sm:$0xff] %v392_v5  ;;  %457 = vst [vmem:[%s657_s25 + $0x68] sm:$0xff] %v393_v6  ;;  %v395_v14 = vmax.f32 %v331_v7, 0.0  ;;  %v266_v17 = vmul.f32 %v624_v0, %v195_v3  ;;  %v332_v18 = vadd.f32 %v634_v1, %v261_v10  ;;  %v333_v19 = vadd.f32 %v634_v1, %v262_v11  ;;  %v209_v3 = vld [vmem:[%s629_s20 + $0x118] sm:$0xff]  ;;  %v210_v4 = vld [vmem:[%s629_s20 + $0x120] sm:$0xff] }
  0x20   : > { %458 = vst [vmem:[%s657_s25 + $0x70] sm:$0xff] %v394_v9  ;;  %v334_v20 = vadd.f32 %v634_v1, %v263_v12  ;;  %v267_v21 = vmul.f32 %v624_v0, %v196_v8  ;;  %v335_v22 = vadd.f32 %v634_v1, %v264_v15  ;;  %v336_v23 = vadd.f32 %v634_v1, %v265_v16  ;;  %v211_v5 = vld [vmem:[%s629_s20 + $0x128] sm:$0xff]  ;;  %v212_v10 = vld [vmem:[%s629_s20 + $0x130] sm:$0xff]  ;;  %v213_v15 = vld [vmem:[%s629_s20 + $0x138] sm:$0xff] }
  0x21   : > { %459 = vst [vmem:[%s657_s25 + $0x78] sm:$0xff] %v395_v14  ;;  %v337_v24 = vadd.f32 %v634_v1, %v266_v17  ;;  %v268_v25 = vmul.f32 %v624_v0, %v197_v13  ;;  %v396_v29 = vmax.f32 %v332_v18, 0.0  ;;  %v397_v30 = vmax.f32 %v333_v19, 0.0 }
  0x22   : > { %v398_v31 = vmax.f32 %v334_v20, 0.0  ;;  %v338_v32 = vadd.f32 %v634_v1, %v267_v21  ;;  %v399_v36 = vmax.f32 %v335_v22, 0.0  ;;  %v400_v37 = vmax.f32 %v336_v23, 0.0 }
  0x23   : > { %v401_v38 = vmax.f32 %v337_v24, 0.0  ;;  %v339_v39 = vadd.f32 %v634_v1, %v268_v25  ;;  %460 = vst [vmem:[%s657_s25 + $0x80] sm:$0xff] %v396_v29  ;;  %461 = vst [vmem:[%s657_s25 + $0x88] sm:$0xff] %v397_v30  ;;  %v269_v42 = vmul.f32 %v624_v0, %v198_v26  ;;  %v270_v43 = vmul.f32 %v624_v0, %v199_v27  ;;  %v215_v29 = vld [vmem:[%s629_s20 + $0x148] sm:$0xff]  ;;  %v216_v30 = vld [vmem:[%s629_s20 + $0x150] sm:$0xff] }
  0x24   : > { %462 = vst [vmem:[%s657_s25 + $0x90] sm:$0xff] %v398_v31  ;;  %v402_v41 = vmax.f32 %v338_v32, 0.0  ;;  %v271_v44 = vmul.f32 %v624_v0, %v200_v28  ;;  %463 = vst [vmem:[%s657_s25 + $0x98] sm:$0xff] %v399_v36  ;;  %v272_v47 = vmul.f32 %v624_v0, %v201_v33  ;;  %v273_v48 = vmul.f32 %v624_v0, %v202_v34  ;;  %v214_v28 = vld [vmem:[%s629_s20 + $0x140] sm:$0xff] }
  0x25   : > { %464 = vst [vmem:[%s657_s25 + $0xa0] sm:$0xff] %v400_v37  ;;  %465 = vst [vmem:[%s657_s25 + $0xa8] sm:$0xff] %v401_v38  ;;  %v403_v46 = vmax.f32 %v339_v39, 0.0  ;;  %v274_v49 = vmul.f32 %v624_v0, %v203_v35  ;;  %v340_v50 = vadd.f32 %v634_v1, %v269_v42  ;;  %v341_v51 = vadd.f32 %v634_v1, %v270_v43  ;;  %v217_v35 = vld [vmem:[%s629_s20 + $0x158] sm:$0xff]  ;;  %v218_v36 = vld [vmem:[%s629_s20 + $0x160] sm:$0xff] }
  0x26   : > { %466 = vst [vmem:[%s657_s25 + $0xb0] sm:$0xff] %v402_v41  ;;  %v342_v52 = vadd.f32 %v634_v1, %v271_v44  ;;  %v275_v53 = vmul.f32 %v624_v0, %v204_v40  ;;  %v343_v54 = vadd.f32 %v634_v1, %v272_v47  ;;  %v344_v55 = vadd.f32 %v634_v1, %v273_v48  ;;  %v219_v37 = vld [vmem:[%s629_s20 + $0x168] sm:$0xff]  ;;  %v220_v42 = vld [vmem:[%s629_s20 + $0x170] sm:$0xff]  ;;  %v221_v47 = vld [vmem:[%s629_s20 + $0x178] sm:$0xff] }
  0x27   : > { %467 = vst [vmem:[%s657_s25 + $0xb8] sm:$0xff] %v403_v46  ;;  %v345_v56 = vadd.f32 %v634_v1, %v274_v49  ;;  %v276_v57 = vmul.f32 %v624_v0, %v205_v45  ;;  %v404_v61 = vmax.f32 %v340_v50, 0.0  ;;  %v405_v62 = vmax.f32 %v341_v51, 0.0 }
  0x28   : > { %v406_v63 = vmax.f32 %v342_v52, 0.0  ;;  %v346_v2 = vadd.f32 %v634_v1, %v275_v53  ;;  %v407_v6 = vmax.f32 %v343_v54, 0.0  ;;  %v408_v7 = vmax.f32 %v344_v55, 0.0 }
  0x29   : > { %v409_v8 = vmax.f32 %v345_v56, 0.0  ;;  %v347_v9 = vadd.f32 %v634_v1, %v276_v57  ;;  %468 = vst [vmem:[%s657_s25 + $0xc0] sm:$0xff] %v404_v61  ;;  %469 = vst [vmem:[%s657_s25 + $0xc8] sm:$0xff] %v405_v62  ;;  %v277_v12 = vmul.f32 %v624_v0, %v206_v58  ;;  %v278_v13 = vmul.f32 %v624_v0, %v207_v59  ;;  %v223_v61 = vld [vmem:[%s629_s20 + $0x188] sm:$0xff]  ;;  %v224_v62 = vld [vmem:[%s629_s20 + $0x190] sm:$0xff] }
  0x2a   : > { %470 = vst [vmem:[%s657_s25 + $0xd0] sm:$0xff] %v406_v63  ;;  %v410_v11 = vmax.f32 %v346_v2, 0.0  ;;  %v279_v14 = vmul.f32 %v624_v0, %v208_v60  ;;  %471 = vst [vmem:[%s657_s25 + $0xd8] sm:$0xff] %v407_v6  ;;  %v280_v17 = vmul.f32 %v624_v0, %v209_v3  ;;  %v281_v18 = vmul.f32 %v624_v0, %v210_v4  ;;  %v222_v60 = vld [vmem:[%s629_s20 + $0x180] sm:$0xff] }
  0x2b   : > { %472 = vst [vmem:[%s657_s25 + $0xe0] sm:$0xff] %v408_v7  ;;  %473 = vst [vmem:[%s657_s25 + $0xe8] sm:$0xff] %v409_v8  ;;  %v411_v16 = vmax.f32 %v347_v9, 0.0  ;;  %v282_v19 = vmul.f32 %v624_v0, %v211_v5  ;;  %v348_v20 = vadd.f32 %v634_v1, %v277_v12  ;;  %v349_v21 = vadd.f32 %v634_v1, %v278_v13  ;;  %v225_v5 = vld [vmem:[%s629_s20 + $0x198] sm:$0xff]  ;;  %v226_v6 = vld [vmem:[%s629_s20 + $0x1a0] sm:$0xff] }
  0x2c   : > { %474 = vst [vmem:[%s657_s25 + $0xf0] sm:$0xff] %v410_v11  ;;  %v350_v22 = vadd.f32 %v634_v1, %v279_v14  ;;  %v283_v23 = vmul.f32 %v624_v0, %v212_v10  ;;  %v351_v24 = vadd.f32 %v634_v1, %v280_v17  ;;  %v352_v25 = vadd.f32 %v634_v1, %v281_v18  ;;  %v227_v7 = vld [vmem:[%s629_s20 + $0x1a8] sm:$0xff]  ;;  %v228_v12 = vld [vmem:[%s629_s20 + $0x1b0] sm:$0xff]  ;;  %v229_v17 = vld [vmem:[%s629_s20 + $0x1b8] sm:$0xff] }
  0x2d   : > { %475 = vst [vmem:[%s657_s25 + $0xf8] sm:$0xff] %v411_v16  ;;  %v353_v26 = vadd.f32 %v634_v1, %v282_v19  ;;  %v284_v27 = vmul.f32 %v624_v0, %v213_v15  ;;  %v412_v31 = vmax.f32 %v348_v20, 0.0  ;;  %v413_v32 = vmax.f32 %v349_v21, 0.0 }
  0x2e   : > { %v414_v33 = vmax.f32 %v350_v22, 0.0  ;;  %v354_v34 = vadd.f32 %v634_v1, %v283_v23  ;;  %v415_v38 = vmax.f32 %v351_v24, 0.0  ;;  %v416_v39 = vmax.f32 %v352_v25, 0.0 }
  0x2f   : > { %v417_v40 = vmax.f32 %v353_v26, 0.0  ;;  %v355_v41 = vadd.f32 %v634_v1, %v284_v27  ;;  %476 = vst [vmem:[%s657_s25 + $0x100] sm:$0xff] %v412_v31  ;;  %477 = vst [vmem:[%s657_s25 + $0x108] sm:$0xff] %v413_v32  ;;  %v285_v44 = vmul.f32 %v624_v0, %v214_v28  ;;  %v286_v45 = vmul.f32 %v624_v0, %v215_v29  ;;  %v231_v31 = vld [vmem:[%s629_s20 + $0x1c8] sm:$0xff]  ;;  %v232_v32 = vld [vmem:[%s629_s20 + $0x1d0] sm:$0xff] }
  0x30   : > { %478 = vst [vmem:[%s657_s25 + $0x110] sm:$0xff] %v414_v33  ;;  %v418_v43 = vmax.f32 %v354_v34, 0.0  ;;  %v287_v46 = vmul.f32 %v624_v0, %v216_v30  ;;  %479 = vst [vmem:[%s657_s25 + $0x118] sm:$0xff] %v415_v38  ;;  %v288_v49 = vmul.f32 %v624_v0, %v217_v35  ;;  %v289_v50 = vmul.f32 %v624_v0, %v218_v36  ;;  %v230_v30 = vld [vmem:[%s629_s20 + $0x1c0] sm:$0xff] }
  0x31   : > { %480 = vst [vmem:[%s657_s25 + $0x120] sm:$0xff] %v416_v39  ;;  %481 = vst [vmem:[%s657_s25 + $0x128] sm:$0xff] %v417_v40  ;;  %v419_v48 = vmax.f32 %v355_v41, 0.0  ;;  %v290_v51 = vmul.f32 %v624_v0, %v219_v37  ;;  %v356_v52 = vadd.f32 %v634_v1, %v285_v44  ;;  %v357_v53 = vadd.f32 %v634_v1, %v286_v45  ;;  %v233_v37 = vld [vmem:[%s629_s20 + $0x1d8] sm:$0xff]  ;;  %v234_v38 = vld [vmem:[%s629_s20 + $0x1e0] sm:$0xff] }
  0x32   : > { %482 = vst [vmem:[%s657_s25 + $0x130] sm:$0xff] %v418_v43  ;;  %v358_v54 = vadd.f32 %v634_v1, %v287_v46  ;;  %v291_v55 = vmul.f32 %v624_v0, %v220_v42  ;;  %v359_v56 = vadd.f32 %v634_v1, %v288_v49  ;;  %v360_v57 = vadd.f32 %v634_v1, %v289_v50  ;;  %v235_v39 = vld [vmem:[%s629_s20 + $0x1e8] sm:$0xff]  ;;  %v236_v44 = vld [vmem:[%s629_s20 + $0x1f0] sm:$0xff]  ;;  %v237_v49 = vld [vmem:[%s629_s20 + $0x1f8] sm:$0xff] }
  0x33   : > { %483 = vst [vmem:[%s657_s25 + $0x138] sm:$0xff] %v419_v48  ;;  %v361_v58 = vadd.f32 %v634_v1, %v290_v51  ;;  %v292_v59 = vmul.f32 %v624_v0, %v221_v47  ;;  %v420_v63 = vmax.f32 %v356_v52, 0.0  ;;  %v421_v2 = vmax.f32 %v357_v53, 0.0 }
  0x34   : > { %v422_v3 = vmax.f32 %v358_v54, 0.0  ;;  %v362_v4 = vadd.f32 %v634_v1, %v291_v55  ;;  %v423_v8 = vmax.f32 %v359_v56, 0.0  ;;  %v424_v9 = vmax.f32 %v360_v57, 0.0 }
  0x35   : > { %v425_v10 = vmax.f32 %v361_v58, 0.0  ;;  %v363_v11 = vadd.f32 %v634_v1, %v292_v59  ;;  %484 = vst [vmem:[%s657_s25 + $0x140] sm:$0xff] %v420_v63  ;;  %485 = vst [vmem:[%s657_s25 + $0x148] sm:$0xff] %v421_v2  ;;  %v293_v14 = vmul.f32 %v624_v0, %v222_v60  ;;  %v294_v15 = vmul.f32 %v624_v0, %v223_v61 }
  0x36   : > { %486 = vst [vmem:[%s657_s25 + $0x150] sm:$0xff] %v422_v3  ;;  %v426_v13 = vmax.f32 %v362_v4, 0.0  ;;  %v295_v16 = vmul.f32 %v624_v0, %v224_v62  ;;  %487 = vst [vmem:[%s657_s25 + $0x158] sm:$0xff] %v423_v8  ;;  %v296_v19 = vmul.f32 %v624_v0, %v225_v5  ;;  %v297_v20 = vmul.f32 %v624_v0, %v226_v6 }
  0x37   : > { %488 = vst [vmem:[%s657_s25 + $0x160] sm:$0xff] %v424_v9  ;;  %489 = vst [vmem:[%s657_s25 + $0x168] sm:$0xff] %v425_v10  ;;  %v427_v18 = vmax.f32 %v363_v11, 0.0  ;;  %v298_v21 = vmul.f32 %v624_v0, %v227_v7  ;;  %v364_v22 = vadd.f32 %v634_v1, %v293_v14  ;;  %v365_v23 = vadd.f32 %v634_v1, %v294_v15 }
  0x38   : > { %490 = vst [vmem:[%s657_s25 + $0x170] sm:$0xff] %v426_v13  ;;  %v366_v24 = vadd.f32 %v634_v1, %v295_v16  ;;  %v299_v25 = vmul.f32 %v624_v0, %v228_v12  ;;  %v367_v26 = vadd.f32 %v634_v1, %v296_v19  ;;  %v368_v27 = vadd.f32 %v634_v1, %v297_v20 }
  0x39   : > { %491 = vst [vmem:[%s657_s25 + $0x178] sm:$0xff] %v427_v18  ;;  %v369_v28 = vadd.f32 %v634_v1, %v298_v21  ;;  %v300_v29 = vmul.f32 %v624_v0, %v229_v17  ;;  %v428_v33 = vmax.f32 %v364_v22, 0.0  ;;  %v429_v34 = vmax.f32 %v365_v23, 0.0 }
  0x3a   : > { %v430_v35 = vmax.f32 %v366_v24, 0.0  ;;  %v370_v36 = vadd.f32 %v634_v1, %v299_v25  ;;  %v431_v40 = vmax.f32 %v367_v26, 0.0  ;;  %v432_v41 = vmax.f32 %v368_v27, 0.0 }
  0x3b   : > { %v433_v42 = vmax.f32 %v369_v28, 0.0  ;;  %v371_v43 = vadd.f32 %v634_v1, %v300_v29  ;;  %492 = vst [vmem:[%s657_s25 + $0x180] sm:$0xff] %v428_v33  ;;  %493 = vst [vmem:[%s657_s25 + $0x188] sm:$0xff] %v429_v34  ;;  %v301_v46 = vmul.f32 %v624_v0, %v230_v30  ;;  %v302_v47 = vmul.f32 %v624_v0, %v231_v31 }
  0x3c   : > { %494 = vst [vmem:[%s657_s25 + $0x190] sm:$0xff] %v430_v35  ;;  %v434_v45 = vmax.f32 %v370_v36, 0.0  ;;  %v303_v48 = vmul.f32 %v624_v0, %v232_v32  ;;  %495 = vst [vmem:[%s657_s25 + $0x198] sm:$0xff] %v431_v40  ;;  %v304_v51 = vmul.f32 %v624_v0, %v233_v37  ;;  %v305_v52 = vmul.f32 %v624_v0, %v234_v38 }
  0x3d   : > { %496 = vst [vmem:[%s657_s25 + $0x1a0] sm:$0xff] %v432_v41  ;;  %497 = vst [vmem:[%s657_s25 + $0x1a8] sm:$0xff] %v433_v42  ;;  %v435_v50 = vmax.f32 %v371_v43, 0.0  ;;  %v306_v53 = vmul.f32 %v624_v0, %v235_v39  ;;  %v372_v54 = vadd.f32 %v634_v1, %v301_v46  ;;  %v373_v55 = vadd.f32 %v634_v1, %v302_v47 }
  0x3e   : > { %498 = vst [vmem:[%s657_s25 + $0x1b0] sm:$0xff] %v434_v45  ;;  %v374_v56 = vadd.f32 %v634_v1, %v303_v48  ;;  %v307_v57 = vmul.f32 %v624_v0, %v236_v44  ;;  %v375_v58 = vadd.f32 %v634_v1, %v304_v51  ;;  %v376_v59 = vadd.f32 %v634_v1, %v305_v52 }
  0x3f   : > { %499 = vst [vmem:[%s657_s25 + $0x1b8] sm:$0xff] %v435_v50  ;;  %v377_v60 = vadd.f32 %v634_v1, %v306_v53  ;;  %v308_v61 = vmul.f32 %v624_v0, %v237_v49  ;;  %v436_v62 = vmax.f32 %v372_v54, 0.0  ;;  %v437_v63 = vmax.f32 %v373_v55, 0.0 }
  0x40   : > { %v438_v2 = vmax.f32 %v374_v56, 0.0  ;;  %v378_v3 = vadd.f32 %v634_v1, %v307_v57  ;;  %v439_v4 = vmax.f32 %v375_v58, 0.0  ;;  %v440_v5 = vmax.f32 %v376_v59, 0.0 }
  0x41   : > { %v441_v6 = vmax.f32 %v377_v60, 0.0  ;;  %v379_v7 = vadd.f32 %v634_v1, %v308_v61  ;;  %500 = vst [vmem:[%s657_s25 + $0x1c0] sm:$0xff] %v436_v62  ;;  %501 = vst [vmem:[%s657_s25 + $0x1c8] sm:$0xff] %v437_v63 }
  0x42   : > { %502 = vst [vmem:[%s657_s25 + $0x1d0] sm:$0xff] %v438_v2  ;;  %v442_v8 = vmax.f32 %v378_v3, 0.0  ;;  %503 = vst [vmem:[%s657_s25 + $0x1d8] sm:$0xff] %v439_v4 }
  0x43   : > { %504 = vst [vmem:[%s657_s25 + $0x1e0] sm:$0xff] %v440_v5  ;;  %505 = vst [vmem:[%s657_s25 + $0x1e8] sm:$0xff] %v441_v6  ;;  %v443_v0 = vmax.f32 %v379_v7, 0.0 }
  0x44   : > { %506 = vst [vmem:[%s657_s25 + $0x1f0] sm:$0xff] %v442_v8 }
  0x45   : > { %507 = vst [vmem:[%s657_s25 + $0x1f8] sm:$0xff] %v443_v0 }
  0x46 PF: > { %s13_s12 = sadd.s32 1, %s591_s12  }
  0x47   : > { %p10_p4 = scmp.ge.s32.totalorder %s13_s12, 4  }
  0x49   :  { %12 = sbr.rel (!%p10_p4) target bundleno = 1 (0x1), region = 62 }

// kernel: conv3d_block_forward.4
= control target key start
LH: loop header
LB: loop body
LE: loop exit
PB: predicated region body
PF: predicated region fallthrough
CT: control target
= control target key end

     0   :  { %s8058_s24 = smov 0   ;;  %s8060_s25 = smov 0   ;;  %s9887_s0 = inlined_call_operand.vmem [shape: f32[2,10,10,10,128], index: 0, kind: input, shape index: {}, may-alias: {0,1,2}]   ;;  %s9888_s1 = inlined_call_operand.vmem [shape: f32[2,10,10,10,128], index: 1, kind: input, shape index: {}, may-alias: {0,1,2}]   ;;  %s9889_s2 = inlined_call_operand.vmem [shape: f32[2,10,10,10,128], index: 2, kind: input, shape index: {}, may-alias: {0,1,2}]   ;;  %s9890_s3 = inlined_call_operand.vmem [shape: f32[27,128,128], index: 3, kind: input, shape index: {}]   ;;  %s9891_s4 = inlined_call_operand.vmem [shape: f32[1,128], index: 4, kind: input, shape index: {}]   ;;  %s9892_s5 = inlined_call_operand.vmem [shape: f32[2,8,64,128], index: 5, kind: output, shape index: {0}]   ;;  %s9893_s6 = inlined_call_operand.vmem [shape: f32[2,8,8,128], index: 6, kind: output, shape index: {1}]   ;;  %s9894_s7 = inlined_call_operand.vmem [shape: f32[2,8,8,128], index: 7, kind: output, shape index: {2}]  }
   0x1   :  { %s8062_s26 = smov 0   ;;  %s8064_s27 = smov 0  }
   0x2   :  { %s8066_s28 = smov 0  }
   0x3 LB: > { %s27_s29 = sadd.s32 1, %s8008_s26  ;;  %s30_s30 = sadd.s32 1, %s8012_s27  ;;  %s8016_s28 = sphi %s8066_s28, %s18_s28   ;;  %s8012_s27 = sphi %s8064_s27, %s9898_s27   ;;  %s8008_s26 = sphi %s8062_s26, %s9897_s26   ;;  %s8004_s25 = sphi %s8060_s25, %s9896_s25   ;;  %s8000_s24 = sphi %s8058_s24, %s9895_s24  }
   0x4   : > { %p28_p0 = scmp.ge.s32.totalorder %s27_s29, 8  ;;  %p4435_p1 = scmp.ge.s32.totalorder %s8016_s28, 1 }
   0x5   : > { %p306_p2 = scmp.lt.s32.totalorder %s8016_s28, 17 }
   0x6   : > { %s9900_s29 = smov (%p28_p0, %s27_s29), 0  ;;  %s9902_s30 = smov (!%p28_p0, %s30_s30), %s8012_s27 }
   0x7   : > { %p307_p3 = pnand %p4435_p1, %p306_p2  ;;  %p32_p4 = scmp.ge.s32.totalorder %s9902_s30, 2 }
   0x8   : > { %v4446_v0 = vld [vmem:[%s9890_s3 + $0x80] sm:$0xff] (!%p307_p3)  ;;  %v4447_v1 = vld [vmem:[%s9890_s3 + $0x88] sm:$0xff] (!%p307_p3)  ;;  %p382_p5 = scmp.lt.s32.totalorder (!%p307_p3), %s8004_s25, 1  ;;  %p384_p6 = scmp.lt.s32.totalorder (!%p307_p3), %s8000_s24, 9  ;;  %v4448_v5 = vld [vmem:[%s9890_s3 + $0x90] sm:$0xff] (!%p307_p3) }
   0x9   : > { %s9904_s30 = smov (%p32_p4, %s9902_s30), 0  ;;  %310 = sbr.rel (%p307_p3) target bundleno = 697 (0x2b9), region = 40 }
   0xa   : > { %v4702_v2 = vld [vmem:[%s9890_s3 + $0x680] sm:$0xff] (!%p307_p3)  ;;  %v6845_v3 = vpack.c.bf16 (!%p307_p3), %v4447_v1, %v4446_v0  ;;  %v4703_v4 = vld [vmem:[%s9890_s3 + $0x688] sm:$0xff] (!%p307_p3)  ;;  %v4449_v6 = vld [vmem:[%s9890_s3 + $0x98] sm:$0xff] (!%p307_p3)  ;;  %s391_s20 = sadd.s32 (!%p307_p3), 1, %s8000_s24  ;;  %s402_s10 = sadd.s32 (!%p307_p3), 2, %s8000_s24 }
   0xb   : > { %v7261_v7 = vpack.c.bf16 (!%p307_p3), %v4703_v4, %v4702_v2  ;;  %v6849_v8 = vpack.c.bf16 (!%p307_p3), %v4449_v6, %v4448_v5  ;;  %v4704_v9 = vld [vmem:[%s9890_s3 + $0x690] sm:$0xff] (!%p307_p3)  ;;  %v4705_v10 = vld [vmem:[%s9890_s3 + $0x698] sm:$0xff] (!%p307_p3)  ;;  %v4450_v11 = vld [vmem:[%s9890_s3 + $0xa0] sm:$0xff] (!%p307_p3)  ;;  %p394_p7 = scmp.lt.s32.totalorder (!%p307_p3), %s391_s20, 9  ;;  %p405_p8 = scmp.lt.s32.totalorder (!%p307_p3), %s402_s10, 9 }
   0xc   : > { %6846 = vmatprep.subr.bf16.mxu1 (!%p307_p3), %v6845_v3  ;;  %v7265_v12 = vpack.c.bf16 (!%p307_p3), %v4705_v10, %v4704_v9  ;;  %v4451_v13 = vld [vmem:[%s9890_s3 + $0xa8] sm:$0xff] (!%p307_p3)  ;;  %v4706_v14 = vld [vmem:[%s9890_s3 + $0x6a0] sm:$0xff] (!%p307_p3)  ;;  %v4452_v18 = vld [vmem:[%s9890_s3 + $0xb0] sm:$0xff] (!%p307_p3)  ;;  %p415_p9 = scmp.lt.s32.totalorder (!%p307_p3), %s8000_s24, 7 }
   0xd   : > { %v4707_v15 = vld [vmem:[%s9890_s3 + $0x6a8] sm:$0xff] (!%p307_p3)  ;;  %7262 = vmatprep.subr.bf16.mxu0 (!%p307_p3), %v7261_v7  ;;  %6848 = vmatpush3.bf16.msra.mxu1 (!%p307_p3), %v6845_v3  ;;  %v6853_v16 = vpack.c.bf16 (!%p307_p3), %v4451_v13, %v4450_v11  ;;  %v4453_v19 = vld [vmem:[%s9890_s3 + $0xb8] sm:$0xff] (!%p307_p3)  ;;  %v4708_v20 = vld [vmem:[%s9890_s3 + $0x6b0] sm:$0xff] (!%p307_p3) }
   0xe   : > { %7264 = vmatpush3.bf16.msra.mxu0 (!%p307_p3), %v7261_v7  ;;  %6850 = vmatprep.subr.bf16.mxu1 (!%p307_p3), %v6849_v8  ;;  %v7269_v17 = vpack.c.bf16 (!%p307_p3), %v4707_v15, %v4706_v14  ;;  %v4709_v21 = vld [vmem:[%s9890_s3 + $0x6b8] sm:$0xff] (!%p307_p3)  ;;  %v6857_v22 = vpack.c.bf16 (!%p307_p3), %v4453_v19, %v4452_v18  ;;  %v4454_v24 = vld [vmem:[%s9890_s3 + $0xc0] sm:$0xff] (!%p307_p3)  ;;  %v4455_v25 = vld [vmem:[%s9890_s3 + $0xc8] sm:$0xff] (!%p307_p3) }
   0xf   : > { %7266 = vmatprep.subr.bf16.mxu0 (!%p307_p3), %v7265_v12  ;;  %v7273_v23 = vpack.c.bf16 (!%p307_p3), %v4709_v21, %v4708_v20  ;;  %v4710_v27 = vld [vmem:[%s9890_s3 + $0x6c0] sm:$0xff] (!%p307_p3)  ;;  %v4711_v28 = vld [vmem:[%s9890_s3 + $0x6c8] sm:$0xff] (!%p307_p3)  ;;  %v6861_v29 = vpack.c.bf16 (!%p307_p3), %v4455_v25, %v4454_v24  ;;  %v4456_v32 = vld [vmem:[%s9890_s3 + $0xd0] sm:$0xff] (!%p307_p3) }
  0x10   : > { %s9906_s25 = smov (!%p382_p5, %s8004_s25), 1  ;;  %s9908_s20 = smov (!%p394_p7, %s391_s20), 9  ;;  %v7277_v31 = vpack.c.bf16 %v4711_v28, %v4710_v27  ;;  %v4457_v33 = vld [vmem:[%s9890_s3 + $0xd8] sm:$0xff]  ;;  %v4712_v34 = vld [vmem:[%s9890_s3 + $0x6d0] sm:$0xff]  ;;  %v4458_v38 = vld [vmem:[%s9890_s3 + $0xe0] sm:$0xff] }
  0x11   : > { %s385_s17 = scalar_select %p384_p6, %s8000_s24, 9  ;;  %6852 = vmatpush3.bf16.msra.mxu1 %v6849_v8  ;;  %v4713_v35 = vld [vmem:[%s9890_s3 + $0x6d8] sm:$0xff]  ;;  %v6865_v36 = vpack.c.bf16 %v4457_v33, %v4456_v32  ;;  %v4459_v39 = vld [vmem:[%s9890_s3 + $0xe8] sm:$0xff]  ;;  %v4714_v40 = vld [vmem:[%s9890_s3 + $0x6e0] sm:$0xff] }
  0x12   : > { %s8138_s18 = smul.u32 200, %s9906_s25  ;;  %7268 = vmatpush3.bf16.msra.mxu0 %v7265_v12  ;;  %6854 = vmatprep.subr.bf16.mxu1 %v6853_v16  ;;  %v7281_v37 = vpack.c.bf16 %v4713_v35, %v4712_v34  ;;  %v4715_v41 = vld [vmem:[%s9890_s3 + $0x6e8] sm:$0xff]  ;;  %v6869_v42 = vpack.c.bf16 %v4459_v39, %v4458_v38  ;;  %v4460_v44 = vld [vmem:[%s9890_s3 + $0xf0] sm:$0xff]  ;;  %v4461_v45 = vld [vmem:[%s9890_s3 + $0xf8] sm:$0xff]  ;;  %s9910_s10 = smov (!%p405_p8, %s402_s10), 9 }
  0x13   : > { %s7933_s19 = smul.u32 20, %s385_s17  ;;  %7270 = vmatprep.subr.bf16.mxu0 %v7269_v17  ;;  %v7285_v43 = vpack.c.bf16 %v4715_v41, %v4714_v40  ;;  %v4716_v46 = vld [vmem:[%s9890_s3 + $0x6f0] sm:$0xff]  ;;  %v4717_v47 = vld [vmem:[%s9890_s3 + $0x6f8] sm:$0xff]  ;;  %v6873_v48 = vpack.c.bf16 %v4461_v45, %v4460_v44  ;;  %v446_v50 = vld [vmem:[%s9890_s3] sm:$0xff]  ;;  %s9912_s24 = smov (!%p415_p9, %s8000_s24), 7 }
  0x14   : > { %s7935_s15 = smul.u32 20, %s9908_s20  ;;  %v7289_v49 = vpack.c.bf16 %v4717_v47, %v4716_v46  ;;  %v447_v51 = vld [vmem:[%s9890_s3 + $0x8] sm:$0xff]  ;;  %v4726_v52 = vld [vmem:[%s9890_s3 + $0x700] sm:$0xff]  ;;  %v448_v56 = vld [vmem:[%s9890_s3 + $0x10] sm:$0xff]  ;;  %s4440_s9 = sshll.u32 %s9906_s25, 6 }
  0x15   : > { %s388_s13 = sadd.s32 %s8138_s18, %s7933_s19  ;;  %6856 = vmatpush3.bf16.msra.mxu1 %v6853_v16  ;;  %v4727_v53 = vld [vmem:[%s9890_s3 + $0x708] sm:$0xff]  ;;  %v6877_v54 = vpack.c.bf16 %v447_v51, %v446_v50  ;;  %v449_v57 = vld [vmem:[%s9890_s3 + $0x18] sm:$0xff]  ;;  %v4728_v58 = vld [vmem:[%s9890_s3 + $0x710] sm:$0xff]  ;;  %s7936_s11 = smul.u32 20, %s9910_s10 }
  0x16   : > { %s4436_s14 = sshll.u32 %s388_s13, 3  ;;  %s398_s20 = sadd.s32 %s7935_s15, %s8138_s18  ;;  %7272 = vmatpush3.bf16.msra.mxu0 %v7269_v17  ;;  %6858 = vmatprep.subr.bf16.mxu1 %v6857_v22  ;;  %v7293_v55 = vpack.c.bf16 %v4727_v53, %v4726_v52  ;;  %v4729_v59 = vld [vmem:[%s9890_s3 + $0x718] sm:$0xff]  ;;  %v6881_v62 = vpack.c.bf16 %v449_v57, %v448_v56  ;;  %v450_v0 = vld [vmem:[%s9890_s3 + $0x20] sm:$0xff]  ;;  %v451_v1 = vld [vmem:[%s9890_s3 + $0x28] sm:$0xff] }
  0x17   : > { %s8156_s21 = scalar_lea.vmem %s9887_s0, %s4436_s14  ;;  %s4437_s13 = sshll.u32 %s398_s20, 3  ;;  %7274 = vmatprep.subr.bf16.mxu0 %v7273_v23  ;;  %v7297_v63 = vpack.c.bf16 %v4729_v59, %v4728_v58  ;;  %v4730_v2 = vld [vmem:[%s9890_s3 + $0x720] sm:$0xff]  ;;  %v4731_v3 = vld [vmem:[%s9890_s3 + $0x728] sm:$0xff]  ;;  %v6885_v7 = vpack.c.bf16 %v451_v1, %v450_v0  ;;  %v452_v10 = vld [vmem:[%s9890_s3 + $0x30] sm:$0xff] }
  0x18   : > { %v462_v26 = vld [vmem:[%s8156_s21 + $0x1] sm:$0xff]  ;;  %s8175_s17 = scalar_lea.vmem %s9888_s1, %s4437_s13  ;;  %v8239_v60 = vld [vmem:[%s8156_s21 + $0x11] sm:$0xff]  ;;  %v7301_v9 = vpack.c.bf16 %v4731_v3, %v4730_v2  ;;  %s409_s8 = sadd.s32 %s7936_s11, %s8138_s18 }
  0x19   : > { %5689 = vmatprep.mubr.f32.mxu1 %v462_v26  ;;  %v4694_v30 = vld [vmem:[%s8175_s17 + $0x11] sm:$0xff]  ;;  %6860 = vmatpush3.bf16.msra.mxu1 %v6857_v22  ;;  %v8242_v61 = vld [vmem:[%s8175_s17 + $0x21] sm:$0xff]  ;;  %s4438_s18 = sshll.u32 %s409_s8, 3  ;;  %s4442_s15 = sshll.u32 %s9906_s25, 3 }
  0x1a   : > { %6261 = vmatprep.mubr.f32.mxu0 %v4694_v30  ;;  %7276 = vmatpush3.bf16.msra.mxu0 %v7273_v23  ;;  %v8258_v4 = vld [vmem:[%s8156_s21 + $0x21] sm:$0xff]  ;;  %v8262_v5 = vld [vmem:[%s8175_s17 + $0x31] sm:$0xff]  ;;  %s8849_s22 = scalar_lea.vmem %s9889_s2, %s4438_s18  ;;  %s427_s10 = sadd.s32 %s4442_s15, %s9912_s24 }
  0x1b   : > { %6862 = vmatprep.subr.bf16.mxu1 %v6861_v29  ;;  %7278 = vmatprep.subr.bf16.mxu0 %v7277_v31  ;;  %v8265_v6 = vld [vmem:[%s8156_s21 + $0x31] sm:$0xff]  ;;  %v8268_v8 = vld [vmem:[%s8175_s17 + $0x41] sm:$0xff]  ;;  %s4443_s23 = sshll.u32 %s427_s10, 3 }
  0x1c   : > { %v453_v11 = vld [vmem:[%s9890_s3 + $0x38] sm:$0xff]  ;;  %v4732_v12 = vld [vmem:[%s9890_s3 + $0x730] sm:$0xff]  ;;  %v8286_v14 = vld [vmem:[%s8156_s21 + $0x41] sm:$0xff]  ;;  %s429_s19 = scalar_lea.vmem %s9893_s6, %s4443_s23 }
  0x1d   : > { %6864 = vmatpush3.bf16.msra.mxu1 %v6861_v29  ;;  %v4733_v13 = vld [vmem:[%s9890_s3 + $0x738] sm:$0xff]  ;;  %v6889_v17 = vpack.c.bf16 %v453_v11, %v452_v10  ;;  %v8296_v18 = vld [vmem:[%s8175_s17 + $0x61] sm:$0xff]  ;;  %v456_v30 = vld [vmem:[%s9890_s3 + $0x50] sm:$0xff] }
  0x1e   : > { %7280 = vmatpush3.bf16.msra.mxu0 %v7277_v31  ;;  %6866 = vmatprep.subr.bf16.mxu1 %v6865_v36  ;;  %v8290_v15 = vld [vmem:[%s8175_s17 + $0x51] sm:$0xff]  ;;  %v7305_v19 = vpack.c.bf16 %v4733_v13, %v4732_v12  ;;  %v454_v20 = vld [vmem:[%s9890_s3 + $0x40] sm:$0xff]  ;;  %v455_v21 = vld [vmem:[%s9890_s3 + $0x48] sm:$0xff] }
  0x1f   : > { %7282 = vmatprep.subr.bf16.mxu0 %v7281_v37  ;;  %v8293_v16 = vld [vmem:[%s8156_s21 + $0x51] sm:$0xff]  ;;  %v4734_v22 = vld [vmem:[%s9890_s3 + $0x740] sm:$0xff]  ;;  %v4735_v23 = vld [vmem:[%s9890_s3 + $0x748] sm:$0xff]  ;;  %v6893_v27 = vpack.c.bf16 %v455_v21, %v454_v20 }
  0x20   : > { %v8314_v24 = vld [vmem:[%s8156_s21 + $0x61] sm:$0xff]  ;;  %v8318_v25 = vld [vmem:[%s8175_s17 + $0x71] sm:$0xff]  ;;  %v7309_v29 = vpack.c.bf16 %v4735_v23, %v4734_v22 }
  0x21   : > { %6868 = vmatpush3.bf16.msra.mxu1 %v6865_v36  ;;  %v8321_v26 = vld [vmem:[%s8156_s21 + $0x71] sm:$0xff]  ;;  %v8324_v28 = vld [vmem:[%s8175_s17 + $0x81] sm:$0xff] }
  0x22   : > { %7284 = vmatpush3.bf16.msra.mxu0 %v7281_v37  ;;  %6870 = vmatprep.subr.bf16.mxu1 %v6869_v42  ;;  %v457_v31 = vld [vmem:[%s9890_s3 + $0x58] sm:$0xff]  ;;  %v4736_v32 = vld [vmem:[%s9890_s3 + $0x750] sm:$0xff]  ;;  %v438_v34 = vld [vmem:[%s8156_s21] sm:$0xff] }
  0x23   : > { %7286 = vmatprep.subr.bf16.mxu0 %v7285_v43  ;;  %v4737_v33 = vld [vmem:[%s9890_s3 + $0x758] sm:$0xff]  ;;  %v6897_v36 = vpack.c.bf16 %v457_v31, %v456_v30  ;;  %v458_v38 = vld [vmem:[%s9890_s3 + $0x60] sm:$0xff]  ;;  %v459_v39 = vld [vmem:[%s9890_s3 + $0x68] sm:$0xff] }
  0x24   : > { %v4718_v35 = vld [vmem:[%s8175_s17 + $0x12] sm:$0xff]  ;;  %v7313_v37 = vpack.c.bf16 %v4737_v33, %v4736_v32  ;;  %v4738_v40 = vld [vmem:[%s9890_s3 + $0x760] sm:$0xff]  ;;  %v4739_v41 = vld [vmem:[%s9890_s3 + $0x768] sm:$0xff] }
  0x25   : > { %6872 = vmatpush3.bf16.msra.mxu1 %v6869_v42  ;;  %v6901_v42 = vpack.c.bf16 %v459_v39, %v458_v38  ;;  %v460_v44 = vld [vmem:[%s9890_s3 + $0x70] sm:$0xff]  ;;  %v461_v45 = vld [vmem:[%s9890_s3 + $0x78] sm:$0xff]  ;;  %v4462_v50 = vld [vmem:[%s9890_s3 + $0x100] sm:$0xff] }
  0x26   : > { %7288 = vmatpush3.bf16.msra.mxu0 %v7285_v43  ;;  %6874 = vmatprep.subr.bf16.mxu1 %v6873_v48  ;;  %v7317_v43 = vpack.c.bf16 %v4739_v41, %v4738_v40  ;;  %v4740_v46 = vld [vmem:[%s9890_s3 + $0x770] sm:$0xff]  ;;  %v4741_v47 = vld [vmem:[%s9890_s3 + $0x778] sm:$0xff]  ;;  %v4463_v51 = vld [vmem:[%s9890_s3 + $0x108] sm:$0xff] }
  0x27   : > { %7290 = vmatprep.subr.bf16.mxu0 %v7289_v49  ;;  %v4750_v52 = vld [vmem:[%s9890_s3 + $0x780] sm:$0xff]  ;;  %v4751_v53 = vld [vmem:[%s9890_s3 + $0x788] sm:$0xff]  ;;  %v4464_v56 = vld [vmem:[%s9890_s3 + $0x110] sm:$0xff] }
  0x28   : > { %v4465_v57 = vld [vmem:[%s9890_s3 + $0x118] sm:$0xff]  ;;  %v4752_v58 = vld [vmem:[%s9890_s3 + $0x790] sm:$0xff]  ;;  %v4466_v2 = vld [vmem:[%s9890_s3 + $0x120] sm:$0xff] }
  0x29   : > { %6876 = vmatpush3.bf16.msra.mxu1 %v6873_v48  ;;  %v6905_v48 = vpack.c.bf16 %v461_v45, %v460_v44  ;;  %v4753_v59 = vld [vmem:[%s9890_s3 + $0x798] sm:$0xff]  ;;  %v6913_v0 = vpack.c.bf16 %v4465_v57, %v4464_v56  ;;  %v4467_v3 = vld [vmem:[%s9890_s3 + $0x128] sm:$0xff]  ;;  %v8412_v10 = vld [vmem:[%s8156_s21 + $0x20] sm:$0xff] }
  0x2a   : > { %7292 = vmatpush3.bf16.msra.mxu0 %v7289_v49  ;;  %6878 = vmatprep.subr.bf16.mxu1 %v6877_v54  ;;  %v7321_v49 = vpack.c.bf16 %v4741_v47, %v4740_v46  ;;  %v7329_v1 = vpack.c.bf16 %v4753_v59, %v4752_v58  ;;  %v8416_v11 = vld [vmem:[%s8175_s17 + $0x32] sm:$0xff]  ;;  %v6917_v13 = vpack.c.bf16 %v4467_v3, %v4466_v2  ;;  %v8450_v32 = vld [vmem:[%s8175_s17 + $0x62] sm:$0xff] }
  0x2b   : > { %7294 = vmatprep.subr.bf16.mxu0 %v7293_v55  ;;  %v8419_v12 = vld [vmem:[%s8156_s21 + $0x30] sm:$0xff]  ;;  %v4469_v21 = vld [vmem:[%s9890_s3 + $0x138] sm:$0xff]  ;;  %v8468_v38 = vld [vmem:[%s8156_s21 + $0x60] sm:$0xff] }
  0x2c   : > { %5690 = vmatmul.mubr.f32.vlgmr.msra.gmra.mrb[0].mxu1 %v8239_v60  ;;  %v4468_v20 = vld [vmem:[%s9890_s3 + $0x130] sm:$0xff]  ;;  %v4757_v23 = vld [vmem:[%s9890_s3 + $0x7b8] sm:$0xff] }
  0x2d   : > { %6880 = vmatpush3.bf16.msra.mxu1 %v6877_v54  ;;  %6262 = vmatmul.mubr.f32.vlgmr.msra.gmra.mrb[0].mxu0 %v8242_v61  ;;  %v6909_v54 = vpack.c.bf16 %v4463_v51, %v4462_v50  ;;  %v4756_v22 = vld [vmem:[%s9890_s3 + $0x7b0] sm:$0xff]  ;;  %v6921_v31 = vpack.c.bf16 %v4469_v21, %v4468_v20  ;;  %v4473_v45 = vld [vmem:[%s9890_s3 + $0x158] sm:$0xff] }
  0x2e   : > { %7296 = vmatpush3.bf16.msra.mxu0 %v7293_v55  ;;  %6882 = vmatprep.subr.bf16.mxu1 %v6881_v62  ;;  %v7325_v55 = vpack.c.bf16 %v4751_v53, %v4750_v52  ;;  %v8447_v30 = vld [vmem:[%s8156_s21 + $0x50] sm:$0xff]  ;;  %v7337_v33 = vpack.c.bf16 %v4757_v23, %v4756_v22  ;;  %v4761_v47 = vld [vmem:[%s9890_s3 + $0x7d8] sm:$0xff]  ;;  %v4474_v52 = vld [vmem:[%s9890_s3 + $0x160] sm:$0xff] }
  0x2f   : > { %7298 = vmatprep.subr.bf16.mxu0 %v7297_v63  ;;  %5692 = vmatprep.mubr.f32.mxu1 %v8258_v4  ;;  %v8472_v39 = vld [vmem:[%s8175_s17 + $0x72] sm:$0xff]  ;;  %v4475_v53 = vld [vmem:[%s9890_s3 + $0x168] sm:$0xff] }
  0x30   : > { %6264 = vmatprep.mubr.f32.mxu0 %v8262_v5  ;;  %5693 = vmatmul.mubr.f32.gmra.mrb[2].mxu1 %v8265_v6  ;;  %v8475_v40 = vld [vmem:[%s8156_s21 + $0x70] sm:$0xff]  ;;  %v6933_v56 = vpack.c.bf16 %v4475_v53, %v4474_v52  ;;  %v4477_v59 = vld [vmem:[%s9890_s3 + $0x178] sm:$0xff] }
  0x31   : > { %6884 = vmatpush3.bf16.msra.mxu1 %v6881_v62  ;;  %6265 = vmatmul.mubr.f32.gmra.mrb[2].mxu0 %v8268_v8  ;;  %v8393_v62 = vld [vmem:[%s8156_s21 + $0x10] sm:$0xff]  ;;  %v4489_v23 = vld [vmem:[%s9890_s3 + $0x198] sm:$0xff] }
  0x32   : > { %7300 = vmatpush3.bf16.msra.mxu0 %v7297_v63  ;;  %6886 = vmatprep.subr.bf16.mxu1 %v6885_v7  ;;  %v8396_v63 = vld [vmem:[%s8175_s17 + $0x22] sm:$0xff]  ;;  %v4472_v44 = vld [vmem:[%s9890_s3 + $0x150] sm:$0xff]  ;;  %v4493_v53 = vld [vmem:[%s9890_s3 + $0x1b8] sm:$0xff] }
  0x33   : > { %7302 = vmatprep.subr.bf16.mxu0 %v7301_v9  ;;  %5695 = vmatprep.mubr.f32.mxu1 %v8286_v14  ;;  %v4760_v46 = vld [vmem:[%s9890_s3 + $0x7d0] sm:$0xff]  ;;  %v6929_v50 = vpack.c.bf16 %v4473_v45, %v4472_v44  ;;  %v4778_v44 = vld [vmem:[%s9890_s3 + $0x820] sm:$0xff]  ;;  %v4779_v45 = vld [vmem:[%s9890_s3 + $0x828] sm:$0xff] }
  0x34   : > { %6267 = vmatprep.mubr.f32.mxu0 %v8290_v15  ;;  %5696 = vmatmul.mubr.f32.gmra.mrb[4].mxu1 %v8293_v16  ;;  %v7345_v51 = vpack.c.bf16 %v4761_v47, %v4760_v46  ;;  %v4476_v58 = vld [vmem:[%s9890_s3 + $0x170] sm:$0xff]  ;;  %v8564_v46 = vld [vmem:[%s8156_s21 + $0x22] sm:$0xff] }
  0x35   : > { %6888 = vmatpush3.bf16.msra.mxu1 %v6885_v7  ;;  %6268 = vmatmul.mubr.f32.gmra.mrb[4].mxu0 %v8296_v18  ;;  %v4754_v7 = vld [vmem:[%s9890_s3 + $0x7a0] sm:$0xff]  ;;  %v6937_v2 = vpack.c.bf16 %v4477_v59, %v4476_v58  ;;  %v4488_v22 = vld [vmem:[%s9890_s3 + $0x190] sm:$0xff] }
  0x36   : > { %7304 = vmatpush3.bf16.msra.mxu0 %v7301_v9  ;;  %6890 = vmatprep.subr.bf16.mxu1 %v6889_v17  ;;  %v4755_v9 = vld [vmem:[%s9890_s3 + $0x7a8] sm:$0xff]  ;;  %v4744_v47 = vld [vmem:[%s8175_s17 + $0x40] sm:$0xff]  ;;  %v4492_v52 = vld [vmem:[%s9890_s3 + $0x1b0] sm:$0xff] }
  0x37   : > { %7306 = vmatprep.subr.bf16.mxu0 %v7305_v19  ;;  %5698 = vmatprep.mubr.f32.mxu1 %v8314_v24  ;;  %v8590_v58 = vld [vmem:[%s8156_s21 + $0x52] sm:$0xff]  ;;  %v6953_v59 = vpack.c.bf16 %v4493_v53, %v4492_v52 }
  0x38   : > { %6270 = vmatprep.mubr.f32.mxu0 %v8318_v25  ;;  %5699 = vmatmul.mubr.f32.gmra.mrb[6].mxu1 %v8321_v26  ;;  %v4788_v52 = vld [vmem:[%s9890_s3 + $0x870] sm:$0xff] }
  0x39   : > { %6892 = vmatpush3.bf16.msra.mxu1 %v6889_v17  ;;  %6271 = vmatmul.mubr.f32.gmra.mrb[6].mxu0 %v8324_v28  ;;  %v8422_v17 = vld [vmem:[%s8175_s17 + $0x42] sm:$0xff] }
  0x3a   : > { %7308 = vmatpush3.bf16.msra.mxu0 %v7305_v19  ;;  %6894 = vmatprep.subr.bf16.mxu1 %v6893_v27  ;;  %v7333_v19 = vpack.c.bf16 %v4755_v9, %v4754_v7  ;;  %v4486_v7 = vld [vmem:[%s9890_s3 + $0x180] sm:$0xff]  ;;  %v4487_v9 = vld [vmem:[%s9890_s3 + $0x188] sm:$0xff] }
  0x3b   : > { %7310 = vmatprep.subr.bf16.mxu0 %v7309_v29  ;;  %5733 = vmatprep.mubr.f32.mxu1 %v438_v34  ;;  %v4470_v34 = vld [vmem:[%s9890_s3 + $0x140] sm:$0xff]  ;;  %v6941_v20 = vpack.c.bf16 %v4487_v9, %v4486_v7  ;;  %v4783_v9 = vld [vmem:[%s9890_s3 + $0x848] sm:$0xff] }
  0x3c   : > { %6305 = vmatprep.mubr.f32.mxu0 %v4718_v35  ;;  %v4471_v35 = vld [vmem:[%s9890_s3 + $0x148] sm:$0xff]  ;;  %v4782_v7 = vld [vmem:[%s9890_s3 + $0x840] sm:$0xff] }
  0x3d   : > { %6896 = vmatpush3.bf16.msra.mxu1 %v6893_v27  ;;  %v8440_v27 = vld [vmem:[%s8156_s21 + $0x40] sm:$0xff]  ;;  %v6925_v41 = vpack.c.bf16 %v4471_v35, %v4470_v34  ;;  %v8547_v34 = vld [vmem:[%s8156_s21 + $0x12] sm:$0xff] }
  0x3e   : > { %7312 = vmatpush3.bf16.msra.mxu0 %v7309_v29  ;;  %6898 = vmatprep.subr.bf16.mxu1 %v6897_v36  ;;  %v8444_v29 = vld [vmem:[%s8175_s17 + $0x52] sm:$0xff] }
  0x3f   : > { %7314 = vmatprep.subr.bf16.mxu0 %v7313_v37  ;;  %v4743_v35 = vld [vmem:[%s8175_s17 + $0x30] sm:$0xff] }
  0x41   : > { %6900 = vmatpush3.bf16.msra.mxu1 %v6897_v36  ;;  %v4758_v36 = vld [vmem:[%s9890_s3 + $0x7c0] sm:$0xff] }
  0x42   : > { %7316 = vmatpush3.bf16.msra.mxu0 %v7313_v37  ;;  %6902 = vmatprep.subr.bf16.mxu1 %v6901_v42  ;;  %v4759_v37 = vld [vmem:[%s9890_s3 + $0x7c8] sm:$0xff] }
  0x43   : > { %7318 = vmatprep.subr.bf16.mxu0 %v7317_v43 }
  0x45   : > { %6904 = vmatpush3.bf16.msra.mxu1 %v6901_v42  ;;  %v8478_v42 = vld [vmem:[%s8175_s17 + $0x82] sm:$0xff] }
  0x46   : > { %7320 = vmatpush3.bf16.msra.mxu0 %v7317_v43  ;;  %6906 = vmatprep.subr.bf16.mxu1 %v6905_v48  ;;  %v7341_v43 = vpack.c.bf16 %v4759_v37, %v4758_v36  ;;  %v6945_v36 = vpack.c.bf16 %v4489_v23, %v4488_v22  ;;  %v4749_v22 = vld [vmem:[%s8175_s17 + $0x90] sm:$0xff]  ;;  %v7373_v23 = vpack.c.bf16 %v4783_v9, %v4782_v7  ;;  %v4513_v7 = vld [vmem:[%s9890_s3 + $0x218] sm:$0xff] }
  0x47   : > { %7322 = vmatprep.subr.bf16.mxu0 %v7321_v49  ;;  %v4800_v9 = vld [vmem:[%s9890_s3 + $0x890] sm:$0xff] }
  0x49   : > { %6908 = vmatpush3.bf16.msra.mxu1 %v6905_v48  ;;  %v697_v48 = vld [vmem:[%s8156_s21 + $0x2] sm:$0xff] }
  0x4a   : > { %7324 = vmatpush3.bf16.msra.mxu0 %v7321_v49  ;;  %6910 = vmatprep.subr.bf16.mxu1 %v6909_v54  ;;  %v4742_v49 = vld [vmem:[%s8175_s17 + $0x20] sm:$0xff] }
  0x4b   : > { %7326 = vmatprep.subr.bf16.mxu0 %v7325_v55 }
  0x4c   : > { %5734 = vmatmul.mubr.f32.vlgmr.msra.gmra.mrb[0].mxu1 %v8393_v62 }
  0x4d   : > { %6912 = vmatpush3.bf16.msra.mxu1 %v6909_v54  ;;  %6306 = vmatmul.mubr.f32.vlgmr.msra.gmra.mrb[0].mxu0 %v8396_v63  ;;  %v4762_v54 = vld [vmem:[%s9890_s3 + $0x7e0] sm:$0xff] }
  0x4e   : > { %7328 = vmatpush3.bf16.msra.mxu0 %v7325_v55  ;;  %6914 = vmatprep.subr.bf16.mxu1 %v6913_v0  ;;  %v4763_v55 = vld [vmem:[%s9890_s3 + $0x7e8] sm:$0xff] }
  0x4f   : > { %7330 = vmatprep.subr.bf16.mxu0 %v7329_v1  ;;  %5736 = vmatprep.mubr.f32.mxu1 %v8412_v10  ;;  %v7349_v57 = vpack.c.bf16 %v4763_v55, %v4762_v54  ;;  %v4780_v54 = vld [vmem:[%s9890_s3 + $0x830] sm:$0xff]  ;;  %v4781_v55 = vld [vmem:[%s9890_s3 + $0x838] sm:$0xff] }
  0x50   : > { %6308 = vmatprep.mubr.f32.mxu0 %v8416_v11  ;;  %5737 = vmatmul.mubr.f32.gmra.mrb[2].mxu1 %v8419_v12 }
  0x51   : > { %6916 = vmatpush3.bf16.msra.mxu1 %v6913_v0  ;;  %6309 = vmatmul.mubr.f32.gmra.mrb[2].mxu0 %v8422_v17  ;;  %v4764_v0 = vld [vmem:[%s9890_s3 + $0x7f0] sm:$0xff] }
  0x52   : > { %7332 = vmatpush3.bf16.msra.mxu0 %v7329_v1  ;;  %6918 = vmatprep.subr.bf16.mxu1 %v6917_v13  ;;  %v4765_v1 = vld [vmem:[%s9890_s3 + $0x7f8] sm:$0xff] }
  0x53   : > { %7334 = vmatprep.subr.bf16.mxu0 %v7333_v19  ;;  %5739 = vmatprep.mubr.f32.mxu1 %v8440_v27  ;;  %v7353_v3 = vpack.c.bf16 %v4765_v1, %v4764_v0  ;;  %v4747_v0 = vld [vmem:[%s8175_s17 + $0x70] sm:$0xff]  ;;  %v7369_v1 = vpack.c.bf16 %v4781_v55, %v4780_v54  ;;  %v4510_v55 = vld [vmem:[%s9890_s3 + $0x200] sm:$0xff] }
  0x54   : > { %6311 = vmatprep.mubr.f32.mxu0 %v8444_v29  ;;  %5740 = vmatmul.mubr.f32.gmra.mrb[4].mxu1 %v8447_v30 }
  0x55   : > { %6920 = vmatpush3.bf16.msra.mxu1 %v6917_v13  ;;  %6312 = vmatmul.mubr.f32.gmra.mrb[4].mxu0 %v8450_v32  ;;  %v4774_v13 = vld [vmem:[%s9890_s3 + $0x800] sm:$0xff] }
  0x56   : > { %7336 = vmatpush3.bf16.msra.mxu0 %v7333_v19  ;;  %6922 = vmatprep.subr.bf16.mxu1 %v6921_v31  ;;  %v4775_v19 = vld [vmem:[%s9890_s3 + $0x808] sm:$0xff] }
  0x57   : > { %7338 = vmatprep.subr.bf16.mxu0 %v7337_v33  ;;  %5742 = vmatprep.mubr.f32.mxu1 %v8468_v38  ;;  %v7357_v21 = vpack.c.bf16 %v4775_v19, %v4774_v13  ;;  %v8608_v13 = vld [vmem:[%s8156_s21 + $0x62] sm:$0xff] }
  0x58   : > { %6314 = vmatprep.mubr.f32.mxu0 %v8472_v39  ;;  %5743 = vmatmul.mubr.f32.gmra.mrb[6].mxu1 %v8475_v40  ;;  %v4748_v19 = vld [vmem:[%s8175_s17 + $0x80] sm:$0xff] }
  0x59   : > { %6924 = vmatpush3.bf16.msra.mxu1 %v6921_v31  ;;  %6315 = vmatmul.mubr.f32.gmra.mrb[6].mxu0 %v8478_v42  ;;  %v4776_v31 = vld [vmem:[%s9890_s3 + $0x810] sm:$0xff] }
  0x5a   : > { %7340 = vmatpush3.bf16.msra.mxu0 %v7337_v33  ;;  %6926 = vmatprep.subr.bf16.mxu1 %v6925_v41  ;;  %v4777_v33 = vld [vmem:[%s9890_s3 + $0x818] sm:$0xff] }
  0x5b   : > { %7342 = vmatprep.subr.bf16.mxu0 %v7341_v43  ;;  %5777 = vmatprep.mubr.f32.mxu1 %v697_v48  ;;  %v7361_v37 = vpack.c.bf16 %v4777_v33, %v4776_v31  ;;  %v8568_v48 = vld [vmem:[%s8156_s21 + $0x32] sm:$0xff] }
  0x5c   : > { %6349 = vmatprep.mubr.f32.mxu0 %v4742_v49  ;;  %v4496_v31 = vld [vmem:[%s9890_s3 + $0x1d0] sm:$0xff]  ;;  %v4497_v33 = vld [vmem:[%s9890_s3 + $0x1d8] sm:$0xff] }
  0x5d   : > { %6928 = vmatpush3.bf16.msra.mxu1 %v6925_v41  ;;  %v4490_v41 = vld [vmem:[%s9890_s3 + $0x1a0] sm:$0xff] }
  0x5e   : > { %7344 = vmatpush3.bf16.msra.mxu0 %v7341_v43  ;;  %6930 = vmatprep.subr.bf16.mxu1 %v6929_v50  ;;  %v4491_v43 = vld [vmem:[%s9890_s3 + $0x1a8] sm:$0xff] }
  0x5f   : > { %7346 = vmatprep.subr.bf16.mxu0 %v7345_v51  ;;  %v6949_v49 = vpack.c.bf16 %v4491_v43, %v4490_v41  ;;  %v4498_v43 = vld [vmem:[%s9890_s3 + $0x1e0] sm:$0xff] }
  0x61   : > { %6932 = vmatpush3.bf16.msra.mxu1 %v6929_v50  ;;  %v4745_v50 = vld [vmem:[%s8175_s17 + $0x50] sm:$0xff] }
  0x62   : > { %7348 = vmatpush3.bf16.msra.mxu0 %v7345_v51  ;;  %6934 = vmatprep.subr.bf16.mxu1 %v6933_v56  ;;  %v7365_v51 = vpack.c.bf16 %v4779_v45, %v4778_v44  ;;  %v4499_v44 = vld [vmem:[%s9890_s3 + $0x1e8] sm:$0xff]  ;;  %v4786_v45 = vld [vmem:[%s9890_s3 + $0x860] sm:$0xff] }
  0x63   : > { %7350 = vmatprep.subr.bf16.mxu0 %v7349_v57 }
  0x65   : > { %6936 = vmatpush3.bf16.msra.mxu1 %v6933_v56  ;;  %v8586_v56 = vld [vmem:[%s8156_s21 + $0x42] sm:$0xff] }
  0x66   : > { %7352 = vmatpush3.bf16.msra.mxu0 %v7349_v57  ;;  %6938 = vmatprep.subr.bf16.mxu1 %v6937_v2  ;;  %v4746_v57 = vld [vmem:[%s8175_s17 + $0x60] sm:$0xff] }
  0x67   : > { %7354 = vmatprep.subr.bf16.mxu0 %v7353_v3 }
  0x69   : > { %6940 = vmatpush3.bf16.msra.mxu1 %v6937_v2  ;;  %v4494_v2 = vld [vmem:[%s9890_s3 + $0x1c0] sm:$0xff] }
  0x6a   : > { %7356 = vmatpush3.bf16.msra.mxu0 %v7353_v3  ;;  %6942 = vmatprep.subr.bf16.mxu1 %v6941_v20  ;;  %v4495_v3 = vld [vmem:[%s9890_s3 + $0x1c8] sm:$0xff] }
  0x6b   : > { %7358 = vmatprep.subr.bf16.mxu0 %v7357_v21 }
  0x6c   : > { %5778 = vmatmul.mubr.f32.vlgmr.msra.gmra.mrb[0].mxu1 %v8547_v34 }
  0x6d   : > { %6944 = vmatpush3.bf16.msra.mxu1 %v6941_v20  ;;  %6350 = vmatmul.mubr.f32.vlgmr.msra.gmra.mrb[0].mxu0 %v4743_v35  ;;  %v8612_v20 = vld [vmem:[%s8156_s21 + $0x72] sm:$0xff] }
  0x6e   : > { %7360 = vmatpush3.bf16.msra.mxu0 %v7357_v21  ;;  %6946 = vmatprep.subr.bf16.mxu1 %v6945_v36  ;;  %v6957_v21 = vpack.c.bf16 %v4495_v3, %v4494_v2  ;;  %v4784_v35 = vld [vmem:[%s9890_s3 + $0x850] sm:$0xff] }
  0x6f   : > { %7362 = vmatprep.subr.bf16.mxu0 %v7361_v37  ;;  %5780 = vmatprep.mubr.f32.mxu1 %v8564_v46  ;;  %v4512_v3 = vld [vmem:[%s9890_s3 + $0x210] sm:$0xff] }
  0x70   : > { %6352 = vmatprep.mubr.f32.mxu0 %v4744_v47  ;;  %5781 = vmatmul.mubr.f32.gmra.mrb[2].mxu1 %v8568_v48  ;;  %v4787_v47 = vld [vmem:[%s9890_s3 + $0x868] sm:$0xff] }
  0x71   : > { %6948 = vmatpush3.bf16.msra.mxu1 %v6945_v36  ;;  %6353 = vmatmul.mubr.f32.gmra.mrb[2].mxu0 %v4745_v50  ;;  %v4785_v36 = vld [vmem:[%s9890_s3 + $0x858] sm:$0xff]  ;;  %v7381_v50 = vpack.c.bf16 %v4787_v47, %v4786_v45  ;;  %v4518_v47 = vld [vmem:[%s9890_s3 + $0x240] sm:$0xff] }
  0x72   : > { %7364 = vmatpush3.bf16.msra.mxu0 %v7361_v37  ;;  %6950 = vmatprep.subr.bf16.mxu1 %v6949_v49  ;;  %v6961_v37 = vpack.c.bf16 %v4497_v33, %v4496_v31  ;;  %v7377_v41 = vpack.c.bf16 %v4785_v36, %v4784_v35  ;;  %v4515_v31 = vld [vmem:[%s9890_s3 + $0x228] sm:$0xff]  ;;  %v4802_v33 = vld [vmem:[%s9890_s3 + $0x8a0] sm:$0xff] }
  0x73   : > { %7366 = vmatprep.subr.bf16.mxu0 %v7365_v51  ;;  %5783 = vmatprep.mubr.f32.mxu1 %v8586_v56  ;;  %v4803_v35 = vld [vmem:[%s9890_s3 + $0x8a8] sm:$0xff] }
  0x74   : > { %6355 = vmatprep.mubr.f32.mxu0 %v4746_v57  ;;  %5784 = vmatmul.mubr.f32.gmra.mrb[4].mxu1 %v8590_v58  ;;  %v4511_v57 = vld [vmem:[%s9890_s3 + $0x208] sm:$0xff] }
  0x75   : > { %6952 = vmatpush3.bf16.msra.mxu1 %v6949_v49  ;;  %6356 = vmatmul.mubr.f32.gmra.mrb[4].mxu0 %v4747_v0  ;;  %v6965_v49 = vpack.c.bf16 %v4499_v44, %v4498_v43  ;;  %v4799_v0 = vld [vmem:[%s9890_s3 + $0x888] sm:$0xff]  ;;  %v4517_v43 = vld [vmem:[%s9890_s3 + $0x238] sm:$0xff]  ;;  %v4804_v44 = vld [vmem:[%s9890_s3 + $0x8b0] sm:$0xff] }
  0x76   : > { %7368 = vmatpush3.bf16.msra.mxu0 %v7365_v51  ;;  %6954 = vmatprep.subr.bf16.mxu1 %v6953_v59  ;;  %v4501_v51 = vld [vmem:[%s9890_s3 + $0x1f8] sm:$0xff] }
  0x77   : > { %7370 = vmatprep.subr.bf16.mxu0 %v7369_v1  ;;  %5786 = vmatprep.mubr.f32.mxu1 %v8608_v13 }
  0x78   : > { %6358 = vmatprep.mubr.f32.mxu0 %v4748_v19  ;;  %5787 = vmatmul.mubr.f32.gmra.mrb[6].mxu1 %v8612_v20  ;;  %v4801_v19 = vld [vmem:[%s9890_s3 + $0x898] sm:$0xff] }
  0x79   : > { %6956 = vmatpush3.bf16.msra.mxu1 %v6953_v59  ;;  %6359 = vmatmul.mubr.f32.gmra.mrb[6].mxu0 %v4749_v22  ;;  %v4798_v59 = vld [vmem:[%s9890_s3 + $0x880] sm:$0xff]  ;;  %v7393_v22 = vpack.c.bf16 %v4801_v19, %v4800_v9  ;;  %v4815_v19 = vld [vmem:[%s9890_s3 + $0x908] sm:$0xff] }
  0x7a   : > { %7372 = vmatpush3.bf16.msra.mxu0 %v7369_v1  ;;  %6958 = vmatprep.subr.bf16.mxu1 %v6957_v21  ;;  %v6973_v1 = vpack.c.bf16 %v4511_v57, %v4510_v55  ;;  %v7389_v2 = vpack.c.bf16 %v4799_v0, %v4798_v59  ;;  %v4525_v59 = vld [vmem:[%s9890_s3 + $0x278] sm:$0xff]  ;;  %v4812_v0 = vld [vmem:[%s9890_s3 + $0x8f0] sm:$0xff]  ;;  %v4814_v9 = vld [vmem:[%s9890_s3 + $0x900] sm:$0xff] }
  0x7b   : > { %7374 = vmatprep.subr.bf16.mxu0 %v7373_v23  ;;  %5821 = vmatprep.mubr.f32.mxu1 %v8393_v62  ;;  %v4500_v62 = vld [vmem:[%s9890_s3 + $0x1f0] sm:$0xff] }
  0x7c   : > { %6393 = vmatprep.mubr.f32.mxu0 %v8242_v61  ;;  %v4789_v61 = vld [vmem:[%s9890_s3 + $0x878] sm:$0xff]  ;;  %v6969_v53 = vpack.c.bf16 %v4501_v51, %v4500_v62  ;;  %v4520_v51 = vld [vmem:[%s9890_s3 + $0x250] sm:$0xff] }
  0x7d   : > { %6960 = vmatpush3.bf16.msra.mxu1 %v6957_v21  ;;  %v7385_v54 = vpack.c.bf16 %v4789_v61, %v4788_v52  ;;  %v6977_v21 = vpack.c.bf16 %v4513_v7, %v4512_v3  ;;  %v4534_v3 = vld [vmem:[%s9890_s3 + $0x280] sm:$0xff]  ;;  %v4535_v7 = vld [vmem:[%s9890_s3 + $0x288] sm:$0xff] }
  0x7e   : > { %7376 = vmatpush3.bf16.msra.mxu0 %v7373_v23  ;;  %6962 = vmatprep.subr.bf16.mxu1 %v6961_v37  ;;  %v4514_v23 = vld [vmem:[%s9890_s3 + $0x220] sm:$0xff] }
  0x7f   : > { %7378 = vmatprep.subr.bf16.mxu0 %v7377_v41  ;;  %v6981_v36 = vpack.c.bf16 %v4515_v31, %v4514_v23  ;;  %v4536_v23 = vld [vmem:[%s9890_s3 + $0x290] sm:$0xff]  ;;  %v4537_v31 = vld [vmem:[%s9890_s3 + $0x298] sm:$0xff] }
  0x81   : > { %6964 = vmatpush3.bf16.msra.mxu1 %v6961_v37  ;;  %v7397_v37 = vpack.c.bf16 %v4803_v35, %v4802_v33  ;;  %v4816_v33 = vld [vmem:[%s9890_s3 + $0x910] sm:$0xff]  ;;  %v4817_v35 = vld [vmem:[%s9890_s3 + $0x918] sm:$0xff] }
  0x82   : > { %7380 = vmatpush3.bf16.msra.mxu0 %v7377_v41  ;;  %6966 = vmatprep.subr.bf16.mxu1 %v6965_v49  ;;  %v4516_v41 = vld [vmem:[%s9890_s3 + $0x230] sm:$0xff] }
  0x83   : > { %7382 = vmatprep.subr.bf16.mxu0 %v7381_v50  ;;  %v6985_v45 = vpack.c.bf16 %v4517_v43, %v4516_v41  ;;  %v4538_v41 = vld [vmem:[%s9890_s3 + $0x2a0] sm:$0xff]  ;;  %v4539_v43 = vld [vmem:[%s9890_s3 + $0x2a8] sm:$0xff] }
  0x85   : > { %6968 = vmatpush3.bf16.msra.mxu1 %v6965_v49  ;;  %v8726_v49 = vld [vmem:[%s8156_s21 + $0x80] sm:$0xff] }
  0x86   : > { %7384 = vmatpush3.bf16.msra.mxu0 %v7381_v50  ;;  %6970 = vmatprep.subr.bf16.mxu1 %v6969_v53  ;;  %v4773_v50 = vld [vmem:[%s8175_s17 + $0x91] sm:$0xff] }
  0x87   : > { %7386 = vmatprep.subr.bf16.mxu0 %v7385_v54 }
  0x89   : > { %6972 = vmatpush3.bf16.msra.mxu1 %v6969_v53  ;;  %v4523_v53 = vld [vmem:[%s9890_s3 + $0x268] sm:$0xff] }
  0x8a   : > { %7388 = vmatpush3.bf16.msra.mxu0 %v7385_v54  ;;  %6974 = vmatprep.subr.bf16.mxu1 %v6973_v1  ;;  %v4811_v54 = vld [vmem:[%s9890_s3 + $0x8e8] sm:$0xff] }
  0x8b   : > { %7390 = vmatprep.subr.bf16.mxu0 %v7389_v2 }
  0x8c   : > { %5822 = vmatmul.mubr.f32.vlgmr.msra.gmra.mrb[0].mxu1 %v8412_v10 }
  0x8d   : > { %6976 = vmatpush3.bf16.msra.mxu1 %v6973_v1  ;;  %6394 = vmatmul.mubr.f32.vlgmr.msra.gmra.mrb[0].mxu0 %v8262_v5  ;;  %v4805_v5 = vld [vmem:[%s9890_s3 + $0x8b8] sm:$0xff] }
  0x8e   : > { %7392 = vmatpush3.bf16.msra.mxu0 %v7389_v2  ;;  %6978 = vmatprep.subr.bf16.mxu1 %v6977_v21 }
  0x8f   : > { %7394 = vmatprep.subr.bf16.mxu0 %v7393_v22  ;;  %5824 = vmatprep.mubr.f32.mxu1 %v8419_v12  ;;  %v7401_v12 = vpack.c.bf16 %v4805_v5, %v4804_v44  ;;  %v4818_v44 = vld [vmem:[%s9890_s3 + $0x920] sm:$0xff]  ;;  %v4819_v5 = vld [vmem:[%s9890_s3 + $0x928] sm:$0xff] }
  0x90   : > { %6396 = vmatprep.mubr.f32.mxu0 %v8268_v8  ;;  %5825 = vmatmul.mubr.f32.gmra.mrb[2].mxu1 %v8440_v27  ;;  %v4519_v8 = vld [vmem:[%s9890_s3 + $0x248] sm:$0xff] }
  0x91   : > { %6980 = vmatpush3.bf16.msra.mxu1 %v6977_v21  ;;  %6397 = vmatmul.mubr.f32.gmra.mrb[2].mxu0 %v8290_v15  ;;  %v4806_v15 = vld [vmem:[%s9890_s3 + $0x8c0] sm:$0xff]  ;;  %v4807_v27 = vld [vmem:[%s9890_s3 + $0x8c8] sm:$0xff]  ;;  %v7005_v21 = vpack.c.bf16 %v4535_v7, %v4534_v3  ;;  %v4560_v7 = vld [vmem:[%s9890_s3 + $0x310] sm:$0xff] }
  0x92   : > { %7396 = vmatpush3.bf16.msra.mxu0 %v7393_v22  ;;  %6982 = vmatprep.subr.bf16.mxu1 %v6981_v36  ;;  %v7405_v62 = vpack.c.bf16 %v4807_v27, %v4806_v15  ;;  %v7421_v22 = vpack.c.bf16 %v4815_v19, %v4814_v9  ;;  %v4542_v27 = vld [vmem:[%s9890_s3 + $0x2c0] sm:$0xff]  ;;  %v4561_v9 = vld [vmem:[%s9890_s3 + $0x318] sm:$0xff]  ;;  %v4832_v19 = vld [vmem:[%s9890_s3 + $0x990] sm:$0xff] }
  0x93   : > { %7398 = vmatprep.subr.bf16.mxu0 %v7397_v37  ;;  %5827 = vmatprep.mubr.f32.mxu1 %v8447_v30  ;;  %v6989_v30 = vpack.c.bf16 %v4519_v8, %v4518_v47  ;;  %v4541_v47 = vld [vmem:[%s9890_s3 + $0x2b8] sm:$0xff]  ;;  %v4820_v8 = vld [vmem:[%s9890_s3 + $0x930] sm:$0xff] }
  0x94   : > { %6399 = vmatprep.mubr.f32.mxu0 %v8296_v18  ;;  %5828 = vmatmul.mubr.f32.gmra.mrb[4].mxu1 %v8468_v38  ;;  %v4521_v18 = vld [vmem:[%s9890_s3 + $0x258] sm:$0xff] }
  0x95   : > { %6984 = vmatpush3.bf16.msra.mxu1 %v6981_v36  ;;  %6400 = vmatmul.mubr.f32.gmra.mrb[4].mxu0 %v8318_v25  ;;  %v4808_v25 = vld [vmem:[%s9890_s3 + $0x8d0] sm:$0xff]  ;;  %v4809_v38 = vld [vmem:[%s9890_s3 + $0x8d8] sm:$0xff]  ;;  %v6993_v52 = vpack.c.bf16 %v4521_v18, %v4520_v51  ;;  %v7009_v36 = vpack.c.bf16 %v4537_v31, %v4536_v23  ;;  %v2909_v18 = vld [vmem:[%s8849_s22] sm:$0xff]  ;;  %v7041_v23 = vpack.c.bf16 %v4561_v9, %v4560_v7 }
  0x96   : > { %7400 = vmatpush3.bf16.msra.mxu0 %v7397_v37  ;;  %6986 = vmatprep.subr.bf16.mxu1 %v6985_v45  ;;  %v7409_v61 = vpack.c.bf16 %v4809_v38, %v4808_v25  ;;  %v7425_v37 = vpack.c.bf16 %v4817_v35, %v4816_v33  ;;  %v4825_v51 = vld [vmem:[%s9890_s3 + $0x958] sm:$0xff]  ;;  %v4546_v38 = vld [vmem:[%s9890_s3 + $0x2e0] sm:$0xff]  ;;  %v4563_v35 = vld [vmem:[%s9890_s3 + $0x328] sm:$0xff] }
  0x97   : > { %7402 = vmatprep.subr.bf16.mxu0 %v7401_v12  ;;  %5830 = vmatprep.mubr.f32.mxu1 %v8475_v40  ;;  %v4522_v40 = vld [vmem:[%s9890_s3 + $0x260] sm:$0xff] }
  0x98   : > { %6402 = vmatprep.mubr.f32.mxu0 %v8324_v28  ;;  %5831 = vmatmul.mubr.f32.gmra.mrb[6].mxu1 %v8726_v49  ;;  %v4810_v28 = vld [vmem:[%s9890_s3 + $0x8e0] sm:$0xff]  ;;  %v6997_v55 = vpack.c.bf16 %v4523_v53, %v4522_v40 }
  0x99   : > { %6988 = vmatpush3.bf16.msra.mxu1 %v6985_v45  ;;  %6403 = vmatmul.mubr.f32.gmra.mrb[6].mxu0 %v4773_v50  ;;  %v7413_v57 = vpack.c.bf16 %v4811_v54, %v4810_v28  ;;  %v7013_v45 = vpack.c.bf16 %v4539_v43, %v4538_v41  ;;  %v4797_v50 = vld [vmem:[%s8175_s17 + $0x92] sm:$0xff]  ;;  %v4562_v33 = vld [vmem:[%s9890_s3 + $0x320] sm:$0xff] }
  0x9a   : > { %7404 = vmatpush3.bf16.msra.mxu0 %v7401_v12  ;;  %6990 = vmatprep.subr.bf16.mxu1 %v6989_v30  ;;  %v7429_v12 = vpack.c.bf16 %v4819_v5, %v4818_v44  ;;  %v4548_v28 = vld [vmem:[%s9890_s3 + $0x2f0] sm:$0xff]  ;;  %v8934_v41 = vld [vmem:[%s8849_s22 + $0x20] sm:$0xff]  ;;  %v7045_v43 = vpack.c.bf16 %v4563_v35, %v4562_v33  ;;  %v4851_v33 = vld [vmem:[%s9890_s3 + $0xa28] sm:$0xff] }
  0x9b   : > { %7406 = vmatprep.subr.bf16.mxu0 %v7405_v62  ;;  %5865 = vmatprep.mubr.f32.mxu1 %v8239_v60  ;;  %v4524_v60 = vld [vmem:[%s9890_s3 + $0x270] sm:$0xff]  ;;  %v4552_v35 = vld [vmem:[%s8156_s21 + $0x40] sm:$0xff] }
  0x9c   : > { %6437 = vmatprep.mubr.f32.mxu0 %v8396_v63  ;;  %v4813_v63 = vld [vmem:[%s9890_s3 + $0x8f8] sm:$0xff]  ;;  %v7001_v1 = vpack.c.bf16 %v4525_v59, %v4524_v60  ;;  %v4828_v54 = vld [vmem:[%s9890_s3 + $0x970] sm:$0xff]  ;;  %v4558_v59 = vld [vmem:[%s9890_s3 + $0x300] sm:$0xff] }
  0x9d   : > { %6992 = vmatpush3.bf16.msra.mxu1 %v6989_v30  ;;  %v7417_v2 = vpack.c.bf16 %v4813_v63, %v4812_v0  ;;  %v8843_v30 = vld [vmem:[%s8156_s21 + $0x81] sm:$0xff]  ;;  %v8937_v44 = vld [vmem:[%s8849_s22 + $0x30] sm:$0xff] }
  0x9e   : > { %7408 = vmatpush3.bf16.msra.mxu0 %v7405_v62  ;;  %6994 = vmatprep.subr.bf16.mxu1 %v6993_v52  ;;  %v4559_v0 = vld [vmem:[%s9890_s3 + $0x308] sm:$0xff]  ;;  %v4830_v63 = vld [vmem:[%s9890_s3 + $0x980] sm:$0xff]  ;;  %v4564_v5 = vld [vmem:[%s9890_s3 + $0x330] sm:$0xff] }
  0x9f   : > { %7410 = vmatprep.subr.bf16.mxu0 %v7409_v61 }
  0xa1   : > { %6996 = vmatpush3.bf16.msra.mxu1 %v6993_v52  ;;  %v4547_v52 = vld [vmem:[%s9890_s3 + $0x2e8] sm:$0xff] }
  0xa2   : > { %7412 = vmatpush3.bf16.msra.mxu0 %v7409_v61  ;;  %6998 = vmatprep.subr.bf16.mxu1 %v6997_v55  ;;  %v4827_v61 = vld [vmem:[%s9890_s3 + $0x968] sm:$0xff]  ;;  %v7029_v40 = vpack.c.bf16 %v4547_v52, %v4546_v38 }
  0xa3   : > { %7414 = vmatprep.subr.bf16.mxu0 %v7413_v57 }
  0xa5   : > { %7000 = vmatpush3.bf16.msra.mxu1 %v6997_v55  ;;  %v4829_v55 = vld [vmem:[%s9890_s3 + $0x978] sm:$0xff] }
  0xa6   : > { %7416 = vmatpush3.bf16.msra.mxu0 %v7413_v57  ;;  %7002 = vmatprep.subr.bf16.mxu1 %v7001_v1  ;;  %v7449_v60 = vpack.c.bf16 %v4829_v55, %v4828_v54  ;;  %v4583_v54 = vld [vmem:[%s9890_s3 + $0x388] sm:$0xff]  ;;  %v4846_v55 = vld [vmem:[%s9890_s3 + $0xa00] sm:$0xff] }
  0xa7   : > { %7418 = vmatprep.subr.bf16.mxu0 %v7417_v2 }
  0xa9   : > { %7004 = vmatpush3.bf16.msra.mxu1 %v7001_v1  ;;  %v4831_v1 = vld [vmem:[%s9890_s3 + $0x988] sm:$0xff] }
  0xaa   : > { %7420 = vmatpush3.bf16.msra.mxu0 %v7417_v2  ;;  %7006 = vmatprep.subr.bf16.mxu1 %v7005_v21  ;;  %v7037_v2 = vpack.c.bf16 %v4559_v0, %v4558_v59  ;;  %v7453_v3 = vpack.c.bf16 %v4831_v1, %v4830_v63  ;;  %v4584_v0 = vld [vmem:[%s9890_s3 + $0x390] sm:$0xff]  ;;  %v4585_v63 = vld [vmem:[%s9890_s3 + $0x398] sm:$0xff] }
  0xab   : > { %7422 = vmatprep.subr.bf16.mxu0 %v7421_v22  ;;  %v4848_v1 = vld [vmem:[%s9890_s3 + $0xa10] sm:$0xff]  ;;  %v7073_v7 = vpack.c.bf16 %v4585_v63, %v4584_v0 }
  0xac   : > { %5866 = vmatmul.mubr.f32.vlgmr.msra.gmra.mrb[0].mxu1 %v8258_v4  ;;  %v4540_v4 = vld [vmem:[%s9890_s3 + $0x2b0] sm:$0xff] }
  0xad   : > { %7008 = vmatpush3.bf16.msra.mxu1 %v7005_v21  ;;  %6438 = vmatmul.mubr.f32.vlgmr.msra.gmra.mrb[0].mxu0 %v8416_v11  ;;  %v4821_v11 = vld [vmem:[%s9890_s3 + $0x938] sm:$0xff] }
  0xae   : > { %7424 = vmatpush3.bf16.msra.mxu0 %v7421_v22  ;;  %7010 = vmatprep.subr.bf16.mxu1 %v7009_v36  ;;  %v7433_v15 = vpack.c.bf16 %v4821_v11, %v4820_v8  ;;  %v4833_v21 = vld [vmem:[%s9890_s3 + $0x998] sm:$0xff]  ;;  %v8917_v22 = vld [vmem:[%s8849_s22 + $0x10] sm:$0xff] }
  0xaf   : > { %7426 = vmatprep.subr.bf16.mxu0 %v7425_v37  ;;  %5868 = vmatprep.mubr.f32.mxu1 %v8265_v6  ;;  %v7017_v6 = vpack.c.bf16 %v4541_v47, %v4540_v4  ;;  %v7457_v31 = vpack.c.bf16 %v4833_v21, %v4832_v19  ;;  %v4837_v4 = vld [vmem:[%s9890_s3 + $0x9b8] sm:$0xff]  ;;  %v8956_v47 = vld [vmem:[%s8849_s22 + $0x40] sm:$0xff]  ;;  %v8959_v8 = vld [vmem:[%s8849_s22 + $0x50] sm:$0xff] }
  0xb0   : > { %6440 = vmatprep.mubr.f32.mxu0 %v8422_v17  ;;  %5869 = vmatmul.mubr.f32.gmra.mrb[2].mxu1 %v8286_v14  ;;  %v4543_v17 = vld [vmem:[%s9890_s3 + $0x2c8] sm:$0xff]  ;;  %v4822_v14 = vld [vmem:[%s9890_s3 + $0x940] sm:$0xff] }
  0xb1   : > { %7012 = vmatpush3.bf16.msra.mxu1 %v7009_v36  ;;  %6441 = vmatmul.mubr.f32.gmra.mrb[2].mxu0 %v8444_v29  ;;  %v4823_v29 = vld [vmem:[%s9890_s3 + $0x948] sm:$0xff]  ;;  %v4834_v36 = vld [vmem:[%s9890_s3 + $0x9a0] sm:$0xff] }
  0xb2   : > { %7428 = vmatpush3.bf16.msra.mxu0 %v7425_v37  ;;  %7014 = vmatprep.subr.bf16.mxu1 %v7013_v45  ;;  %v7437_v62 = vpack.c.bf16 %v4823_v29, %v4822_v14  ;;  %v4835_v37 = vld [vmem:[%s9890_s3 + $0x9a8] sm:$0xff]  ;;  %v8984_v29 = vld [vmem:[%s8849_s22 + $0x70] sm:$0xff]  ;;  %v4586_v19 = vld [vmem:[%s9890_s3 + $0x3a0] sm:$0xff] }
  0xb3   : > { %7430 = vmatprep.subr.bf16.mxu0 %v7429_v12  ;;  %5871 = vmatprep.mubr.f32.mxu1 %v8293_v16  ;;  %v7021_v16 = vpack.c.bf16 %v4543_v17, %v4542_v27  ;;  %v4839_v27 = vld [vmem:[%s9890_s3 + $0x9c8] sm:$0xff]  ;;  %v8978_v17 = vld [vmem:[%s8849_s22 + $0x60] sm:$0xff] }
  0xb4   : > { %6443 = vmatprep.mubr.f32.mxu0 %v8450_v32  ;;  %5872 = vmatmul.mubr.f32.gmra.mrb[4].mxu1 %v8314_v24  ;;  %v4544_v24 = vld [vmem:[%s9890_s3 + $0x2d0] sm:$0xff]  ;;  %v4545_v32 = vld [vmem:[%s9890_s3 + $0x2d8] sm:$0xff]  ;;  %v8981_v14 = vld [vmem:[%s8156_s21 + $0x82] sm:$0xff] }
  0xb5   : > { %7016 = vmatpush3.bf16.msra.mxu1 %v7013_v45  ;;  %6444 = vmatmul.mubr.f32.gmra.mrb[4].mxu0 %v8472_v39  ;;  %v4824_v39 = vld [vmem:[%s9890_s3 + $0x950] sm:$0xff]  ;;  %v7025_v25 = vpack.c.bf16 %v4545_v32, %v4544_v24  ;;  %v4565_v45 = vld [vmem:[%s9890_s3 + $0x338] sm:$0xff]  ;;  %v3047_v32 = vld [vmem:[%s8849_s22 + $0x1] sm:$0xff] }
  0xb6   : > { %7432 = vmatpush3.bf16.msra.mxu0 %v7429_v12  ;;  %7018 = vmatprep.subr.bf16.mxu1 %v7017_v6  ;;  %v4836_v12 = vld [vmem:[%s9890_s3 + $0x9b0] sm:$0xff]  ;;  %v4841_v24 = vld [vmem:[%s9890_s3 + $0x9d8] sm:$0xff]  ;;  %v4587_v21 = vld [vmem:[%s9890_s3 + $0x3a8] sm:$0xff] }
  0xb7   : > { %7434 = vmatprep.subr.bf16.mxu0 %v7433_v15  ;;  %5874 = vmatprep.mubr.f32.mxu1 %v8321_v26  ;;  %v7441_v26 = vpack.c.bf16 %v4825_v51, %v4824_v39  ;;  %v7465_v11 = vpack.c.bf16 %v4837_v4, %v4836_v12  ;;  %v4570_v51 = vld [vmem:[%s9890_s3 + $0x360] sm:$0xff]  ;;  %v4589_v12 = vld [vmem:[%s9890_s3 + $0x3b8] sm:$0xff]  ;;  %v4852_v4 = vld [vmem:[%s9890_s3 + $0xa30] sm:$0xff] }
  0xb8   : > { %6446 = vmatprep.mubr.f32.mxu0 %v8478_v42  ;;  %5875 = vmatmul.mubr.f32.gmra.mrb[6].mxu1 %v8843_v30  ;;  %v4826_v42 = vld [vmem:[%s9890_s3 + $0x960] sm:$0xff] }
  0xb9   : > { %7020 = vmatpush3.bf16.msra.mxu1 %v7017_v6  ;;  %6447 = vmatmul.mubr.f32.gmra.mrb[6].mxu0 %v4797_v50  ;;  %v7445_v53 = vpack.c.bf16 %v4827_v61, %v4826_v42  ;;  %v4566_v6 = vld [vmem:[%s9890_s3 + $0x340] sm:$0xff]  ;;  %v4568_v50 = vld [vmem:[%s9890_s3 + $0x350] sm:$0xff] }
  0xba   : > { %7436 = vmatpush3.bf16.msra.mxu0 %v7433_v15  ;;  %7022 = vmatprep.subr.bf16.mxu1 %v7021_v16  ;;  %v4838_v15 = vld [vmem:[%s9890_s3 + $0x9c0] sm:$0xff]  ;;  %v4572_v42 = vld [vmem:[%s9890_s3 + $0x370] sm:$0xff] }
  0xbb   : > { %7438 = vmatprep.subr.bf16.mxu0 %v7437_v62  ;;  %5909 = vmatprep.mubr.f32.mxu1 %v8547_v34  ;;  %v4549_v34 = vld [vmem:[%s9890_s3 + $0x2f8] sm:$0xff]  ;;  %v4844_v61 = vld [vmem:[%s9890_s3 + $0x9f0] sm:$0xff] }
  0xbc   : > { %6481 = vmatprep.mubr.f32.mxu0 %v2909_v18  ;;  %v7033_v57 = vpack.c.bf16 %v4549_v34, %v4548_v28  ;;  %v4571_v18 = vld [vmem:[%s9890_s3 + $0x368] sm:$0xff]  ;;  %v4582_v34 = vld [vmem:[%s9890_s3 + $0x380] sm:$0xff] }
  0xbd   : > { %7024 = vmatpush3.bf16.msra.mxu1 %v7021_v16  ;;  %v7469_v16 = vpack.c.bf16 %v4839_v27, %v4838_v15  ;;  %v7061_v38 = vpack.c.bf16 %v4571_v18, %v4570_v51  ;;  %v9097_v27 = vld [vmem:[%s8849_s22 + $0x51] sm:$0xff] }
  0xbe   : > { %7440 = vmatpush3.bf16.msra.mxu0 %v7437_v62  ;;  %7026 = vmatprep.subr.bf16.mxu1 %v7025_v25  ;;  %v4840_v62 = vld [vmem:[%s9890_s3 + $0x9d0] sm:$0xff] }
  0xbf   : > { %7442 = vmatprep.subr.bf16.mxu0 %v7441_v26  ;;  %v4592_v18 = vld [vmem:[%s9890_s3 + $0x3d0] sm:$0xff] }
  0xc1   : > { %7028 = vmatpush3.bf16.msra.mxu1 %v7025_v25  ;;  %v4842_v25 = vld [vmem:[%s9890_s3 + $0x9e0] sm:$0xff] }
  0xc2   : > { %7444 = vmatpush3.bf16.msra.mxu0 %v7441_v26  ;;  %7030 = vmatprep.subr.bf16.mxu1 %v7029_v40  ;;  %v4843_v26 = vld [vmem:[%s9890_s3 + $0x9e8] sm:$0xff] }
  0xc3   : > { %7446 = vmatprep.subr.bf16.mxu0 %v7445_v53  ;;  %v7477_v52 = vpack.c.bf16 %v4843_v26, %v4842_v25  ;;  %v4593_v25 = vld [vmem:[%s9890_s3 + $0x3d8] sm:$0xff]  ;;  %v4856_v26 = vld [vmem:[%s9890_s3 + $0xa50] sm:$0xff] }
  0xc5   : > { %7032 = vmatpush3.bf16.msra.mxu1 %v7029_v40  ;;  %v4845_v40 = vld [vmem:[%s9890_s3 + $0x9f8] sm:$0xff] }
  0xc6   : > { %7448 = vmatpush3.bf16.msra.mxu0 %v7445_v53  ;;  %7034 = vmatprep.subr.bf16.mxu1 %v7033_v57  ;;  %v7481_v28 = vpack.c.bf16 %v4845_v40, %v4844_v61  ;;  %v4594_v61 = vld [vmem:[%s9890_s3 + $0x3e0] sm:$0xff]  ;;  %v4595_v40 = vld [vmem:[%s9890_s3 + $0x3e8] sm:$0xff] }
  0xc7   : > { %7450 = vmatprep.subr.bf16.mxu0 %v7449_v60 }
  0xc9   : > { %7036 = vmatpush3.bf16.msra.mxu1 %v7033_v57  ;;  %v4847_v57 = vld [vmem:[%s9890_s3 + $0xa08] sm:$0xff] }
  0xca   : > { %7452 = vmatpush3.bf16.msra.mxu0 %v7449_v60  ;;  %7038 = vmatprep.subr.bf16.mxu1 %v7037_v2  ;;  %v7069_v60 = vpack.c.bf16 %v4583_v54, %v4582_v34  ;;  %v7485_v59 = vpack.c.bf16 %v4847_v57, %v4846_v55  ;;  %v7093_v34 = vpack.c.bf16 %v4595_v40, %v4594_v61  ;;  %v4596_v55 = vld [vmem:[%s9890_s3 + $0x3f0] sm:$0xff]  ;;  %v4597_v57 = vld [vmem:[%s9890_s3 + $0x3f8] sm:$0xff]  ;;  %v4878_v61 = vld [vmem:[%s9890_s3 + $0xac0] sm:$0xff] }
  0xcb   : > { %7454 = vmatprep.subr.bf16.mxu0 %v7453_v3  ;;  %v7097_v0 = vpack.c.bf16 %v4597_v57, %v4596_v55  ;;  %v4879_v40 = vld [vmem:[%s9890_s3 + $0xac8] sm:$0xff]  ;;  %v4616_v57 = vld [vmem:[%s9890_s3 + $0x450] sm:$0xff] }
  0xcc   : > { %5910 = vmatmul.mubr.f32.vlgmr.msra.gmra.mrb[0].mxu1 %v8564_v46  ;;  %v7461_v46 = vpack.c.bf16 %v4835_v37, %v4834_v36  ;;  %v9071_v36 = vld [vmem:[%s8849_s22 + $0x21] sm:$0xff]  ;;  %v4553_v37 = vld [vmem:[%s8156_s21 + $0x50] sm:$0xff]  ;;  %v7533_v55 = vpack.c.bf16 %v4879_v40, %v4878_v61 }
  0xcd   : > { %7040 = vmatpush3.bf16.msra.mxu1 %v7037_v2  ;;  %6482 = vmatmul.mubr.f32.vlgmr.msra.gmra.mrb[0].mxu0 %v8917_v22  ;;  %v4849_v2 = vld [vmem:[%s9890_s3 + $0xa18] sm:$0xff] }
  0xce   : > { %7456 = vmatpush3.bf16.msra.mxu0 %v7453_v3  ;;  %7042 = vmatprep.subr.bf16.mxu1 %v7041_v23  ;;  %v9053_v3 = vld [vmem:[%s8849_s22 + $0x11] sm:$0xff]  ;;  %v7489_v9 = vpack.c.bf16 %v4849_v2, %v4848_v1  ;;  %v4606_v1 = vld [vmem:[%s9890_s3 + $0x400] sm:$0xff]  ;;  %v4607_v2 = vld [vmem:[%s9890_s3 + $0x408] sm:$0xff] }
  0xcf   : > { %7458 = vmatprep.subr.bf16.mxu0 %v7457_v31  ;;  %5912 = vmatprep.mubr.f32.mxu1 %v8568_v48  ;;  %v7049_v48 = vpack.c.bf16 %v4565_v45, %v4564_v5  ;;  %v4588_v45 = vld [vmem:[%s9890_s3 + $0x3b0] sm:$0xff] }
  0xd0   : > { %6484 = vmatprep.mubr.f32.mxu0 %v8934_v41  ;;  %5913 = vmatmul.mubr.f32.gmra.mrb[2].mxu1 %v8586_v56  ;;  %v4567_v56 = vld [vmem:[%s9890_s3 + $0x348] sm:$0xff]  ;;  %v7081_v15 = vpack.c.bf16 %v4589_v12, %v4588_v45  ;;  %v4610_v12 = vld [vmem:[%s9890_s3 + $0x420] sm:$0xff] }
  0xd1   : > { %7044 = vmatpush3.bf16.msra.mxu1 %v7041_v23  ;;  %6485 = vmatmul.mubr.f32.gmra.mrb[2].mxu0 %v8937_v44  ;;  %v7977_v23 = vld [vmem:[%s8156_s21 + $0x30] sm:$0xff] }
  0xd2   : > { %7460 = vmatpush3.bf16.msra.mxu0 %v7457_v31  ;;  %7046 = vmatprep.subr.bf16.mxu1 %v7045_v43  ;;  %v4850_v31 = vld [vmem:[%s9890_s3 + $0xa20] sm:$0xff] }
  0xd3   : > { %7462 = vmatprep.subr.bf16.mxu0 %v7461_v46  ;;  %5915 = vmatprep.mubr.f32.mxu1 %v8590_v58  ;;  %v7053_v58 = vpack.c.bf16 %v4567_v56, %v4566_v6  ;;  %v7493_v5 = vpack.c.bf16 %v4851_v33, %v4850_v31  ;;  %v9093_v6 = vld [vmem:[%s8849_s22 + $0x41] sm:$0xff]  ;;  %v4555_v56 = vld [vmem:[%s8156_s21 + $0x70] sm:$0xff]  ;;  %v4609_v31 = vld [vmem:[%s9890_s3 + $0x418] sm:$0xff] }
  0xd4   : > { %6487 = vmatprep.mubr.f32.mxu0 %v8956_v47  ;;  %5916 = vmatmul.mubr.f32.gmra.mrb[4].mxu1 %v8608_v13  ;;  %v4569_v13 = vld [vmem:[%s9890_s3 + $0x358] sm:$0xff]  ;;  %v4872_v33 = vld [vmem:[%s9890_s3 + $0xa90] sm:$0xff] }
  0xd5   : > { %7048 = vmatpush3.bf16.msra.mxu1 %v7045_v43  ;;  %6488 = vmatmul.mubr.f32.gmra.mrb[4].mxu0 %v8959_v8  ;;  %v7057_v39 = vpack.c.bf16 %v4569_v13, %v4568_v50  ;;  %v7077_v43 = vpack.c.bf16 %v4587_v21, %v4586_v19  ;;  %v4591_v50 = vld [vmem:[%s9890_s3 + $0x3c8] sm:$0xff]  ;;  %v4854_v13 = vld [vmem:[%s9890_s3 + $0xa40] sm:$0xff]  ;;  %v7101_v19 = vpack.c.bf16 %v4607_v2, %v4606_v1 }
  0xd6   : > { %7464 = vmatpush3.bf16.msra.mxu0 %v7461_v46  ;;  %7050 = vmatprep.subr.bf16.mxu1 %v7049_v48  ;;  %v9075_v46 = vld [vmem:[%s8849_s22 + $0x31] sm:$0xff]  ;;  %v4618_v2 = vld [vmem:[%s9890_s3 + $0x460] sm:$0xff] }
  0xd7   : > { %7466 = vmatprep.subr.bf16.mxu0 %v7465_v11  ;;  %5918 = vmatprep.mubr.f32.mxu1 %v8612_v20  ;;  %v7473_v20 = vpack.c.bf16 %v4841_v24, %v4840_v62  ;;  %v4855_v62 = vld [vmem:[%s9890_s3 + $0xa48] sm:$0xff] }
  0xd8   : > { %6490 = vmatprep.mubr.f32.mxu0 %v8978_v17  ;;  %5919 = vmatmul.mubr.f32.gmra.mrb[6].mxu1 %v8981_v14  ;;  %v9114_v24 = vld [vmem:[%s8849_s22 + $0x61] sm:$0xff]  ;;  %v7501_v51 = vpack.c.bf16 %v4855_v62, %v4854_v13  ;;  %v4612_v62 = vld [vmem:[%s9890_s3 + $0x430] sm:$0xff] }
  0xd9   : > { %7052 = vmatpush3.bf16.msra.mxu1 %v7049_v48  ;;  %6491 = vmatmul.mubr.f32.gmra.mrb[6].mxu0 %v8984_v29  ;;  %v4853_v48 = vld [vmem:[%s9890_s3 + $0xa38] sm:$0xff] }
  0xda   : > { %7468 = vmatpush3.bf16.msra.mxu0 %v7465_v11  ;;  %7054 = vmatprep.subr.bf16.mxu1 %v7053_v58  ;;  %v4554_v11 = vld [vmem:[%s8156_s21 + $0x60] sm:$0xff] }
  0xdb   : > { %7470 = vmatprep.subr.bf16.mxu0 %v7469_v16  ;;  %5953 = vmatprep.mubr.f32.mxu1 %v8412_v10  ;;  %v4573_v10 = vld [vmem:[%s9890_s3 + $0x378] sm:$0xff] }
  0xdc   : > { %6525 = vmatprep.mubr.f32.mxu0 %v3047_v32  ;;  %v7065_v53 = vpack.c.bf16 %v4573_v10, %v4572_v42  ;;  %v4557_v32 = vld [vmem:[%s8156_s21 + $0x90] sm:$0xff]  ;;  %v3185_v42 = vld [vmem:[%s8849_s22 + $0x2] sm:$0xff]  ;;  %v7089_v10 = vpack.c.bf16 %v4593_v25, %v4592_v18 }
  0xdd   : > { %7056 = vmatpush3.bf16.msra.mxu1 %v7053_v58  ;;  %v7497_v58 = vpack.c.bf16 %v4853_v48, %v4852_v4  ;;  %v4611_v4 = vld [vmem:[%s9890_s3 + $0x428] sm:$0xff]  ;;  %v4874_v48 = vld [vmem:[%s9890_s3 + $0xaa0] sm:$0xff] }
  0xde   : > { %7472 = vmatpush3.bf16.msra.mxu0 %v7469_v16  ;;  %7058 = vmatprep.subr.bf16.mxu1 %v7057_v39  ;;  %v4590_v16 = vld [vmem:[%s9890_s3 + $0x3c0] sm:$0xff] }
  0xdf   : > { %7474 = vmatprep.subr.bf16.mxu0 %v7473_v20  ;;  %v4578_v18 = vld [vmem:[%s8156_s21 + $0x61] sm:$0xff] }
  0xe0   : > { %v9226_v25 = vld [vmem:[%s8849_s22 + $0x42] sm:$0xff] }
  0xe1   : > { %7060 = vmatpush3.bf16.msra.mxu1 %v7057_v39  ;;  %v7085_v39 = vpack.c.bf16 %v4591_v50, %v4590_v16  ;;  %v7109_v16 = vpack.c.bf16 %v4611_v4, %v4610_v12  ;;  %v9208_v50 = vld [vmem:[%s8849_s22 + $0x32] sm:$0xff]  ;;  %v4623_v12 = vld [vmem:[%s9890_s3 + $0x488] sm:$0xff]  ;;  %v4894_v4 = vld [vmem:[%s9890_s3 + $0xb00] sm:$0xff] }
  0xe2   : > { %7476 = vmatpush3.bf16.msra.mxu0 %v7473_v20  ;;  %7062 = vmatprep.subr.bf16.mxu1 %v7061_v38  ;;  %v9118_v20 = vld [vmem:[%s8849_s22 + $0x71] sm:$0xff] }
  0xe3   : > { %7478 = vmatprep.subr.bf16.mxu0 %v7477_v52 }
  0xe5   : > { %7064 = vmatpush3.bf16.msra.mxu1 %v7061_v38  ;;  %v4857_v38 = vld [vmem:[%s9890_s3 + $0xa58] sm:$0xff] }
  0xe6   : > { %7480 = vmatpush3.bf16.msra.mxu0 %v7477_v52  ;;  %7066 = vmatprep.subr.bf16.mxu1 %v7065_v53  ;;  %v4574_v52 = vld [vmem:[%s8156_s21 + $0x21] sm:$0xff] }
  0xe7   : > { %7482 = vmatprep.subr.bf16.mxu0 %v7481_v28 }
  0xe9   : > { %7068 = vmatpush3.bf16.msra.mxu1 %v7065_v53  ;;  %v4858_v53 = vld [vmem:[%s9890_s3 + $0xa60] sm:$0xff] }
  0xea   : > { %7484 = vmatpush3.bf16.msra.mxu0 %v7481_v28  ;;  %7070 = vmatprep.subr.bf16.mxu1 %v7069_v60  ;;  %v4859_v28 = vld [vmem:[%s9890_s3 + $0xa68] sm:$0xff] }
  0xeb   : > { %7486 = vmatprep.subr.bf16.mxu0 %v7485_v59  ;;  %v7509_v54 = vpack.c.bf16 %v4859_v28, %v4858_v53  ;;  %v9247_v53 = vld [vmem:[%s8849_s22 + $0x62] sm:$0xff]  ;;  %v4581_v28 = vld [vmem:[%s8156_s21 + $0x91] sm:$0xff] }
  0xec   : > { %5954 = vmatmul.mubr.f32.vlgmr.msra.gmra.mrb[0].mxu1 %v7977_v23  ;;  %v4608_v23 = vld [vmem:[%s9890_s3 + $0x410] sm:$0xff] }
  0xed   : > { %7072 = vmatpush3.bf16.msra.mxu1 %v7069_v60  ;;  %6526 = vmatmul.mubr.f32.vlgmr.msra.gmra.mrb[0].mxu0 %v9053_v3  ;;  %v4860_v60 = vld [vmem:[%s9890_s3 + $0xa70] sm:$0xff] }
  0xee   : > { %7488 = vmatpush3.bf16.msra.mxu0 %v7485_v59  ;;  %7074 = vmatprep.subr.bf16.mxu1 %v7073_v7  ;;  %v4861_v59 = vld [vmem:[%s9890_s3 + $0xa78] sm:$0xff] }
  0xef   : > { %7490 = vmatprep.subr.bf16.mxu0 %v7489_v9  ;;  %5956 = vmatprep.mubr.f32.mxu1 %v4552_v35  ;;  %v7513_v63 = vpack.c.bf16 %v4861_v59, %v4860_v60  ;;  %v4873_v35 = vld [vmem:[%s9890_s3 + $0xa98] sm:$0xff]  ;;  %v4880_v59 = vld [vmem:[%s9890_s3 + $0xad0] sm:$0xff] }
  0xf0   : > { %6528 = vmatprep.mubr.f32.mxu0 %v9071_v36  ;;  %5957 = vmatmul.mubr.f32.gmra.mrb[2].mxu1 %v4553_v37  ;;  %v4575_v37 = vld [vmem:[%s8156_s21 + $0x31] sm:$0xff]  ;;  %v7521_v45 = vpack.c.bf16 %v4873_v35, %v4872_v33 }
  0xf1   : > { %7076 = vmatpush3.bf16.msra.mxu1 %v7073_v7  ;;  %6529 = vmatmul.mubr.f32.gmra.mrb[2].mxu0 %v9075_v46  ;;  %v4870_v7 = vld [vmem:[%s9890_s3 + $0xa80] sm:$0xff]  ;;  %v4617_v60 = vld [vmem:[%s9890_s3 + $0x458] sm:$0xff]  ;;  %v4884_v35 = vld [vmem:[%s9890_s3 + $0xaf0] sm:$0xff] }
  0xf2   : > { %7492 = vmatpush3.bf16.msra.mxu0 %v7489_v9  ;;  %7078 = vmatprep.subr.bf16.mxu1 %v7077_v43  ;;  %v4871_v9 = vld [vmem:[%s9890_s3 + $0xa88] sm:$0xff]  ;;  %v7121_v1 = vpack.c.bf16 %v4617_v60, %v4616_v57  ;;  %v4621_v33 = vld [vmem:[%s9890_s3 + $0x478] sm:$0xff] }
  0xf3   : > { %7494 = vmatprep.subr.bf16.mxu0 %v7493_v5  ;;  %5959 = vmatprep.mubr.f32.mxu1 %v4554_v11  ;;  %v7517_v21 = vpack.c.bf16 %v4871_v9, %v4870_v7  ;;  %v4875_v11 = vld [vmem:[%s9890_s3 + $0xaa8] sm:$0xff]  ;;  %v4882_v9 = vld [vmem:[%s9890_s3 + $0xae0] sm:$0xff]  ;;  %v4603_v60 = vld [vmem:[%s8156_s21 + $0x72] sm:$0xff] }
  0xf4   : > { %6531 = vmatprep.mubr.f32.mxu0 %v9093_v6  ;;  %5960 = vmatmul.mubr.f32.gmra.mrb[4].mxu1 %v4555_v56  ;;  %v4576_v56 = vld [vmem:[%s8156_s21 + $0x41] sm:$0xff]  ;;  %v7525_v13 = vpack.c.bf16 %v4875_v11, %v4874_v48 }
  0xf5   : > { %7080 = vmatpush3.bf16.msra.mxu1 %v7077_v43  ;;  %6532 = vmatmul.mubr.f32.gmra.mrb[4].mxu0 %v9097_v27  ;;  %v9187_v43 = vld [vmem:[%s8849_s22 + $0x12] sm:$0xff]  ;;  %v4619_v7 = vld [vmem:[%s9890_s3 + $0x468] sm:$0xff] }
  0xf6   : > { %7496 = vmatpush3.bf16.msra.mxu0 %v7493_v5  ;;  %7082 = vmatprep.subr.bf16.mxu1 %v7081_v15  ;;  %v7105_v5 = vpack.c.bf16 %v4609_v31, %v4608_v23  ;;  %v4620_v31 = vld [vmem:[%s9890_s3 + $0x470] sm:$0xff]  ;;  %v4895_v48 = vld [vmem:[%s9890_s3 + $0xb08] sm:$0xff] }
  0xf7   : > { %7498 = vmatprep.subr.bf16.mxu0 %v7497_v58  ;;  %5962 = vmatprep.mubr.f32.mxu1 %v8726_v49  ;;  %v7505_v49 = vpack.c.bf16 %v4857_v38, %v4856_v26  ;;  %v4579_v26 = vld [vmem:[%s8156_s21 + $0x71] sm:$0xff]  ;;  %v4602_v57 = vld [vmem:[%s8156_s21 + $0x62] sm:$0xff] }
  0xf8   : > { %6534 = vmatprep.mubr.f32.mxu0 %v9114_v24  ;;  %5963 = vmatmul.mubr.f32.gmra.mrb[6].mxu1 %v4557_v32  ;;  %v4613_v32 = vld [vmem:[%s9890_s3 + $0x438] sm:$0xff] }
  0xf9   : > { %7084 = vmatpush3.bf16.msra.mxu1 %v7081_v15  ;;  %6535 = vmatmul.mubr.f32.gmra.mrb[6].mxu0 %v9118_v20  ;;  %v9204_v15 = vld [vmem:[%s8849_s22 + $0x22] sm:$0xff]  ;;  %v7113_v38 = vpack.c.bf16 %v4613_v32, %v4612_v62  ;;  %v4897_v62 = vld [vmem:[%s9890_s3 + $0xb18] sm:$0xff] }
  0xfa   : > { %7500 = vmatpush3.bf16.msra.mxu0 %v7497_v58  ;;  %7086 = vmatprep.subr.bf16.mxu1 %v7085_v39  ;;  %v4577_v58 = vld [vmem:[%s8156_s21 + $0x51] sm:$0xff] }
  0xfb   : > { %7502 = vmatprep.subr.bf16.mxu0 %v7501_v51  ;;  %5997 = vmatprep.mubr.f32.mxu1 %v4574_v52  ;;  %v9230_v52 = vld [vmem:[%s8849_s22 + $0x52] sm:$0xff] }
  0xfc   : > { %6569 = vmatprep.mubr.f32.mxu0 %v3185_v42  ;;  %v4599_v32 = vld [vmem:[%s8156_s21 + $0x32] sm:$0xff] }
  0xfd   : > { %7088 = vmatpush3.bf16.msra.mxu1 %v7085_v39  ;;  %v4876_v39 = vld [vmem:[%s9890_s3 + $0xab0] sm:$0xff] }
  0xfe   : > { %7504 = vmatpush3.bf16.msra.mxu0 %v7501_v51  ;;  %7090 = vmatprep.subr.bf16.mxu1 %v7089_v10  ;;  %v4877_v51 = vld [vmem:[%s9890_s3 + $0xab8] sm:$0xff] }
  0xff   : > { %7506 = vmatprep.subr.bf16.mxu0 %v7505_v49  ;;  %v7529_v42 = vpack.c.bf16 %v4877_v51, %v4876_v39 }
 0x101   : > { %7092 = vmatpush3.bf16.msra.mxu1 %v7089_v10  ;;  %v4614_v10 = vld [vmem:[%s9890_s3 + $0x440] sm:$0xff] }
 0x102   : > { %7508 = vmatpush3.bf16.msra.mxu0 %v7505_v49  ;;  %7094 = vmatprep.subr.bf16.mxu1 %v7093_v34  ;;  %v4615_v49 = vld [vmem:[%s9890_s3 + $0x448] sm:$0xff] }
 0x103   : > { %7510 = vmatprep.subr.bf16.mxu0 %v7509_v54 }
 0x105   : > { %7096 = vmatpush3.bf16.msra.mxu1 %v7093_v34  ;;  %v7117_v34 = vpack.c.bf16 %v4615_v49, %v4614_v10  ;;  %v4600_v10 = vld [vmem:[%s8156_s21 + $0x42] sm:$0xff]  ;;  %v4601_v49 = vld [vmem:[%s8156_s21 + $0x52] sm:$0xff] }
 0x106   : > { %7512 = vmatpush3.bf16.msra.mxu0 %v7509_v54  ;;  %7098 = vmatprep.subr.bf16.mxu1 %v7097_v0  ;;  %v9251_v54 = vld [vmem:[%s8849_s22 + $0x72] sm:$0xff] }
 0x107   : > { %7514 = vmatprep.subr.bf16.mxu0 %v7513_v63 }
 0x109   : > { %7100 = vmatpush3.bf16.msra.mxu1 %v7097_v0  ;;  %v4881_v0 = vld [vmem:[%s9890_s3 + $0xad8] sm:$0xff] }
 0x10a   : > { %7516 = vmatpush3.bf16.msra.mxu0 %v7513_v63  ;;  %7102 = vmatprep.subr.bf16.mxu1 %v7101_v19  ;;  %v4598_v63 = vld [vmem:[%s8156_s21 + $0x22] sm:$0xff] }
 0x10b   : > { %7518 = vmatprep.subr.bf16.mxu0 %v7517_v21 }
 0x10c   : > { %5998 = vmatmul.mubr.f32.vlgmr.msra.gmra.mrb[0].mxu1 %v4575_v37  ;;  %v7129_v37 = vpack.c.bf16 %v4621_v33, %v4620_v31  ;;  %v4634_v33 = vld [vmem:[%s9890_s3 + $0x4e0] sm:$0xff] }
 0x10d   : > { %7104 = vmatpush3.bf16.msra.mxu1 %v7101_v19  ;;  %6570 = vmatmul.mubr.f32.vlgmr.msra.gmra.mrb[0].mxu0 %v9187_v43  ;;  %v4883_v19 = vld [vmem:[%s9890_s3 + $0xae8] sm:$0xff] }
 0x10e   : > { %7520 = vmatpush3.bf16.msra.mxu0 %v7517_v21  ;;  %7106 = vmatprep.subr.bf16.mxu1 %v7105_v5  ;;  %v7125_v21 = vpack.c.bf16 %v4619_v7, %v4618_v2  ;;  %v7541_v23 = vpack.c.bf16 %v4883_v19, %v4882_v9  ;;  %v9366_v7 = vld [vmem:[%s8849_s22 + $0x80] sm:$0xff]  ;;  %v4632_v19 = vld [vmem:[%s9890_s3 + $0x4d0] sm:$0xff] }
 0x10f   : > { %7522 = vmatprep.subr.bf16.mxu0 %v7521_v45  ;;  %6000 = vmatprep.mubr.f32.mxu1 %v4576_v56  ;;  %v7549_v56 = vpack.c.bf16 %v4895_v48, %v4894_v4  ;;  %v4908_v4 = vld [vmem:[%s9890_s3 + $0xb70] sm:$0xff] }
 0x110   : > { %6572 = vmatprep.mubr.f32.mxu0 %v9204_v15  ;;  %6001 = vmatmul.mubr.f32.gmra.mrb[2].mxu1 %v4577_v58  ;;  %v4624_v58 = vld [vmem:[%s9890_s3 + $0x490] sm:$0xff] }
 0x111   : > { %7108 = vmatpush3.bf16.msra.mxu1 %v7105_v5  ;;  %6573 = vmatmul.mubr.f32.gmra.mrb[2].mxu0 %v9208_v50 }
 0x112   : > { %7524 = vmatpush3.bf16.msra.mxu0 %v7521_v45  ;;  %7110 = vmatprep.subr.bf16.mxu1 %v7109_v16  ;;  %v4622_v45 = vld [vmem:[%s9890_s3 + $0x480] sm:$0xff] }
 0x113   : > { %7526 = vmatprep.subr.bf16.mxu0 %v7525_v13  ;;  %6003 = vmatprep.mubr.f32.mxu1 %v4578_v18  ;;  %v7133_v11 = vpack.c.bf16 %v4623_v12, %v4622_v45  ;;  %v4626_v18 = vld [vmem:[%s9890_s3 + $0x4a0] sm:$0xff]  ;;  %v4636_v45 = vld [vmem:[%s9890_s3 + $0x4f0] sm:$0xff]  ;;  %v4637_v12 = vld [vmem:[%s9890_s3 + $0x4f8] sm:$0xff] }
 0x114   : > { %6575 = vmatprep.mubr.f32.mxu0 %v9226_v25  ;;  %6004 = vmatmul.mubr.f32.gmra.mrb[4].mxu1 %v4579_v26  ;;  %v4627_v26 = vld [vmem:[%s9890_s3 + $0x4a8] sm:$0xff]  ;;  %v7161_v48 = vpack.c.bf16 %v4637_v12, %v4636_v45  ;;  %v4652_v12 = vld [vmem:[%s9890_s3 + $0x570] sm:$0xff] }
 0x115   : > { %7112 = vmatpush3.bf16.msra.mxu1 %v7109_v16  ;;  %6576 = vmatmul.mubr.f32.gmra.mrb[4].mxu0 %v9230_v52  ;;  %v4625_v16 = vld [vmem:[%s9890_s3 + $0x498] sm:$0xff]  ;;  %v7141_v61 = vpack.c.bf16 %v4627_v26, %v4626_v18  ;;  %v4920_v18 = vld [vmem:[%s9890_s3 + $0xb90] sm:$0xff] }
 0x116   : > { %7528 = vmatpush3.bf16.msra.mxu0 %v7525_v13  ;;  %7114 = vmatprep.subr.bf16.mxu1 %v7113_v38  ;;  %v4896_v13 = vld [vmem:[%s9890_s3 + $0xb10] sm:$0xff]  ;;  %v7137_v39 = vpack.c.bf16 %v4625_v16, %v4624_v58  ;;  %v4639_v58 = vld [vmem:[%s9890_s3 + $0x508] sm:$0xff]  ;;  %v4918_v16 = vld [vmem:[%s9890_s3 + $0xb80] sm:$0xff] }
 0x117   : > { %7530 = vmatprep.subr.bf16.mxu0 %v7529_v42  ;;  %6006 = vmatprep.mubr.f32.mxu1 %v8843_v30  ;;  %v7537_v30 = vpack.c.bf16 %v4881_v0, %v4880_v59  ;;  %v7553_v51 = vpack.c.bf16 %v4897_v62, %v4896_v13  ;;  %v4919_v13 = vld [vmem:[%s9890_s3 + $0xb88] sm:$0xff]  ;;  %v4921_v26 = vld [vmem:[%s9890_s3 + $0xb98] sm:$0xff] }
 0x118   : > { %6578 = vmatprep.mubr.f32.mxu0 %v9247_v53  ;;  %6007 = vmatmul.mubr.f32.gmra.mrb[6].mxu1 %v4581_v28  ;;  %v4628_v28 = vld [vmem:[%s9890_s3 + $0x4b0] sm:$0xff] }
 0x119   : > { %7116 = vmatpush3.bf16.msra.mxu1 %v7113_v38  ;;  %6579 = vmatmul.mubr.f32.gmra.mrb[6].mxu0 %v9251_v54  ;;  %v4898_v38 = vld [vmem:[%s9890_s3 + $0xb20] sm:$0xff] }
 0x11a   : > { %7532 = vmatpush3.bf16.msra.mxu0 %v7529_v42  ;;  %7118 = vmatprep.subr.bf16.mxu1 %v7117_v34  ;;  %v4899_v42 = vld [vmem:[%s9890_s3 + $0xb28] sm:$0xff] }
 0x11b   : > { %7534 = vmatprep.subr.bf16.mxu0 %v7533_v55  ;;  %6041 = vmatprep.mubr.f32.mxu1 %v4598_v63  ;;  %v7557_v40 = vpack.c.bf16 %v4899_v42, %v4898_v38  ;;  %v4630_v63 = vld [vmem:[%s9890_s3 + $0x4c0] sm:$0xff]  ;;  %v9434_v38 = vld [vmem:[%s8175_s17 + $0x10] sm:$0xff] }
 0x11c   : > { %6613 = vmatprep.mubr.f32.mxu0 %v8917_v22  ;;  %v4885_v22 = vld [vmem:[%s9890_s3 + $0xaf8] sm:$0xff] }
 0x11d   : > { %7120 = vmatpush3.bf16.msra.mxu1 %v7117_v34  ;;  %v7545_v5 = vpack.c.bf16 %v4885_v22, %v4884_v35  ;;  %v4629_v34 = vld [vmem:[%s9890_s3 + $0x4b8] sm:$0xff]  ;;  %v4635_v35 = vld [vmem:[%s9890_s3 + $0x4e8] sm:$0xff] }
 0x11e   : > { %7536 = vmatpush3.bf16.msra.mxu0 %v7533_v55  ;;  %7122 = vmatprep.subr.bf16.mxu1 %v7121_v1  ;;  %v4901_v55 = vld [vmem:[%s9890_s3 + $0xb38] sm:$0xff]  ;;  %v7145_v59 = vpack.c.bf16 %v4629_v34, %v4628_v28  ;;  %v4907_v22 = vld [vmem:[%s9890_s3 + $0xb68] sm:$0xff]  ;;  %v9450_v34 = vld [vmem:[%s8175_s17 + $0x20] sm:$0xff] }
 0x11f   : > { %7538 = vmatprep.subr.bf16.mxu0 %v7537_v30  ;;  %v4923_v28 = vld [vmem:[%s9890_s3 + $0xba8] sm:$0xff] }
 0x121   : > { %7124 = vmatpush3.bf16.msra.mxu1 %v7121_v1  ;;  %v4903_v1 = vld [vmem:[%s9890_s3 + $0xb48] sm:$0xff] }
 0x122   : > { %7540 = vmatpush3.bf16.msra.mxu0 %v7537_v30  ;;  %7126 = vmatprep.subr.bf16.mxu1 %v7125_v21  ;;  %v4605_v30 = vld [vmem:[%s8156_s21 + $0x92] sm:$0xff] }
 0x123   : > { %7542 = vmatprep.subr.bf16.mxu0 %v7541_v23 }
 0x125   : > { %7128 = vmatpush3.bf16.msra.mxu1 %v7125_v21  ;;  %v4905_v21 = vld [vmem:[%s9890_s3 + $0xb58] sm:$0xff] }
 0x126   : > { %7544 = vmatpush3.bf16.msra.mxu0 %v7541_v23  ;;  %7130 = vmatprep.subr.bf16.mxu1 %v7129_v37  ;;  %v1665_v23 = vld [vmem:[%s8175_s17] sm:$0xff] }
 0x127   : > { %7546 = vmatprep.subr.bf16.mxu0 %v7545_v5 }
 0x129   : > { %7132 = vmatpush3.bf16.msra.mxu1 %v7129_v37  ;;  %v7157_v37 = vpack.c.bf16 %v4635_v35, %v4634_v33 }
 0x12a   : > { %7548 = vmatpush3.bf16.msra.mxu0 %v7545_v5  ;;  %7134 = vmatprep.subr.bf16.mxu1 %v7133_v11 }
 0x12b   : > { %7550 = vmatprep.subr.bf16.mxu0 %v7549_v56 }
 0x12c   : > { %6042 = vmatmul.mubr.f32.vlgmr.msra.gmra.mrb[0].mxu1 %v4599_v32  ;;  %v7581_v32 = vpack.c.bf16 %v4919_v13, %v4918_v16  ;;  %v4942_v16 = vld [vmem:[%s9890_s3 + $0xc00] sm:$0xff]  ;;  %v4943_v13 = vld [vmem:[%s9890_s3 + $0xc08] sm:$0xff] }
 0x12d   : > { %7136 = vmatpush3.bf16.msra.mxu1 %v7133_v11  ;;  %6614 = vmatmul.mubr.f32.vlgmr.msra.gmra.mrb[0].mxu0 %v8934_v41  ;;  %v4900_v41 = vld [vmem:[%s9890_s3 + $0xb30] sm:$0xff] }
 0x12e   : > { %7552 = vmatpush3.bf16.msra.mxu0 %v7549_v56  ;;  %7138 = vmatprep.subr.bf16.mxu1 %v7137_v39  ;;  %v7561_v0 = vpack.c.bf16 %v4901_v55, %v4900_v41  ;;  %v4638_v56 = vld [vmem:[%s9890_s3 + $0x500] sm:$0xff]  ;;  %v9454_v41 = vld [vmem:[%s8175_s17 + $0x30] sm:$0xff] }
 0x12f   : > { %7554 = vmatprep.subr.bf16.mxu0 %v7553_v51  ;;  %6044 = vmatprep.mubr.f32.mxu1 %v4600_v10  ;;  %v7165_v62 = vpack.c.bf16 %v4639_v58, %v4638_v56  ;;  %v7585_v10 = vpack.c.bf16 %v4921_v26, %v4920_v18  ;;  %v4654_v56 = vld [vmem:[%s9890_s3 + $0x580] sm:$0xff]  ;;  %v4655_v58 = vld [vmem:[%s9890_s3 + $0x588] sm:$0xff]  ;;  %v4944_v18 = vld [vmem:[%s9890_s3 + $0xc10] sm:$0xff] }
 0x130   : > { %6616 = vmatprep.mubr.f32.mxu0 %v8937_v44  ;;  %6045 = vmatmul.mubr.f32.gmra.mrb[2].mxu1 %v4601_v49  ;;  %v4631_v44 = vld [vmem:[%s9890_s3 + $0x4c8] sm:$0xff]  ;;  %v4642_v49 = vld [vmem:[%s9890_s3 + $0x520] sm:$0xff]  ;;  %v4945_v26 = vld [vmem:[%s9890_s3 + $0xc18] sm:$0xff] }
 0x131   : > { %7140 = vmatpush3.bf16.msra.mxu1 %v7137_v39  ;;  %6617 = vmatmul.mubr.f32.gmra.mrb[2].mxu0 %v8956_v47  ;;  %v4902_v47 = vld [vmem:[%s9890_s3 + $0xb40] sm:$0xff]  ;;  %v7149_v2 = vpack.c.bf16 %v4631_v44, %v4630_v63  ;;  %v4640_v39 = vld [vmem:[%s9890_s3 + $0x510] sm:$0xff] }
 0x132   : > { %7556 = vmatpush3.bf16.msra.mxu0 %v7553_v51  ;;  %7142 = vmatprep.subr.bf16.mxu1 %v7141_v61  ;;  %v7565_v9 = vpack.c.bf16 %v4903_v1, %v4902_v47  ;;  %v4641_v51 = vld [vmem:[%s9890_s3 + $0x518] sm:$0xff]  ;;  %v9472_v63 = vld [vmem:[%s8175_s17 + $0x40] sm:$0xff]  ;;  %v9476_v44 = vld [vmem:[%s8175_s17 + $0x50] sm:$0xff] }
 0x133   : > { %7558 = vmatprep.subr.bf16.mxu0 %v7557_v40  ;;  %6047 = vmatprep.mubr.f32.mxu1 %v4602_v57  ;;  %v7169_v42 = vpack.c.bf16 %v4641_v51, %v4640_v39  ;;  %v4656_v39 = vld [vmem:[%s9890_s3 + $0x590] sm:$0xff]  ;;  %v4657_v51 = vld [vmem:[%s9890_s3 + $0x598] sm:$0xff] }
 0x134   : > { %6619 = vmatprep.mubr.f32.mxu0 %v8959_v8  ;;  %6048 = vmatmul.mubr.f32.gmra.mrb[4].mxu1 %v4603_v60  ;;  %v4633_v8 = vld [vmem:[%s9890_s3 + $0x4d8] sm:$0xff]  ;;  %v4644_v60 = vld [vmem:[%s9890_s3 + $0x530] sm:$0xff] }
 0x135   : > { %7144 = vmatpush3.bf16.msra.mxu1 %v7141_v61  ;;  %6620 = vmatmul.mubr.f32.gmra.mrb[4].mxu0 %v8978_v17  ;;  %v4904_v17 = vld [vmem:[%s9890_s3 + $0xb50] sm:$0xff]  ;;  %v7153_v31 = vpack.c.bf16 %v4633_v8, %v4632_v19  ;;  %v4643_v61 = vld [vmem:[%s9890_s3 + $0x528] sm:$0xff] }
 0x136   : > { %7560 = vmatpush3.bf16.msra.mxu0 %v7557_v40  ;;  %7146 = vmatprep.subr.bf16.mxu1 %v7145_v59  ;;  %v4922_v40 = vld [vmem:[%s9890_s3 + $0xba0] sm:$0xff]  ;;  %v7173_v55 = vpack.c.bf16 %v4643_v61, %v4642_v49  ;;  %v9498_v19 = vld [vmem:[%s8175_s17 + $0x70] sm:$0xff]  ;;  %v7617_v49 = vpack.c.bf16 %v4945_v26, %v4944_v18 }
 0x137   : > { %7562 = vmatprep.subr.bf16.mxu0 %v7561_v0  ;;  %6050 = vmatprep.mubr.f32.mxu1 %v8981_v14  ;;  %v7569_v14 = vpack.c.bf16 %v4905_v21, %v4904_v17  ;;  %v7589_v57 = vpack.c.bf16 %v4923_v28, %v4922_v40  ;;  %v9501_v17 = vld [vmem:[%s8849_s22 + $0x81] sm:$0xff]  ;;  %v4680_v26 = vld [vmem:[%s9890_s3 + $0x610] sm:$0xff] }
 0x138   : > { %6622 = vmatprep.mubr.f32.mxu0 %v8984_v29  ;;  %6051 = vmatmul.mubr.f32.gmra.mrb[6].mxu1 %v4605_v30  ;;  %v4906_v29 = vld [vmem:[%s9890_s3 + $0xb60] sm:$0xff]  ;;  %v4647_v30 = vld [vmem:[%s9890_s3 + $0x548] sm:$0xff] }
 0x139   : > { %7148 = vmatpush3.bf16.msra.mxu1 %v7145_v59  ;;  %6623 = vmatmul.mubr.f32.gmra.mrb[6].mxu0 %v9366_v7  ;;  %v7573_v5 = vpack.c.bf16 %v4907_v22, %v4906_v29  ;;  %v4645_v59 = vld [vmem:[%s9890_s3 + $0x538] sm:$0xff]  ;;  %v4650_v29 = vld [vmem:[%s9890_s3 + $0x560] sm:$0xff]  ;;  %v4651_v22 = vld [vmem:[%s9890_s3 + $0x568] sm:$0xff] }
 0x13a   : > { %7564 = vmatpush3.bf16.msra.mxu0 %v7561_v0  ;;  %7150 = vmatprep.subr.bf16.mxu1 %v7149_v2  ;;  %v4925_v0 = vld [vmem:[%s9890_s3 + $0xbb8] sm:$0xff]  ;;  %v7177_v47 = vpack.c.bf16 %v4645_v59, %v4644_v60  ;;  %v4658_v61 = vld [vmem:[%s9890_s3 + $0x5a0] sm:$0xff]  ;;  %v4659_v40 = vld [vmem:[%s9890_s3 + $0x5a8] sm:$0xff] }
 0x13b   : > { %7566 = vmatprep.subr.bf16.mxu0 %v7565_v9  ;;  %6085 = vmatprep.mubr.f32.mxu1 %v1665_v23  ;;  %v4649_v23 = vld [vmem:[%s9890_s3 + $0x558] sm:$0xff]  ;;  %v4946_v28 = vld [vmem:[%s9890_s3 + $0xc20] sm:$0xff]  ;;  %v7205_v59 = vpack.c.bf16 %v4659_v40, %v4658_v61  ;;  %v4935_v40 = vld [vmem:[%s8849_s22 + $0x30] sm:$0xff] }
 0x13c   : > { %6657 = vmatprep.mubr.f32.mxu0 %v9053_v3  ;;  %v4909_v3 = vld [vmem:[%s9890_s3 + $0xb78] sm:$0xff] }
 0x13d   : > { %7152 = vmatpush3.bf16.msra.mxu1 %v7149_v2  ;;  %v7577_v11 = vpack.c.bf16 %v4909_v3, %v4908_v4  ;;  %v4927_v2 = vld [vmem:[%s9890_s3 + $0xbc8] sm:$0xff]  ;;  %v4653_v4 = vld [vmem:[%s9890_s3 + $0x578] sm:$0xff]  ;;  %v4932_v3 = vld [vmem:[%s9890_s3 + $0xbf0] sm:$0xff] }
 0x13e   : > { %7568 = vmatpush3.bf16.msra.mxu0 %v7565_v9  ;;  %7154 = vmatprep.subr.bf16.mxu1 %v7153_v31  ;;  %v9494_v9 = vld [vmem:[%s8175_s17 + $0x60] sm:$0xff]  ;;  %v1806_v60 = vld [vmem:[%s8175_s17 + $0x31] sm:$0xff] }
 0x13f   : > { %7570 = vmatprep.subr.bf16.mxu0 %v7569_v14  ;;  %v1942_v61 = vld [vmem:[%s8175_s17 + $0x12] sm:$0xff] }
 0x141   : > { %7156 = vmatpush3.bf16.msra.mxu1 %v7153_v31  ;;  %v4929_v31 = vld [vmem:[%s9890_s3 + $0xbd8] sm:$0xff] }
 0x142   : > { %7572 = vmatpush3.bf16.msra.mxu0 %v7569_v14  ;;  %7158 = vmatprep.subr.bf16.mxu1 %v7157_v37  ;;  %v1803_v14 = vld [vmem:[%s8175_s17 + $0x1] sm:$0xff] }
 0x143   : > { %7574 = vmatprep.subr.bf16.mxu0 %v7573_v5 }
 0x145   : > { %7160 = vmatpush3.bf16.msra.mxu1 %v7157_v37  ;;  %v4931_v37 = vld [vmem:[%s9890_s3 + $0xbe8] sm:$0xff] }
 0x146   : > { %7576 = vmatpush3.bf16.msra.mxu0 %v7573_v5  ;;  %7162 = vmatprep.subr.bf16.mxu1 %v7161_v48  ;;  %v7189_v5 = vpack.c.bf16 %v4651_v22, %v4650_v29  ;;  %v1941_v29 = vld [vmem:[%s8175_s17 + $0x2] sm:$0xff] }
 0x147   : > { %7578 = vmatprep.subr.bf16.mxu0 %v7577_v11  ;;  %v4934_v22 = vld [vmem:[%s8849_s22 + $0x20] sm:$0xff] }
 0x149   : > { %7164 = vmatpush3.bf16.msra.mxu1 %v7161_v48  ;;  %v7193_v48 = vpack.c.bf16 %v4653_v4, %v4652_v12  ;;  %v4955_v12 = vld [vmem:[%s9890_s3 + $0xc68] sm:$0xff] }
 0x14a   : > { %7580 = vmatpush3.bf16.msra.mxu0 %v7577_v11  ;;  %7166 = vmatprep.subr.bf16.mxu1 %v7165_v62 }
 0x14b   : > { %7582 = vmatprep.subr.bf16.mxu0 %v7581_v32 }
 0x14c   : > { %6086 = vmatmul.mubr.f32.vlgmr.msra.gmra.mrb[0].mxu1 %v9434_v38 }
 0x14d   : > { %7168 = vmatpush3.bf16.msra.mxu1 %v7165_v62  ;;  %6658 = vmatmul.mubr.f32.vlgmr.msra.gmra.mrb[0].mxu0 %v9071_v36  ;;  %v4924_v36 = vld [vmem:[%s9890_s3 + $0xbb0] sm:$0xff]  ;;  %v7197_v62 = vpack.c.bf16 %v4655_v58, %v4654_v56  ;;  %v4957_v56 = vld [vmem:[%s9890_s3 + $0xc78] sm:$0xff] }
 0x14e   : > { %7584 = vmatpush3.bf16.msra.mxu0 %v7581_v32  ;;  %7170 = vmatprep.subr.bf16.mxu1 %v7169_v42  ;;  %v7593_v1 = vpack.c.bf16 %v4925_v0, %v4924_v36  ;;  %v7613_v32 = vpack.c.bf16 %v4943_v13, %v4942_v16  ;;  %v4660_v0 = vld [vmem:[%s9890_s3 + $0x5b0] sm:$0xff]  ;;  %v4678_v13 = vld [vmem:[%s9890_s3 + $0x600] sm:$0xff] }
 0x14f   : > { %7586 = vmatprep.subr.bf16.mxu0 %v7585_v10  ;;  %6088 = vmatprep.mubr.f32.mxu1 %v9450_v34 }
 0x150   : > { %6660 = vmatprep.mubr.f32.mxu0 %v9075_v46  ;;  %6089 = vmatmul.mubr.f32.gmra.mrb[2].mxu1 %v9454_v41  ;;  %v4646_v46 = vld [vmem:[%s9890_s3 + $0x540] sm:$0xff] }
 0x151   : > { %7172 = vmatpush3.bf16.msra.mxu1 %v7169_v42  ;;  %6661 = vmatmul.mubr.f32.gmra.mrb[2].mxu0 %v9093_v6  ;;  %v4926_v6 = vld [vmem:[%s9890_s3 + $0xbc0] sm:$0xff]  ;;  %v7181_v8 = vpack.c.bf16 %v4647_v30, %v4646_v46  ;;  %v1804_v42 = vld [vmem:[%s8175_s17 + $0x11] sm:$0xff] }
 0x152   : > { %7588 = vmatpush3.bf16.msra.mxu0 %v7585_v10  ;;  %7174 = vmatprep.subr.bf16.mxu1 %v7173_v55  ;;  %v7597_v21 = vpack.c.bf16 %v4927_v2, %v4926_v6  ;;  %v7201_v10 = vpack.c.bf16 %v4657_v51, %v4656_v39  ;;  %v1807_v46 = vld [vmem:[%s8175_s17 + $0x41] sm:$0xff]  ;;  %v1808_v30 = vld [vmem:[%s8175_s17 + $0x51] sm:$0xff] }
 0x153   : > { %7590 = vmatprep.subr.bf16.mxu0 %v7589_v57  ;;  %6091 = vmatprep.mubr.f32.mxu1 %v9472_v63  ;;  %v4967_v39 = vld [vmem:[%s9890_s3 + $0xc88] sm:$0xff] }
 0x154   : > { %6663 = vmatprep.mubr.f32.mxu0 %v9097_v27  ;;  %6092 = vmatmul.mubr.f32.gmra.mrb[4].mxu1 %v9476_v44  ;;  %v4648_v27 = vld [vmem:[%s9890_s3 + $0x550] sm:$0xff] }
 0x155   : > { %7176 = vmatpush3.bf16.msra.mxu1 %v7173_v55  ;;  %6664 = vmatmul.mubr.f32.gmra.mrb[4].mxu0 %v9114_v24  ;;  %v4928_v24 = vld [vmem:[%s9890_s3 + $0xbd0] sm:$0xff]  ;;  %v7185_v33 = vpack.c.bf16 %v4649_v23, %v4648_v27  ;;  %v4947_v55 = vld [vmem:[%s9890_s3 + $0xc28] sm:$0xff] }
 0x156   : > { %7592 = vmatpush3.bf16.msra.mxu0 %v7589_v57  ;;  %7178 = vmatprep.subr.bf16.mxu1 %v7177_v47  ;;  %v7601_v35 = vpack.c.bf16 %v4929_v31, %v4928_v24  ;;  %v1805_v57 = vld [vmem:[%s8175_s17 + $0x21] sm:$0xff]  ;;  %v7621_v36 = vpack.c.bf16 %v4947_v55, %v4946_v28  ;;  %v1810_v23 = vld [vmem:[%s8175_s17 + $0x71] sm:$0xff] }
 0x157   : > { %7594 = vmatprep.subr.bf16.mxu0 %v7593_v1  ;;  %6094 = vmatprep.mubr.f32.mxu1 %v9494_v9  ;;  %v1809_v27 = vld [vmem:[%s8175_s17 + $0x61] sm:$0xff] }
 0x158   : > { %6666 = vmatprep.mubr.f32.mxu0 %v9118_v20  ;;  %6095 = vmatmul.mubr.f32.gmra.mrb[6].mxu1 %v9498_v19  ;;  %v4930_v20 = vld [vmem:[%s9890_s3 + $0xbe0] sm:$0xff] }
 0x159   : > { %7180 = vmatpush3.bf16.msra.mxu1 %v7177_v47  ;;  %6667 = vmatmul.mubr.f32.gmra.mrb[6].mxu0 %v9501_v17  ;;  %v7605_v45 = vpack.c.bf16 %v4931_v37, %v4930_v20  ;;  %v4661_v47 = vld [vmem:[%s9890_s3 + $0x5b8] sm:$0xff]  ;;  %v9618_v31 = vld [vmem:[%s8849_s22 + $0x82] sm:$0xff] }
 0x15a   : > { %7596 = vmatpush3.bf16.msra.mxu0 %v7593_v1  ;;  %7182 = vmatprep.subr.bf16.mxu1 %v7181_v8  ;;  %v4949_v1 = vld [vmem:[%s9890_s3 + $0xc38] sm:$0xff]  ;;  %v7209_v6 = vpack.c.bf16 %v4661_v47, %v4660_v0  ;;  %v1943_v0 = vld [vmem:[%s8175_s17 + $0x22] sm:$0xff] }
 0x15b   : > { %7598 = vmatprep.subr.bf16.mxu0 %v7597_v21  ;;  %6129 = vmatprep.mubr.f32.mxu1 %v1803_v14  ;;  %v4936_v47 = vld [vmem:[%s8849_s22 + $0x40] sm:$0xff] }
 0x15c   : > { %6701 = vmatprep.mubr.f32.mxu0 %v9187_v43  ;;  %v4933_v43 = vld [vmem:[%s9890_s3 + $0xbf8] sm:$0xff] }
 0x15d   : > { %7184 = vmatpush3.bf16.msra.mxu1 %v7181_v8  ;;  %v7609_v11 = vpack.c.bf16 %v4933_v43, %v4932_v3  ;;  %v4662_v8 = vld [vmem:[%s9890_s3 + $0x5c0] sm:$0xff]  ;;  %v4668_v43 = vld [vmem:[%s9890_s3 + $0x5f0] sm:$0xff] }
 0x15e   : > { %7600 = vmatpush3.bf16.msra.mxu0 %v7597_v21  ;;  %7186 = vmatprep.subr.bf16.mxu1 %v7185_v33  ;;  %v4951_v21 = vld [vmem:[%s9890_s3 + $0xc48] sm:$0xff] }
 0x15f   : > { %7602 = vmatprep.subr.bf16.mxu0 %v7601_v35 }
 0x161   : > { %7188 = vmatpush3.bf16.msra.mxu1 %v7185_v33  ;;  %v4664_v33 = vld [vmem:[%s9890_s3 + $0x5d0] sm:$0xff] }
 0x162   : > { %7604 = vmatpush3.bf16.msra.mxu0 %v7601_v35  ;;  %7190 = vmatprep.subr.bf16.mxu1 %v7189_v5  ;;  %v4953_v35 = vld [vmem:[%s9890_s3 + $0xc58] sm:$0xff] }
 0x163   : > { %7606 = vmatprep.subr.bf16.mxu0 %v7605_v45 }
 0x165   : > { %7192 = vmatpush3.bf16.msra.mxu1 %v7189_v5  ;;  %v4666_v5 = vld [vmem:[%s9890_s3 + $0x5e0] sm:$0xff] }
 0x166   : > { %7608 = vmatpush3.bf16.msra.mxu0 %v7605_v45  ;;  %7194 = vmatprep.subr.bf16.mxu1 %v7193_v48  ;;  %v4667_v45 = vld [vmem:[%s9890_s3 + $0x5e8] sm:$0xff] }
 0x167   : > { %7610 = vmatprep.subr.bf16.mxu0 %v7609_v11  ;;  %v7221_v4 = vpack.c.bf16 %v4667_v45, %v4666_v5  ;;  %v4688_v45 = vld [vmem:[%s9890_s3 + $0x650] sm:$0xff] }
 0x169   : > { %7196 = vmatpush3.bf16.msra.mxu1 %v7193_v48  ;;  %v4669_v48 = vld [vmem:[%s9890_s3 + $0x5f8] sm:$0xff] }
 0x16a   : > { %7612 = vmatpush3.bf16.msra.mxu0 %v7609_v11  ;;  %7198 = vmatprep.subr.bf16.mxu1 %v7197_v62  ;;  %v4956_v11 = vld [vmem:[%s9890_s3 + $0xc70] sm:$0xff]  ;;  %v7225_v58 = vpack.c.bf16 %v4669_v48, %v4668_v43 }
 0x16b   : > { %7614 = vmatprep.subr.bf16.mxu0 %v7613_v32  ;;  %v7641_v16 = vpack.c.bf16 %v4957_v56, %v4956_v11  ;;  %v4690_v11 = vld [vmem:[%s9890_s3 + $0x660] sm:$0xff]  ;;  %v4691_v56 = vld [vmem:[%s9890_s3 + $0x668] sm:$0xff] }
 0x16c   : > { %6130 = vmatmul.mubr.f32.vlgmr.msra.gmra.mrb[0].mxu1 %v1804_v42  ;;  %v4681_v42 = vld [vmem:[%s9890_s3 + $0x618] sm:$0xff] }
 0x16d   : > { %7200 = vmatpush3.bf16.msra.mxu1 %v7197_v62  ;;  %6702 = vmatmul.mubr.f32.vlgmr.msra.gmra.mrb[0].mxu0 %v9204_v15  ;;  %v4948_v15 = vld [vmem:[%s9890_s3 + $0xc30] sm:$0xff]  ;;  %v4679_v62 = vld [vmem:[%s9890_s3 + $0x608] sm:$0xff]  ;;  %v7233_v28 = vpack.c.bf16 %v4681_v42, %v4680_v26  ;;  %v4990_v26 = vld [vmem:[%s9890_s3 + $0xd00] sm:$0xff] }
 0x16e   : > { %7616 = vmatpush3.bf16.msra.mxu0 %v7613_v32  ;;  %7202 = vmatprep.subr.bf16.mxu1 %v7201_v10  ;;  %v7625_v2 = vpack.c.bf16 %v4949_v1, %v4948_v15  ;;  %v4966_v32 = vld [vmem:[%s9890_s3 + $0xc80] sm:$0xff]  ;;  %v7229_v51 = vpack.c.bf16 %v4679_v62, %v4678_v13  ;;  %v1944_v15 = vld [vmem:[%s8175_s17 + $0x32] sm:$0xff]  ;;  %v4991_v42 = vld [vmem:[%s9890_s3 + $0xd08] sm:$0xff] }
 0x16f   : > { %7618 = vmatprep.subr.bf16.mxu0 %v7617_v49  ;;  %6132 = vmatprep.mubr.f32.mxu1 %v1805_v57  ;;  %v7645_v18 = vpack.c.bf16 %v4967_v39, %v4966_v32  ;;  %v4682_v57 = vld [vmem:[%s9890_s3 + $0x620] sm:$0xff]  ;;  %v4692_v62 = vld [vmem:[%s9890_s3 + $0x670] sm:$0xff]  ;;  %v4981_v39 = vld [vmem:[%s9890_s3 + $0xcf8] sm:$0xff] }
 0x170   : > { %6704 = vmatprep.mubr.f32.mxu0 %v9208_v50  ;;  %6133 = vmatmul.mubr.f32.gmra.mrb[2].mxu1 %v1806_v60  ;;  %v4663_v50 = vld [vmem:[%s9890_s3 + $0x5c8] sm:$0xff]  ;;  %v4980_v32 = vld [vmem:[%s9890_s3 + $0xcf0] sm:$0xff] }
 0x171   : > { %7204 = vmatpush3.bf16.msra.mxu1 %v7201_v10  ;;  %6705 = vmatmul.mubr.f32.gmra.mrb[2].mxu0 %v9226_v25  ;;  %v4950_v25 = vld [vmem:[%s9890_s3 + $0xc40] sm:$0xff]  ;;  %v7213_v24 = vpack.c.bf16 %v4663_v50, %v4662_v8  ;;  %v4968_v10 = vld [vmem:[%s9890_s3 + $0xc90] sm:$0xff]  ;;  %v4683_v60 = vld [vmem:[%s9890_s3 + $0x628] sm:$0xff] }
 0x172   : > { %7620 = vmatpush3.bf16.msra.mxu0 %v7617_v49  ;;  %7206 = vmatprep.subr.bf16.mxu1 %v7205_v59  ;;  %v7629_v14 = vpack.c.bf16 %v4951_v21, %v4950_v25  ;;  %v4969_v49 = vld [vmem:[%s9890_s3 + $0xc98] sm:$0xff]  ;;  %v7237_v1 = vpack.c.bf16 %v4683_v60, %v4682_v57  ;;  %v4972_v8 = vld [vmem:[%s9890_s3 + $0xcb0] sm:$0xff]  ;;  %v1945_v25 = vld [vmem:[%s8175_s17 + $0x42] sm:$0xff] }
 0x173   : > { %7622 = vmatprep.subr.bf16.mxu0 %v7621_v36  ;;  %6135 = vmatprep.mubr.f32.mxu1 %v1807_v46  ;;  %v7649_v55 = vpack.c.bf16 %v4969_v49, %v4968_v10  ;;  %v4937_v46 = vld [vmem:[%s8849_s22 + $0x50] sm:$0xff]  ;;  %v4973_v50 = vld [vmem:[%s9890_s3 + $0xcb8] sm:$0xff]  ;;  %v4938_v21 = vld [vmem:[%s8849_s22 + $0x60] sm:$0xff]  ;;  %v7677_v10 = vpack.c.bf16 %v4991_v42, %v4990_v26 }
 0x174   : > { %6707 = vmatprep.mubr.f32.mxu0 %v9230_v52  ;;  %6136 = vmatmul.mubr.f32.gmra.mrb[4].mxu1 %v1808_v30  ;;  %v4665_v52 = vld [vmem:[%s9890_s3 + $0x5d8] sm:$0xff]  ;;  %v4992_v49 = vld [vmem:[%s9890_s3 + $0xd10] sm:$0xff]  ;;  %v4994_v57 = vld [vmem:[%s9890_s3 + $0xd20] sm:$0xff] }
 0x175   : > { %7208 = vmatpush3.bf16.msra.mxu1 %v7205_v59  ;;  %6708 = vmatmul.mubr.f32.gmra.mrb[4].mxu0 %v9247_v53  ;;  %v4952_v53 = vld [vmem:[%s9890_s3 + $0xc50] sm:$0xff]  ;;  %v7217_v20 = vpack.c.bf16 %v4665_v52, %v4664_v33  ;;  %v4970_v59 = vld [vmem:[%s9890_s3 + $0xca0] sm:$0xff]  ;;  %v4687_v52 = vld [vmem:[%s9890_s3 + $0x648] sm:$0xff] }
 0x176   : > { %7624 = vmatpush3.bf16.msra.mxu0 %v7621_v36  ;;  %7210 = vmatprep.subr.bf16.mxu1 %v7209_v6  ;;  %v7633_v37 = vpack.c.bf16 %v4953_v35, %v4952_v53  ;;  %v4971_v36 = vld [vmem:[%s9890_s3 + $0xca8] sm:$0xff]  ;;  %v4686_v33 = vld [vmem:[%s9890_s3 + $0x640] sm:$0xff] }
 0x177   : > { %7626 = vmatprep.subr.bf16.mxu0 %v7625_v2  ;;  %6138 = vmatprep.mubr.f32.mxu1 %v1809_v27  ;;  %v7653_v30 = vpack.c.bf16 %v4971_v36, %v4970_v59  ;;  %v1946_v27 = vld [vmem:[%s8175_s17 + $0x52] sm:$0xff]  ;;  %v4974_v53 = vld [vmem:[%s9890_s3 + $0xcc0] sm:$0xff]  ;;  %v4975_v35 = vld [vmem:[%s9890_s3 + $0xcc8] sm:$0xff] }
 0x178   : > { %6710 = vmatprep.mubr.f32.mxu0 %v9251_v54  ;;  %6139 = vmatmul.mubr.f32.gmra.mrb[6].mxu1 %v1810_v23  ;;  %v4954_v54 = vld [vmem:[%s9890_s3 + $0xc60] sm:$0xff]  ;;  %v7661_v5 = vpack.c.bf16 %v4975_v35, %v4974_v53  ;;  %v4995_v60 = vld [vmem:[%s9890_s3 + $0xd28] sm:$0xff]  ;;  %v4961_v59 = vld [vmem:[%s8849_s22 + $0x51] sm:$0xff] }
 0x179   : > { %7212 = vmatpush3.bf16.msra.mxu1 %v7209_v6  ;;  %6711 = vmatmul.mubr.f32.gmra.mrb[6].mxu0 %v9618_v31  ;;  %v7637_v3 = vpack.c.bf16 %v4955_v12, %v4954_v54  ;;  %v4684_v6 = vld [vmem:[%s9890_s3 + $0x630] sm:$0xff]  ;;  %v4689_v54 = vld [vmem:[%s9890_s3 + $0x658] sm:$0xff]  ;;  %v7685_v36 = vpack.c.bf16 %v4995_v60, %v4994_v57 }
 0x17a   : > { %7628 = vmatpush3.bf16.msra.mxu0 %v7625_v2  ;;  %7214 = vmatprep.subr.bf16.mxu1 %v7213_v24  ;;  %v4685_v2 = vld [vmem:[%s9890_s3 + $0x638] sm:$0xff]  ;;  %v4976_v12 = vld [vmem:[%s9890_s3 + $0xcd0] sm:$0xff]  ;;  %v7249_v43 = vpack.c.bf16 %v4689_v54, %v4688_v45 }
 0x17b   : > { %7630 = vmatprep.subr.bf16.mxu0 %v7629_v14  ;;  %6173 = vmatprep.mubr.f32.mxu1 %v1941_v29  ;;  %v7241_v23 = vpack.c.bf16 %v4685_v2, %v4684_v6  ;;  %v1947_v29 = vld [vmem:[%s8175_s17 + $0x62] sm:$0xff]  ;;  %v5000_v6 = vld [vmem:[%s9890_s3 + $0xd50] sm:$0xff] }
 0x17c   : > { %6745 = vmatprep.mubr.f32.mxu0 %v4934_v22  ;;  %v1948_v22 = vld [vmem:[%s8175_s17 + $0x72] sm:$0xff]  ;;  %v4982_v2 = vld [vmem:[%s8849_s22 + $0x22] sm:$0xff] }
 0x17d   : > { %7216 = vmatpush3.bf16.msra.mxu1 %v7213_v24  ;;  %v4939_v24 = vld [vmem:[%s8849_s22 + $0x70] sm:$0xff] }
 0x17e   : > { %7632 = vmatpush3.bf16.msra.mxu0 %v7629_v14  ;;  %7218 = vmatprep.subr.bf16.mxu1 %v7217_v20  ;;  %v7657_v14 = vpack.c.bf16 %v4973_v50, %v4972_v8  ;;  %v4986_v8 = vld [vmem:[%s8849_s22 + $0x62] sm:$0xff]  ;;  %v4985_v53 = vld [vmem:[%s8849_s22 + $0x52] sm:$0xff] }
 0x17f   : > { %7634 = vmatprep.subr.bf16.mxu0 %v7633_v37  ;;  %v5003_v50 = vld [vmem:[%s9890_s3 + $0xd68] sm:$0xff] }
 0x181   : > { %7220 = vmatpush3.bf16.msra.mxu1 %v7217_v20  ;;  %v7245_v20 = vpack.c.bf16 %v4687_v52, %v4686_v33  ;;  %v4984_v33 = vld [vmem:[%s8849_s22 + $0x42] sm:$0xff]  ;;  %v4989_v52 = vld [vmem:[%s8849_s22 + $0x92] sm:$0xff] }
 0x182   : > { %7636 = vmatpush3.bf16.msra.mxu0 %v7633_v37  ;;  %7222 = vmatprep.subr.bf16.mxu1 %v7221_v4  ;;  %v4941_v37 = vld [vmem:[%s8849_s22 + $0x90] sm:$0xff] }
 0x183   : > { %7638 = vmatprep.subr.bf16.mxu0 %v7637_v3 }
 0x185   : > { %7224 = vmatpush3.bf16.msra.mxu1 %v7221_v4  ;;  %v4977_v4 = vld [vmem:[%s9890_s3 + $0xcd8] sm:$0xff] }
 0x186   : > { %7640 = vmatpush3.bf16.msra.mxu0 %v7637_v3  ;;  %7226 = vmatprep.subr.bf16.mxu1 %v7225_v58  ;;  %v4958_v3 = vld [vmem:[%s8849_s22 + $0x21] sm:$0xff]  ;;  %v7665_v48 = vpack.c.bf16 %v4977_v4, %v4976_v12 }
 0x187   : > { %7642 = vmatprep.subr.bf16.mxu0 %v7641_v16 }
 0x189   : > { %7228 = vmatpush3.bf16.msra.mxu1 %v7225_v58  ;;  %v4979_v58 = vld [vmem:[%s9890_s3 + $0xce8] sm:$0xff] }
 0x18a   : > { %7644 = vmatpush3.bf16.msra.mxu0 %v7641_v16  ;;  %7230 = vmatprep.subr.bf16.mxu1 %v7229_v51  ;;  %v7253_v16 = vpack.c.bf16 %v4691_v56, %v4690_v11 }
 0x18b   : > { %7646 = vmatprep.subr.bf16.mxu0 %v7645_v18 }
 0x18c   : > { %6174 = vmatmul.mubr.f32.vlgmr.msra.gmra.mrb[0].mxu1 %v1942_v61  ;;  %v4993_v61 = vld [vmem:[%s9890_s3 + $0xd18] sm:$0xff] }
 0x18d   : > { %7232 = vmatpush3.bf16.msra.mxu1 %v7229_v51  ;;  %6746 = vmatmul.mubr.f32.vlgmr.msra.gmra.mrb[0].mxu0 %v4935_v40  ;;  %v4959_v40 = vld [vmem:[%s8849_s22 + $0x31] sm:$0xff] }
 0x18e   : > { %7648 = vmatpush3.bf16.msra.mxu0 %v7645_v18  ;;  %7234 = vmatprep.subr.bf16.mxu1 %v7233_v28  ;;  %v7673_v18 = vpack.c.bf16 %v4981_v39, %v4980_v32 }
 0x18f   : > { %7650 = vmatprep.subr.bf16.mxu0 %v7649_v55  ;;  %6176 = vmatprep.mubr.f32.mxu1 %v1943_v0  ;;  %v4996_v0 = vld [vmem:[%s9890_s3 + $0xd30] sm:$0xff] }
 0x190   : > { %6748 = vmatprep.mubr.f32.mxu0 %v4936_v47  ;;  %6177 = vmatmul.mubr.f32.gmra.mrb[2].mxu1 %v1944_v15  ;;  %v4997_v47 = vld [vmem:[%s9890_s3 + $0xd38] sm:$0xff]  ;;  %v4998_v15 = vld [vmem:[%s9890_s3 + $0xd40] sm:$0xff] }
 0x191   : > { %7236 = vmatpush3.bf16.msra.mxu1 %v7233_v28  ;;  %6749 = vmatmul.mubr.f32.gmra.mrb[2].mxu0 %v4937_v46  ;;  %v7681_v28 = vpack.c.bf16 %v4993_v61, %v4992_v49  ;;  %v4965_v46 = vld [vmem:[%s8849_s22 + $0x91] sm:$0xff] }
 0x192   : > { %7652 = vmatpush3.bf16.msra.mxu0 %v7649_v55  ;;  %7238 = vmatprep.subr.bf16.mxu1 %v7237_v1  ;;  %v4960_v55 = vld [vmem:[%s8849_s22 + $0x41] sm:$0xff] }
 0x193   : > { %7654 = vmatprep.subr.bf16.mxu0 %v7653_v30  ;;  %6179 = vmatprep.mubr.f32.mxu1 %v1945_v25 }
 0x194   : > { %6751 = vmatprep.mubr.f32.mxu0 %v4938_v21  ;;  %6180 = vmatmul.mubr.f32.gmra.mrb[4].mxu1 %v1946_v27  ;;  %v5004_v21 = vld [vmem:[%s9890_s3 + $0xd70] sm:$0xff]  ;;  %v5005_v27 = vld [vmem:[%s9890_s3 + $0xd78] sm:$0xff] }
 0x195   : > { %7240 = vmatpush3.bf16.msra.mxu1 %v7237_v1  ;;  %6752 = vmatmul.mubr.f32.gmra.mrb[4].mxu0 %v4939_v24  ;;  %v4999_v1 = vld [vmem:[%s9890_s3 + $0xd48] sm:$0xff]  ;;  %v4987_v24 = vld [vmem:[%s8849_s22 + $0x72] sm:$0xff] }
 0x196   : > { %7656 = vmatpush3.bf16.msra.mxu0 %v7653_v30  ;;  %7242 = vmatprep.subr.bf16.mxu1 %v7241_v23  ;;  %v7693_v30 = vpack.c.bf16 %v4999_v1, %v4998_v15 }
 0x197   : > { %7658 = vmatprep.subr.bf16.mxu0 %v7657_v14  ;;  %6182 = vmatprep.mubr.f32.mxu1 %v1947_v29 }
 0x198   : > { %6754 = vmatprep.mubr.f32.mxu0 %v9366_v7  ;;  %6183 = vmatmul.mubr.f32.gmra.mrb[6].mxu1 %v1948_v22  ;;  %v4978_v7 = vld [vmem:[%s9890_s3 + $0xce0] sm:$0xff] }
 0x199   : > { %7244 = vmatpush3.bf16.msra.mxu1 %v7241_v23  ;;  %6755 = vmatmul.mubr.f32.gmra.mrb[6].mxu0 %v4941_v37  ;;  %v7669_v13 = vpack.c.bf16 %v4979_v58, %v4978_v7  ;;  %v7705_v23 = vpack.c.bf16 %v5005_v27, %v5004_v21  ;;  %v5006_v7 = vld [vmem:[%s9891_s4] ss:$0 sm:$0xff] }
 0x19a   : > { %7660 = vmatpush3.bf16.msra.mxu0 %v7657_v14  ;;  %7246 = vmatprep.subr.bf16.mxu1 %v7245_v20  ;;  %v4983_v14 = vld [vmem:[%s8849_s22 + $0x32] sm:$0xff] }
 0x19b   : > { %7662 = vmatprep.subr.bf16.mxu0 %v7661_v5  ;;  %6217 = vmatprep.mubr.f32.mxu1 %v9434_v38  ;;  %v4693_v38 = vld [vmem:[%s9890_s3 + $0x678] sm:$0xff] }
 0x19c   : > { %6789 = vmatprep.mubr.f32.mxu0 %v4958_v3  ;;  %v7257_v51 = vpack.c.bf16 %v4693_v38, %v4692_v62 }
 0x19d   : > { %7248 = vmatpush3.bf16.msra.mxu1 %v7245_v20 }
 0x19e   : > { %7664 = vmatpush3.bf16.msra.mxu0 %v7661_v5  ;;  %7250 = vmatprep.subr.bf16.mxu1 %v7249_v43 }
 0x19f   : > { %7666 = vmatprep.subr.bf16.mxu0 %v7665_v48 }
 0x1a1   : > { %7252 = vmatpush3.bf16.msra.mxu1 %v7249_v43 }
 0x1a2   : > { %7668 = vmatpush3.bf16.msra.mxu0 %v7665_v48  ;;  %7254 = vmatprep.subr.bf16.mxu1 %v7253_v16 }
 0x1a3   : > { %7670 = vmatprep.subr.bf16.mxu0 %v7669_v13 }
 0x1a5   : > { %7256 = vmatpush3.bf16.msra.mxu1 %v7253_v16 }
 0x1a6   : > { %7672 = vmatpush3.bf16.msra.mxu0 %v7669_v13  ;;  %7258 = vmatprep.subr.bf16.mxu1 %v7257_v51 }
 0x1a7   : > { %7674 = vmatprep.subr.bf16.mxu0 %v7673_v18 }
 0x1a9   : > { %7260 = vmatpush3.bf16.msra.mxu1 %v7257_v51 }
 0x1aa   : > { %7676 = vmatpush3.bf16.msra.mxu0 %v7673_v18  ;;  %7709 = vmatprep.subr.bf16.mxu1 %v7677_v10 }
 0x1ab   : > { %7678 = vmatprep.subr.bf16.mxu0 %v7677_v10 }
 0x1ac   : > { %6218 = vmatmul.mubr.f32.vlgmr.msra.gmra.mrb[0].mxu1 %v9450_v34  ;;  %v4962_v34 = vld [vmem:[%s8849_s22 + $0x61] sm:$0xff] }
 0x1ad   : > { %6790 = vmatmul.mubr.f32.vlgmr.msra.gmra.mrb[0].mxu0 %v4959_v40  ;;  %7717 = vmatpush3.bf16.msra.mxu1 %v7677_v10 }
 0x1ae   : > { %7680 = vmatpush3.bf16.msra.mxu0 %v7677_v10  ;;  %6220 = vmatprep.mubr.f32.mxu1 %v9454_v41  ;;  %v4963_v41 = vld [vmem:[%s8849_s22 + $0x71] sm:$0xff]  ;;  %s4439_s22 = sshll.u32 %s9912_s24, 3  ;;  %s437_s24 = scalar_lea.vmem %s9894_s7, %s4443_s23 }
 0x1af   : > { %6792 = vmatprep.mubr.f32.mxu0 %v4960_v55  ;;  %7682 = vmatprep.subr.bf16.mxu0 %v7681_v28  ;;  %s419_s12 = sadd.s32 %s4440_s9, %s4439_s22 }
 0x1b0   : > { %6221 = vmatmul.mubr.f32.gmra.mrb[2].mxu1 %v9472_v63  ;;  %7710 = vmatprep.subr.bf16.mxu1 %v7681_v28  ;;  %v7689_v63 = vpack.c.bf16 %v4997_v47, %v4996_v0  ;;  %s4441_s11 = sshll.u32 %s419_s12, 3 }
 0x1b1   : > { %6793 = vmatmul.mubr.f32.gmra.mrb[2].mxu0 %v4961_v59  ;;  %7718 = vmatpush3.bf16.msra.mxu1 %v7681_v28 }
 0x1b2   : > { %7684 = vmatpush3.bf16.msra.mxu0 %v7681_v28  ;;  %6223 = vmatprep.mubr.f32.mxu1 %v9476_v44  ;;  %v4677_v44 = vld [vmem:[%s8175_s17 + $0x80] sm:$0xff]  ;;  %s9854_s17 = scalar_lea.vmem %s9892_s5, %s4441_s11 }
 0x1b3   : > { %6795 = vmatprep.mubr.f32.mxu0 %v4962_v34  ;;  %7686 = vmatprep.subr.bf16.mxu0 %v7685_v36 }
 0x1b4   : > { %6224 = vmatmul.mubr.f32.gmra.mrb[4].mxu1 %v9494_v9  ;;  %7711 = vmatprep.subr.bf16.mxu1 %v7685_v36  ;;  %v5001_v9 = vld [vmem:[%s9890_s3 + $0xd58] sm:$0xff] }
 0x1b5   : > { %6796 = vmatmul.mubr.f32.gmra.mrb[4].mxu0 %v4963_v41  ;;  %7719 = vmatpush3.bf16.msra.mxu1 %v7685_v36 }
 0x1b6   : > { %7688 = vmatpush3.bf16.msra.mxu0 %v7685_v36  ;;  %6226 = vmatprep.mubr.f32.mxu1 %v9498_v19  ;;  %v7697_v19 = vpack.c.bf16 %v5001_v9, %v5000_v6 }
 0x1b7   : > { %6798 = vmatprep.mubr.f32.mxu0 %v9501_v17  ;;  %7690 = vmatprep.subr.bf16.mxu0 %v7689_v63  ;;  %v5002_v17 = vld [vmem:[%s9890_s3 + $0xd60] sm:$0xff] }
 0x1b8   : > { %6227 = vmatmul.mubr.f32.gmra.mrb[6].mxu1 %v4677_v44  ;;  %7712 = vmatprep.subr.bf16.mxu1 %v7689_v63  ;;  %v7701_v25 = vpack.c.bf16 %v5003_v50, %v5002_v17 }
 0x1b9   : > { %6799 = vmatmul.mubr.f32.gmra.mrb[6].mxu0 %v4965_v46  ;;  %7720 = vmatpush3.bf16.msra.mxu1 %v7689_v63 }
 0x1ba   : > { %7692 = vmatpush3.bf16.msra.mxu0 %v7689_v63  ;;  %7713 = vmatprep.subr.bf16.mxu1 %v7693_v30 }
 0x1bb   : > { %7694 = vmatprep.subr.bf16.mxu0 %v7693_v30  ;;  %6833 = vmatprep.mubr.f32.mxu0 %v4982_v2 }
 0x1bc   : > { %6839 = vmatprep.mubr.f32.mxu1 %v4986_v8 }
 0x1bd   : > { %7721 = vmatpush3.bf16.msra.mxu1 %v7693_v30 }
 0x1be   : > { %7696 = vmatpush3.bf16.msra.mxu0 %v7693_v30  ;;  %7714 = vmatprep.subr.bf16.mxu1 %v7697_v19 }
 0x1bf   : > { %7698 = vmatprep.subr.bf16.mxu0 %v7697_v19 }
 0x1c1   : > { %7722 = vmatpush3.bf16.msra.mxu1 %v7697_v19 }
 0x1c2   : > { %7700 = vmatpush3.bf16.msra.mxu0 %v7697_v19  ;;  %7715 = vmatprep.subr.bf16.mxu1 %v7701_v25 }
 0x1c3   : > { %7702 = vmatprep.subr.bf16.mxu0 %v7701_v25 }
 0x1c5   : > { %7723 = vmatpush3.bf16.msra.mxu1 %v7701_v25 }
 0x1c6   : > { %7704 = vmatpush3.bf16.msra.mxu0 %v7701_v25  ;;  %7716 = vmatprep.subr.bf16.mxu1 %v7705_v23 }
 0x1c7   : > { %7706 = vmatprep.subr.bf16.mxu0 %v7705_v23 }
 0x1c9   : > { %7724 = vmatpush3.bf16.msra.mxu1 %v7705_v23 }
 0x1ca   : > { %7708 = vmatpush3.bf16.msra.mxu0 %v7705_v23 }
 0x1cc   : > { %6840 = vmatmul.mubr.f32.vlgmr.msra.gmra.mrb[8].mxu1 %v4987_v24 }
 0x1cd   : > { %6834 = vmatmul.mubr.f32.vlgmr.msra.gmra.mrb[0].mxu0 %v4983_v14  ;;  %6842 = vmatprep.mubr.f32.mxu1 %v9618_v31 }
 0x1ce   : > { %6836 = vmatprep.mubr.f32.mxu0 %v4984_v33 }
 0x1d0   : > { %6843 = vmatmul.mubr.f32.gmra.mrb[10].mxu1 %v4989_v52 }
 0x1d1   : > { %6837 = vmatmul.mubr.f32.gmra.mrb[2].mxu0 %v4985_v53 }
 0x27f   : > { %v6219_v35 = vpop.f32.mrb[0].mxu1 }
 0x280   : > { %v2171_v29 = vpop.f32.mrb[1].mxu1 }
 0x283   : > { %v6222_v22 = vpop.f32.mrb[2].mxu1 }
 0x284   : > { %v2181_v20 = vpop.f32.mrb[3].mxu1 }
 0x287   : > { %v6225_v37 = vpop.f32.mrb[4].mxu1 }
 0x288   : > { %v6797_v5 = vpop.f32.mrb[4].mxu0  ;;  %v2191_v45 = vpop.f32.mrb[5].mxu1 }
 0x289   : > { %v7729_v54 = vadd.f32 %v6797_v5, %v6225_v37  ;;  %v3988_v12 = vpop.f32.mrb[5].mxu0 }
 0x28a   : > { %v7731_v4 = vadd.f32 %v3988_v12, %v2191_v45 }
 0x28b   : > { %v6228_v3 = vpop.f32.mrb[6].mxu1 }
 0x28c   : > { %v6800_v31 = vpop.f32.mrb[6].mxu0  ;;  %v2201_v43 = vpop.f32.mrb[7].mxu1 }
 0x28d   : > { %v7733_v48 = vadd.f32 %v6800_v31, %v6228_v3  ;;  %v3998_v11 = vpop.f32.mrb[7].mxu0 }
 0x28e   : > { %v7735_v56 = vadd.f32 %v3998_v11, %v2201_v43 }
 0x29f   : > { %v6841_v58 = vpop.f32.mrb[8].mxu1 }
 0x2a0   : > { %v6835_v16 = vpop.f32.mrb[0].mxu0  ;;  %v7730_v13 = vadd.f32 %v7729_v54, %v6841_v58  ;;  %v4126_v62 = vpop.f32.mrb[9].mxu1 }
 0x2a1   : > { %v7725_v38 = vadd.f32 %v6835_v16, %v6219_v35  ;;  %v4106_v32 = vpop.f32.mrb[1].mxu0  ;;  %v7732_v39 = vadd.f32 %v7731_v4, %v4126_v62 }
 0x2a2   : > { %v4165_v51 = vadd.f32 %v7730_v13, %v5006_v7  ;;  %v7726_v18 = vadd.f32 %v4106_v32, %v2171_v29 }
 0x2a3   : > { %v4161_v26 = vadd.f32 %v7725_v38, %v5006_v7  ;;  %v4164_v42 = vadd.f32 %v7732_v39, %v5006_v7  ;;  %v6844_v10 = vpop.f32.mrb[10].mxu1 }
 0x2a4   : > { %4173 = vst [vmem:[%s9854_s17 + $0x28] sm:$0xff] %v4165_v51  ;;  %v4160_v49 = vadd.f32 %v7726_v18, %v5006_v7  ;;  %v6838_v61 = vpop.f32.mrb[2].mxu0  ;;  %v7734_v40 = vadd.f32 %v7733_v48, %v6844_v10  ;;  %v4136_v28 = vpop.f32.mrb[11].mxu1  ;;  %v4189_v17 = vmul.f32 %v4165_v51, %v4165_v51 }
 0x2a5   : > { %4169 = vst [vmem:[%s9854_s17 + $0x8] sm:$0xff] %v4161_v26  ;;  %v4185_v55 = vmul.f32 %v4161_v26, %v4161_v26  ;;  %4172 = vst [vmem:[%s9854_s17 + $0x20] sm:$0xff] %v4164_v42  ;;  %v7727_v57 = vadd.f32 %v6838_v61, %v6222_v22  ;;  %v4116_v60 = vpop.f32.mrb[3].mxu0  ;;  %v7736_v59 = vadd.f32 %v7735_v56, %v4136_v28 }
 0x2a6   : > { %4168 = vst [vmem:[%s9854_s17] sm:$0xff] %v4160_v49  ;;  %v4176_v36 = vadd.f32 %v4161_v26, %v4160_v49  ;;  %v4184_v34 = vmul.f32 %v4160_v49, %v4160_v49  ;;  %v4167_v0 = vadd.f32 %v7734_v40, %v5006_v7  ;;  %v7728_v47 = vadd.f32 %v4116_v60, %v2181_v20 }
 0x2a7   : > { %v4163_v41 = vadd.f32 %v7727_v57, %v5006_v7  ;;  %v4166_v63 = vadd.f32 %v7736_v59, %v5006_v7  ;;  %v4188_v2 = vmul.f32 %v4164_v42, %v4164_v42 }
 0x2a8   : > { %v4192_v15 = vadd.f32 %v4185_v55, %v4184_v34  ;;  %4175 = vst [vmem:[%s9854_s17 + $0x38] sm:$0xff] %v4167_v0  ;;  %v4162_v1 = vadd.f32 %v7728_v47, %v5006_v7  ;;  %v4191_v24 = vmul.f32 %v4167_v0, %v4167_v0 }
 0x2a9   : > { %4171 = vst [vmem:[%s9854_s17 + $0x18] sm:$0xff] %v4163_v41  ;;  %4174 = vst [vmem:[%s9854_s17 + $0x30] sm:$0xff] %v4166_v63  ;;  %v4187_v30 = vmul.f32 %v4163_v41, %v4163_v41  ;;  %v4190_v27 = vmul.f32 %v4166_v63, %v4166_v63 }
 0x2aa   : > { %4170 = vst [vmem:[%s9854_s17 + $0x10] sm:$0xff] %v4162_v1  ;;  %v4177_v44 = vadd.f32 %v4176_v36, %v4162_v1  ;;  %v4186_v46 = vmul.f32 %v4162_v1, %v4162_v1 }
 0x2ac   : > { %v4178_v6 = vadd.f32 %v4177_v44, %v4163_v41  ;;  %v4193_v9 = vadd.f32 %v4192_v15, %v4186_v46 }
 0x2ae   : > { %v4194_v8 = vadd.f32 %v4193_v9, %v4187_v30  ;;  %v4179_v19 = vadd.f32 %v4178_v6, %v4164_v42 }
 0x2b0   : > { %v4180_v50 = vadd.f32 %v4179_v19, %v4165_v51  ;;  %v4195_v25 = vadd.f32 %v4194_v8, %v4188_v2 }
 0x2b2   : > { %v4181_v21 = vadd.f32 %v4180_v50, %v4166_v63  ;;  %v4196_v23 = vadd.f32 %v4195_v25, %v4189_v17 }
 0x2b4   : > { %v4182_v14 = vadd.f32 %v4181_v21, %v4167_v0  ;;  %v4197_v33 = vadd.f32 %v4196_v23, %v4190_v27 }
 0x2b6   : > { %4183 = vst [vmem:[%s429_s19] sm:$0xff] %v4182_v14  ;;  %v4198_v52 = vadd.f32 %v4197_v33, %v4191_v24 }
 0x2b8   : > { %4199 = vst [vmem:[%s437_s24] sm:$0xff] %v4198_v52 }
 0x2b9 PF: > { %s18_s28 = sadd.s32 1, %s8016_s28   ;;  %s9895_s24 = smov %s8008_s26 }
 0x2ba   : > { %p15_p10 = scmp.ge.s32.totalorder %s18_s28, 18   ;;  %s9896_s25 = smov %s8012_s27 }
 0x2bb   : > { %s9897_s26 = smov %s9900_s29  ;;  %s9898_s27 = smov %s9904_s30 }
 0x2bc   :  { %17 = sbr.rel (!%p15_p10) target bundleno = 3 (0x3), region = 132 }

</bundles_post_ra>
